<compile_context>
chip_gen: v5e
topology: v5e:2x2
jax: 0.10.0
libtpu: 0.0.40
codegen_flags: <defaults>
</compile_context>

<pallas_src>
import functools

import jax
import jax.numpy as jnp
from jax import lax
from jax.experimental import pallas as pl
from jax.experimental.pallas import tpu as pltpu


LIN_TK = 2048     # K tile used for the (large) Linear matmul
LIN_TN = 256      # N tile for the 512-wide Linear -> 2 parallel N tiles


def _round_up(x, m):
    return (x + m - 1) // m * m


# ----------------------------------------------------------------------------
# Pallas kernel: tiled matmul with fused bias add + optional ReLU.
# Accumulates directly into the (f32) output block when there is a K grid.
# ----------------------------------------------------------------------------
def _mm_bias_act_kernel(x_ref, w_ref, b_ref, o_ref, *, relu, nk):
    if nk == 1:
        acc = jnp.dot(x_ref[...], w_ref[...], preferred_element_type=jnp.float32)
        acc = acc + b_ref[...]
        if relu:
            acc = jnp.maximum(acc, 0.0)
        o_ref[...] = acc.astype(o_ref.dtype)
        return

    k = pl.program_id(2)

    @pl.when(k == 0)
    def _():
        o_ref[...] = jnp.zeros_like(o_ref)

    o_ref[...] += jnp.dot(x_ref[...], w_ref[...],
                          preferred_element_type=jnp.float32)

    @pl.when(k == nk - 1)
    def _():
        out = o_ref[...] + b_ref[...]
        if relu:
            out = jnp.maximum(out, 0.0)
        o_ref[...] = out


def matmul_bias_act(x, w, b2d, *, relu, out_dtype=jnp.float32):
    """act(x @ w + b).  x:(M,K) bf16, w:(K,N) bf16 (pre-packed), b2d:(1,N) f32."""
    M, K = x.shape
    Kw, N = w.shape
    assert K == Kw, (K, Kw)

    # M tiling: small M -> one full block (no padding / ragged blocks at all);
    # large M -> 256-row tiles with a masked ragged tail via pl.cdiv.
    tm = M if M <= 1024 else 256
    # N tiling: full N for the small conv outputs, 256 for the 512-wide Linear
    # so the parallel N axis has extent >= 2 (v7x second TensorCore).
    tn = LIN_TN if (N % LIN_TN == 0 and N > LIN_TN) else N
    # K tiling: weights up to LIN_TK stay resident (single pass, no scratch);
    # the packed Linear weight K is pre-padded to a multiple of LIN_TK.
    tk = K if K <= LIN_TK else LIN_TK
    assert K % tk == 0
    nk = K // tk
    if nk > 1:
        assert out_dtype == jnp.float32   # accumulate in the output block

    grid = (pl.cdiv(M, tm), N // tn, nk)
    return pl.pallas_call(
        functools.partial(_mm_bias_act_kernel, relu=relu, nk=nk),
        out_shape=jax.ShapeDtypeStruct((M, N), out_dtype),
        grid_spec=pltpu.PrefetchScalarGridSpec(
            num_scalar_prefetch=0,
            grid=grid,
            in_specs=[
                pl.BlockSpec((tm, tk), lambda i, j, k: (i, k)),
                pl.BlockSpec((tk, tn), lambda i, j, k: (k, j)),
                pl.BlockSpec((1, tn), lambda i, j, k: (0, j)),
            ],
            out_specs=pl.BlockSpec((tm, tn), lambda i, j, k: (i, j)),
        ),
        compiler_params=pltpu.CompilerParams(
            dimension_semantics=("parallel", "parallel", "arbitrary"),
            vmem_limit_bytes=32 * 1024 * 1024),
    )(x, w, b2d)


# ----------------------------------------------------------------------------
# Conv2d(valid, stride) + ReLU = im2col (XLA glue) + fused Pallas matmul.
# ----------------------------------------------------------------------------
def conv2d_relu(x_nhwc, w_packed, b2d, kh, kw, stride):
    """x: (N,H,W,C) bf16; w_packed: (kh*kw*C, Cout) bf16 (pre-packed at init)."""
    N, H, W, C = x_nhwc.shape
    K, Co = w_packed.shape
    assert K == kh * kw * C
    OH = (H - kh) // stride + 1
    OW = (W - kw) // stride + 1

    # im2col: patch feature order (kh, kw, Cin) matches w_packed's row order.
    # TODO(synk): move this gather into the Pallas pipeline (direct conv).
    patches = []
    for i in range(kh):
        for j in range(kw):
            patches.append(
                lax.slice(x_nhwc,
                          (0, i, j, 0),
                          (N, i + stride * (OH - 1) + 1,
                           j + stride * (OW - 1) + 1, C),
                          (1, stride, stride, 1)))
    p = jnp.stack(patches, axis=3).reshape(N * OH * OW, K)

    out = matmul_bias_act(p, w_packed, b2d, relu=True, out_dtype=jnp.bfloat16)
    return out.reshape(N, OH, OW, Co)


# ----------------------------------------------------------------------------
# One-time parameter packing (done at init, NOT inside the forward).
# ----------------------------------------------------------------------------
def pack_params(params, conv3_hw):
    def pack_conv(w_oihw, b):
        co, ci, kh, kw = w_oihw.shape
        w2 = jnp.transpose(w_oihw, (2, 3, 1, 0)).reshape(kh * kw * ci, co)
        return w2.astype(jnp.bfloat16), b.reshape(1, co).astype(jnp.float32)

    packed = {}
    packed['conv1_w'], packed['conv1_b'] = pack_conv(params['conv1_w'], params['conv1_b'])
    packed['conv2_w'], packed['conv2_b'] = pack_conv(params['conv2_w'], params['conv2_b'])
    packed['conv3_w'], packed['conv3_b'] = pack_conv(params['conv3_w'], params['conv3_b'])

    # Linear weight: torch layout (512, C*H*W + 6) with NCHW-flattened image
    # columns.  Permute the image columns to NHWC order so the forward can
    # flatten the NHWC conv output with a plain reshape, transpose to (K, 512),
    # zero-pad K to the tile size, cast to bf16.
    lw, lb_ = params['lin_w'], params['lin_b']
    n_out, k_total = lw.shape
    h3, w3 = conv3_hw
    c3 = params['conv3_w'].shape[0]
    k_img = c3 * h3 * w3
    w_img = lw[:, :k_img].reshape(n_out, c3, h3, w3)
    w_img = jnp.transpose(w_img, (0, 2, 3, 1)).reshape(n_out, k_img)
    w_all = jnp.concatenate([w_img, lw[:, k_img:]], axis=1)

    kp = _round_up(k_total, 128)
    if kp > LIN_TK:
        kp = _round_up(k_total, LIN_TK)
    w_packed = jnp.zeros((kp, n_out), jnp.bfloat16)
    w_packed = w_packed.at[:k_total, :].set(w_all.T.astype(jnp.bfloat16))
    packed['lin_w'] = w_packed
    packed['lin_b'] = lb_.reshape(1, n_out).astype(jnp.float32)
    return packed


# ----------------------------------------------------------------------------
# DQNBase forward (uses packed params only — no per-call weight reshuffles).
# ----------------------------------------------------------------------------
def dqn_base_forward(packed, state_nhwc, t):
    x = state_nhwc.astype(jnp.bfloat16)
    x = conv2d_relu(x, packed['conv1_w'], packed['conv1_b'], 8, 8, 4)
    x = conv2d_relu(x, packed['conv2_w'], packed['conv2_b'], 4, 4, 2)
    x = conv2d_relu(x, packed['conv3_w'], packed['conv3_b'], 3, 3, 1)
    nb = x.shape[0]
    flat = x.reshape(nb, -1)              # NHWC flatten (lin_w columns permuted
                                          # to match at pack time)
    kp = packed['lin_w'].shape[0]
    pad = kp - (flat.shape[1] + t.shape[1])
    feat = jnp.concatenate(
        [flat, t.astype(jnp.bfloat16), jnp.zeros((nb, pad), jnp.bfloat16)],
        axis=1)
    return matmul_bias_act(feat, packed['lin_w'], packed['lin_b'],
                           relu=True, out_dtype=jnp.float32)


# Pure-JAX reference (f32, torch weight layout) used only for a correctness check.
def reference_forward(params, state_nhwc, t):
    def conv(x, w, b, s):
        w_hwio = jnp.transpose(w, (2, 3, 1, 0))
        y = lax.conv_general_dilated(
            x, w_hwio, (s, s), 'VALID',
            dimension_numbers=('NHWC', 'HWIO', 'NHWC'))
        return jnp.maximum(y + b, 0.0)

    x = conv(state_nhwc, params['conv1_w'], params['conv1_b'], 4)
    x = conv(x, params['conv2_w'], params['conv2_b'], 2)
    x = conv(x, params['conv3_w'], params['conv3_b'], 1)
    nb = x.shape[0]
    flat = jnp.transpose(x, (0, 3, 1, 2)).reshape(nb, -1)   # torch NCHW flatten
    feat = jnp.concatenate([flat, t], axis=1)
    out = feat @ params['lin_w'].T + params['lin_b']
    return jnp.maximum(out, 0.0)


if __name__ == "__main__":
    num_channels = 4
    batch = 2
    spatial = 64   # small demo size (real module hardcodes 400x400 -> 46x46x64)

    # conv output sizes for this input (same formulae as the conv stack)
    h1 = (spatial - 8) // 4 + 1
    h2 = (h1 - 4) // 2 + 1
    h3 = h2 - 3 + 1
    lin_in = 64 * h3 * h3 + 6

    key = jax.random.PRNGKey(0)
    ks = jax.random.split(key, 7)

    def he_uniform(k, shape, fan_in):
        bound = (6.0 / fan_in) ** 0.5  # kaiming_uniform_ default
        return jax.random.uniform(k, shape, jnp.float32, -bound, bound)

    params = {
        'conv1_w': he_uniform(ks[0], (32, num_channels, 8, 8), num_channels * 64),
        'conv1_b': jnp.zeros((32,), jnp.float32),
        'conv2_w': he_uniform(ks[1], (64, 32, 4, 4), 32 * 16),
        'conv2_b': jnp.zeros((64,), jnp.float32),
        'conv3_w': he_uniform(ks[2], (64, 64, 3, 3), 64 * 9),
        'conv3_b': jnp.zeros((64,), jnp.float32),
    }
    lb = 1.0 / (lin_in ** 0.5)  # torch default Linear init bound
    params['lin_w'] = jax.random.uniform(ks[3], (512, lin_in), jnp.float32, -lb, lb)
    params['lin_b'] = jax.random.uniform(ks[4], (512,), jnp.float32, -lb, lb)

    state = jax.random.uniform(ks[5], (batch, spatial, spatial, num_channels),
                               jnp.float32)
    t = jax.random.uniform(ks[6], (batch, 6), jnp.float32)

    packed = pack_params(params, (h3, h3))   # one-time packing, outside forward
    fwd = jax.jit(dqn_base_forward)
    out = jax.block_until_ready(fwd(packed, state, t))
    assert out.shape == (batch, 512), out.shape

    ref = jax.block_until_ready(reference_forward(params, state, t))
    rel_err = float(jnp.max(jnp.abs(out - ref)) / (jnp.max(jnp.abs(ref)) + 1e-6))
    assert rel_err < 5e-2, f"mismatch vs reference: rel_err={rel_err}"  # bf16 weights/acts

    print("KERNEL_OK")
</pallas_src>

<mosaic_0001>
module attributes {stable_mosaic.version = 11 : i64} {
  func.func @_mm_bias_act_kernel(%arg0: i32, %arg1: i32, %arg2: i32, %arg3: memref<450x256xbf16, #tpu.memory_space<vmem>>, %arg4: memref<256x32xbf16, #tpu.memory_space<vmem>>, %arg5: memref<1x32xf32, #tpu.memory_space<vmem>>, %arg6: memref<450x32xbf16, #tpu.memory_space<vmem>>) attributes {dimension_semantics = [#tpu.dimension_semantics<parallel>, #tpu.dimension_semantics<parallel>, #tpu.dimension_semantics<arbitrary>], iteration_bounds = array<i64: 1, 1, 1>, scalar_prefetch = 0 : i64, scratch_operands = 0 : i64, tpu.core_type = #tpu.core_type<tc>, window_params = [{transform_indices = @transform_0, window_bounds = array<i64: 450, 256>}, {transform_indices = @transform_1, window_bounds = array<i64: 256, 32>}, {transform_indices = @transform_2, window_bounds = array<i64: 1, 32>}, {transform_indices = @transform_3, window_bounds = array<i64: 450, 32>}]} {
    %c0 = arith.constant 0 : index
    %c0_0 = arith.constant 0 : index
    %0 = vector.load %arg3[%c0, %c0_0] : memref<450x256xbf16, #tpu.memory_space<vmem>>, vector<450x256xbf16>
    %c0_1 = arith.constant 0 : index
    %c0_2 = arith.constant 0 : index
    %1 = vector.load %arg4[%c0_1, %c0_2] : memref<256x32xbf16, #tpu.memory_space<vmem>>, vector<256x32xbf16>
    %cst = arith.constant dense<0.000000e+00> : vector<450x32xf32>
    %2 = tpu.matmul %0, %1, %cst {dimension_numbers = #tpu.dot_dimension_numbers<[1], [0], [0], [1], [0, 0, 1, 1], [], []>} : vector<450x256xbf16>, vector<256x32xbf16>, vector<450x32xf32> -> vector<450x32xf32>
    %c0_3 = arith.constant 0 : index
    %c0_4 = arith.constant 0 : index
    %3 = vector.load %arg5[%c0_3, %c0_4] : memref<1x32xf32, #tpu.memory_space<vmem>>, vector<1x32xf32>
    %4 = vector.broadcast %3 : vector<1x32xf32> to vector<450x32xf32>
    %5 = arith.addf %2, %4 : vector<450x32xf32>
    %cst_5 = arith.constant 0.000000e+00 : f32
    %6 = vector.broadcast %cst_5 : f32 to vector<450x32xf32>
    %7 = arith.maximumf %5, %6 : vector<450x32xf32>
    %8 = arith.truncf %7 : vector<450x32xf32> to vector<450x32xbf16>
    %c0_6 = arith.constant 0 : index
    %c0_7 = arith.constant 0 : index
    %9 = vector.load %arg6[%c0_6, %c0_7] : memref<450x32xbf16, #tpu.memory_space<vmem>>, vector<450x32xbf16>
    tpu.vector_store %arg6[%c0_6, %c0_7], %8 {strides = array<i32>} : memref<450x32xbf16, #tpu.memory_space<vmem>>, vector<450x32xbf16>,
    return
  }
  func.func @transform_0(%arg0: i32, %arg1: i32, %arg2: i32) -> (i32, i32) {
    %c0_i32 = arith.constant 0 : i32
    return %arg0, %arg2 : i32, i32
  }
  func.func @transform_1(%arg0: i32, %arg1: i32, %arg2: i32) -> (i32, i32) {
    %c0_i32 = arith.constant 0 : i32
    return %arg2, %arg1 : i32, i32
  }
  func.func @transform_2(%arg0: i32, %arg1: i32, %arg2: i32) -> (i32, i32) {
    %c0_i32 = arith.constant 0 : i32
    %c0_i32_0 = arith.constant 0 : i32
    return %c0_i32, %arg1 : i32, i32
  }
  func.func @transform_3(%arg0: i32, %arg1: i32, %arg2: i32) -> (i32, i32) {
    %c0_i32 = arith.constant 0 : i32
    return %arg0, %arg1 : i32, i32
  }
}

module attributes {stable_mosaic.version = 11 : i64} {
  func.func @_mm_bias_act_kernel(%arg0: i32, %arg1: i32, %arg2: i32, %arg3: memref<72x512xbf16, #tpu.memory_space<vmem>>, %arg4: memref<512x64xbf16, #tpu.memory_space<vmem>>, %arg5: memref<1x64xf32, #tpu.memory_space<vmem>>, %arg6: memref<72x64xbf16, #tpu.memory_space<vmem>>) attributes {dimension_semantics = [#tpu.dimension_semantics<parallel>, #tpu.dimension_semantics<parallel>, #tpu.dimension_semantics<arbitrary>], iteration_bounds = array<i64: 1, 1, 1>, scalar_prefetch = 0 : i64, scratch_operands = 0 : i64, tpu.core_type = #tpu.core_type<tc>, window_params = [{transform_indices = @transform_0, window_bounds = array<i64: 72, 512>}, {transform_indices = @transform_1, window_bounds = array<i64: 512, 64>}, {transform_indices = @transform_2, window_bounds = array<i64: 1, 64>}, {transform_indices = @transform_3, window_bounds = array<i64: 72, 64>}]} {
    %c0 = arith.constant 0 : index
    %c0_0 = arith.constant 0 : index
    %0 = vector.load %arg3[%c0, %c0_0] : memref<72x512xbf16, #tpu.memory_space<vmem>>, vector<72x512xbf16>
    %c0_1 = arith.constant 0 : index
    %c0_2 = arith.constant 0 : index
    %1 = vector.load %arg4[%c0_1, %c0_2] : memref<512x64xbf16, #tpu.memory_space<vmem>>, vector<512x64xbf16>
    %cst = arith.constant dense<0.000000e+00> : vector<72x64xf32>
    %2 = tpu.matmul %0, %1, %cst {dimension_numbers = #tpu.dot_dimension_numbers<[1], [0], [0], [1], [0, 0, 1, 1], [], []>} : vector<72x512xbf16>, vector<512x64xbf16>, vector<72x64xf32> -> vector<72x64xf32>
    %c0_3 = arith.constant 0 : index
    %c0_4 = arith.constant 0 : index
    %3 = vector.load %arg5[%c0_3, %c0_4] : memref<1x64xf32, #tpu.memory_space<vmem>>, vector<1x64xf32>
    %4 = vector.broadcast %3 : vector<1x64xf32> to vector<72x64xf32>
    %5 = arith.addf %2, %4 : vector<72x64xf32>
    %cst_5 = arith.constant 0.000000e+00 : f32
    %6 = vector.broadcast %cst_5 : f32 to vector<72x64xf32>
    %7 = arith.maximumf %5, %6 : vector<72x64xf32>
    %8 = arith.truncf %7 : vector<72x64xf32> to vector<72x64xbf16>
    %c0_6 = arith.constant 0 : index
    %c0_7 = arith.constant 0 : index
    %9 = vector.load %arg6[%c0_6, %c0_7] : memref<72x64xbf16, #tpu.memory_space<vmem>>, vector<72x64xbf16>
    tpu.vector_store %arg6[%c0_6, %c0_7], %8 {strides = array<i32>} : memref<72x64xbf16, #tpu.memory_space<vmem>>, vector<72x64xbf16>,
    return
  }
  func.func @transform_0(%arg0: i32, %arg1: i32, %arg2: i32) -> (i32, i32) {
    %c0_i32 = arith.constant 0 : i32
    return %arg0, %arg2 : i32, i32
  }
  func.func @transform_1(%arg0: i32, %arg1: i32, %arg2: i32) -> (i32, i32) {
    %c0_i32 = arith.constant 0 : i32
    return %arg2, %arg1 : i32, i32
  }
  func.func @transform_2(%arg0: i32, %arg1: i32, %arg2: i32) -> (i32, i32) {
    %c0_i32 = arith.constant 0 : i32
    %c0_i32_0 = arith.constant 0 : i32
    return %c0_i32, %arg1 : i32, i32
  }
  func.func @transform_3(%arg0: i32, %arg1: i32, %arg2: i32) -> (i32, i32) {
    %c0_i32 = arith.constant 0 : i32
    return %arg0, %arg1 : i32, i32
  }
}

module attributes {stable_mosaic.version = 11 : i64} {
  func.func @_mm_bias_act_kernel(%arg0: i32, %arg1: i32, %arg2: i32, %arg3: memref<32x576xbf16, #tpu.memory_space<vmem>>, %arg4: memref<576x64xbf16, #tpu.memory_space<vmem>>, %arg5: memref<1x64xf32, #tpu.memory_space<vmem>>, %arg6: memref<32x64xbf16, #tpu.memory_space<vmem>>) attributes {dimension_semantics = [#tpu.dimension_semantics<parallel>, #tpu.dimension_semantics<parallel>, #tpu.dimension_semantics<arbitrary>], iteration_bounds = array<i64: 1, 1, 1>, scalar_prefetch = 0 : i64, scratch_operands = 0 : i64, tpu.core_type = #tpu.core_type<tc>, window_params = [{transform_indices = @transform_0, window_bounds = array<i64: 32, 576>}, {transform_indices = @transform_1, window_bounds = array<i64: 576, 64>}, {transform_indices = @transform_2, window_bounds = array<i64: 1, 64>}, {transform_indices = @transform_3, window_bounds = array<i64: 32, 64>}]} {
    %c0 = arith.constant 0 : index
    %c0_0 = arith.constant 0 : index
    %0 = vector.load %arg3[%c0, %c0_0] : memref<32x576xbf16, #tpu.memory_space<vmem>>, vector<32x576xbf16>
    %c0_1 = arith.constant 0 : index
    %c0_2 = arith.constant 0 : index
    %1 = vector.load %arg4[%c0_1, %c0_2] : memref<576x64xbf16, #tpu.memory_space<vmem>>, vector<576x64xbf16>
    %cst = arith.constant dense<0.000000e+00> : vector<32x64xf32>
    %2 = tpu.matmul %0, %1, %cst {dimension_numbers = #tpu.dot_dimension_numbers<[1], [0], [0], [1], [0, 0, 1, 1], [], []>} : vector<32x576xbf16>, vector<576x64xbf16>, vector<32x64xf32> -> vector<32x64xf32>
    %c0_3 = arith.constant 0 : index
    %c0_4 = arith.constant 0 : index
    %3 = vector.load %arg5[%c0_3, %c0_4] : memref<1x64xf32, #tpu.memory_space<vmem>>, vector<1x64xf32>
    %4 = vector.broadcast %3 : vector<1x64xf32> to vector<32x64xf32>
    %5 = arith.addf %2, %4 : vector<32x64xf32>
    %cst_5 = arith.constant 0.000000e+00 : f32
    %6 = vector.broadcast %cst_5 : f32 to vector<32x64xf32>
    %7 = arith.maximumf %5, %6 : vector<32x64xf32>
    %8 = arith.truncf %7 : vector<32x64xf32> to vector<32x64xbf16>
    %c0_6 = arith.constant 0 : index
    %c0_7 = arith.constant 0 : index
    %9 = vector.load %arg6[%c0_6, %c0_7] : memref<32x64xbf16, #tpu.memory_space<vmem>>, vector<32x64xbf16>
    tpu.vector_store %arg6[%c0_6, %c0_7], %8 {strides = array<i32>} : memref<32x64xbf16, #tpu.memory_space<vmem>>, vector<32x64xbf16>,
    return
  }
  func.func @transform_0(%arg0: i32, %arg1: i32, %arg2: i32) -> (i32, i32) {
    %c0_i32 = arith.constant 0 : i32
    return %arg0, %arg2 : i32, i32
  }
  func.func @transform_1(%arg0: i32, %arg1: i32, %arg2: i32) -> (i32, i32) {
    %c0_i32 = arith.constant 0 : i32
    return %arg2, %arg1 : i32, i32
  }
  func.func @transform_2(%arg0: i32, %arg1: i32, %arg2: i32) -> (i32, i32) {
    %c0_i32 = arith.constant 0 : i32
    %c0_i32_0 = arith.constant 0 : i32
    return %c0_i32, %arg1 : i32, i32
  }
  func.func @transform_3(%arg0: i32, %arg1: i32, %arg2: i32) -> (i32, i32) {
    %c0_i32 = arith.constant 0 : i32
    return %arg0, %arg1 : i32, i32
  }
}

module attributes {stable_mosaic.version = 11 : i64} {
  func.func @_mm_bias_act_kernel(%arg0: i32, %arg1: i32, %arg2: i32, %arg3: memref<2x1152xbf16, #tpu.memory_space<vmem>>, %arg4: memref<1152x256xbf16, #tpu.memory_space<vmem>>, %arg5: memref<1x256xf32, #tpu.memory_space<vmem>>, %arg6: memref<2x256xf32, #tpu.memory_space<vmem>>) attributes {dimension_semantics = [#tpu.dimension_semantics<parallel>, #tpu.dimension_semantics<parallel>, #tpu.dimension_semantics<arbitrary>], iteration_bounds = array<i64: 1, 2, 1>, scalar_prefetch = 0 : i64, scratch_operands = 0 : i64, tpu.core_type = #tpu.core_type<tc>, window_params = [{transform_indices = @transform_0, window_bounds = array<i64: 2, 1152>}, {transform_indices = @transform_1, window_bounds = array<i64: 1152, 256>}, {transform_indices = @transform_2, window_bounds = array<i64: 1, 256>}, {transform_indices = @transform_3, window_bounds = array<i64: 2, 256>}]} {
    %c0 = arith.constant 0 : index
    %c0_0 = arith.constant 0 : index
    %0 = vector.load %arg3[%c0, %c0_0] : memref<2x1152xbf16, #tpu.memory_space<vmem>>, vector<2x1152xbf16>
    %c0_1 = arith.constant 0 : index
    %c0_2 = arith.constant 0 : index
    %1 = vector.load %arg4[%c0_1, %c0_2] : memref<1152x256xbf16, #tpu.memory_space<vmem>>, vector<1152x256xbf16>
    %cst = arith.constant dense<0.000000e+00> : vector<2x256xf32>
    %2 = tpu.matmul %0, %1, %cst {dimension_numbers = #tpu.dot_dimension_numbers<[1], [0], [0], [1], [0, 0, 1, 1], [], []>} : vector<2x1152xbf16>, vector<1152x256xbf16>, vector<2x256xf32> -> vector<2x256xf32>
    %c0_3 = arith.constant 0 : index
    %c0_4 = arith.constant 0 : index
    %3 = vector.load %arg5[%c0_3, %c0_4] : memref<1x256xf32, #tpu.memory_space<vmem>>, vector<1x256xf32>
    %4 = vector.broadcast %3 : vector<1x256xf32> to vector<2x256xf32>
    %5 = arith.addf %2, %4 : vector<2x256xf32>
    %cst_5 = arith.constant 0.000000e+00 : f32
    %6 = vector.broadcast %cst_5 : f32 to vector<2x256xf32>
    %7 = arith.maximumf %5, %6 : vector<2x256xf32>
    %c0_6 = arith.constant 0 : index
    %c0_7 = arith.constant 0 : index
    %8 = vector.load %arg6[%c0_6, %c0_7] : memref<2x256xf32, #tpu.memory_space<vmem>>, vector<2x256xf32>
    tpu.vector_store %arg6[%c0_6, %c0_7], %7 {strides = array<i32>} : memref<2x256xf32, #tpu.memory_space<vmem>>, vector<2x256xf32>,
    return
  }
  func.func @transform_0(%arg0: i32, %arg1: i32, %arg2: i32) -> (i32, i32) {
    %c0_i32 = arith.constant 0 : i32
    return %arg0, %arg2 : i32, i32
  }
  func.func @transform_1(%arg0: i32, %arg1: i32, %arg2: i32) -> (i32, i32) {
    %c0_i32 = arith.constant 0 : i32
    return %arg2, %arg1 : i32, i32
  }
  func.func @transform_2(%arg0: i32, %arg1: i32, %arg2: i32) -> (i32, i32) {
    %c0_i32 = arith.constant 0 : i32
    %c0_i32_0 = arith.constant 0 : i32
    return %c0_i32, %arg1 : i32, i32
  }
  func.func @transform_3(%arg0: i32, %arg1: i32, %arg2: i32) -> (i32, i32) {
    %c0_i32 = arith.constant 0 : i32
    return %arg0, %arg1 : i32, i32
  }
}

</mosaic_0001>

<bundles_post_ra>
// kernel: dqn_base_forward.4
= control target key start
LH: loop header
LB: loop body
LE: loop exit
PB: predicated region body
PF: predicated region fallthrough
CT: control target
= control target key end

     0   :  { %vm910_vm0 = vcmask 257024   ;;  %vm967_vm1 = vcmask 253952   ;;  %s2052_s1 = inlined_call_operand.vmem [shape: bf16[256,32], index: 1, kind: input, shape index: {}]   ;;  %s2053_s2 = inlined_call_operand.vmem [shape: f32[1,32], index: 2, kind: input, shape index: {}]   ;;  %s2054_s0 = inlined_call_operand.vmem [shape: bf16[450,256], index: 0, kind: input, shape index: {}]   ;;  %s2055_s3 = inlined_call_operand.vmem [shape: bf16[450,32], index: 3, kind: output, shape index: {}]  }
   0x1   :  { %v1324_v0 = vld [vmem:[%s2052_s1 + $0x38] sm:$0xff]  ;;  %v1323_v2 = vld [vmem:[%s2052_s1 + $0x30] sm:$0xff]  ;;  %v1322_v4 = vld [vmem:[%s2052_s1 + $0x28] sm:$0xff] }
   0x2   :  { %v1332_v1 = vld [vmem:[%s2052_s1 + $0x78] sm:$0xff]  ;;  %490 = vmatpush.bf16.msra.mxu0 %v1324_v0  ;;  %1333 = vmatpush.bf16.msra.mxu2 %v1324_v0  ;;  %v1331_v3 = vld [vmem:[%s2052_s1 + $0x70] sm:$0xff]  ;;  %v1330_v5 = vld [vmem:[%s2052_s1 + $0x68] sm:$0xff] }
   0x3   :  { %643 = vmatpush.bf16.msra.mxu1 %v1332_v1  ;;  %1341 = vmatpush.bf16.msra.mxu3 %v1332_v1  ;;  %v1321_v6 = vld [vmem:[%s2052_s1 + $0x20] sm:$0xff]  ;;  %v1320_v8 = vld [vmem:[%s2052_s1 + $0x18] sm:$0xff]  ;;  %v1319_v10 = vld [vmem:[%s2052_s1 + $0x10] sm:$0xff] }
   0x4   :  { %v1329_v7 = vld [vmem:[%s2052_s1 + $0x60] sm:$0xff]  ;;  %v1328_v9 = vld [vmem:[%s2052_s1 + $0x58] sm:$0xff]  ;;  %v1327_v11 = vld [vmem:[%s2052_s1 + $0x50] sm:$0xff] }
   0x5   :  { %v1318_v12 = vld [vmem:[%s2052_s1 + $0x8] sm:$0xff]  ;;  %v1317_v14 = vld [vmem:[%s2052_s1] sm:$0xff]  ;;  %v1291_v22 = vld [vmem:[%s2054_s0 + $0xf4] sm:$0xf] }
   0x6   :  { %491 = vmatpush.bf16.msra.mxu0 %v1323_v2  ;;  %1334 = vmatpush.bf16.msra.mxu2 %v1323_v2  ;;  %v1326_v13 = vld [vmem:[%s2052_s1 + $0x48] sm:$0xff]  ;;  %v1325_v15 = vld [vmem:[%s2052_s1 + $0x40] sm:$0xff]  ;;  %v1097_v23 = vld [vmem:[%s2054_s0 + $0xf8] sm:$0xf0] }
   0x7   :  { %644 = vmatpush.bf16.msra.mxu1 %v1331_v3  ;;  %1342 = vmatpush.bf16.msra.mxu3 %v1331_v3  ;;  %v975_v16 = vld [vmem:[%s2054_s0] sm:$0xf]  ;;  %v1262_v17 = vld [vmem:[%s2054_s0 + $0x4] sm:$0xf0]  ;;  %v1261_v20 = vld [vmem:[%s2054_s0 + $0x4] sm:$0xf]  ;;  %v1100_v27 = vor.u32 %v1291_v22, %v1097_v23 }
   0x8   :  { %v1087_v18 = vld [vmem:[%s2054_s0 + $0xe0] sm:$0xf]  ;;  %v1290_v19 = vld [vmem:[%s2054_s0 + $0xe4] sm:$0xf0]  ;;  %v977_v21 = vld [vmem:[%s2054_s0 + $0x8] sm:$0xf0]  ;;  %v976_v24 = vor.u32 %v1262_v17, %v975_v16 }
   0x9   :  { %v1088_v25 = vor.u32 %v1290_v19, %v1087_v18  ;;  %v980_v26 = vor.u32 %v1261_v20, %v977_v21  ;;  %v983_v28 = vld [vmem:[%s2054_s0 + $0x10] sm:$0xf]  ;;  %v1264_v29 = vld [vmem:[%s2054_s0 + $0x14] sm:$0xf0]  ;;  %v1263_v32 = vld [vmem:[%s2054_s0 + $0x14] sm:$0xf] }
   0xa   :  { %492 = vmatpush.bf16.msra.mxu0 %v1322_v4  ;;  %1335 = vmatpush.bf16.msra.mxu2 %v1322_v4  ;;  %v1095_v30 = vld [vmem:[%s2054_s0 + $0xf0] sm:$0xf]  ;;  %v1292_v31 = vld [vmem:[%s2054_s0 + $0xf4] sm:$0xf0]  ;;  %v985_v33 = vld [vmem:[%s2054_s0 + $0x18] sm:$0xf0]  ;;  %v984_v36 = vor.u32 %v1264_v29, %v983_v28 }
   0xb   :  { %645 = vmatpush.bf16.msra.mxu1 %v1330_v5  ;;  %1343 = vmatpush.bf16.msra.mxu3 %v1330_v5  ;;  %v1293_v34 = vld [vmem:[%s2054_s0 + $0x104] sm:$0xf]  ;;  %v1105_v35 = vld [vmem:[%s2054_s0 + $0x108] sm:$0xf0]  ;;  %v1096_v37 = vor.u32 %v1292_v31, %v1095_v30  ;;  %v988_v38 = vor.u32 %v1263_v32, %v985_v33  ;;  %v991_v40 = vld [vmem:[%s2054_s0 + $0x20] sm:$0xf] }
   0xc   :  { %v1108_v39 = vor.u32 %v1293_v34, %v1105_v35  ;;  %v1266_v41 = vld [vmem:[%s2054_s0 + $0x24] sm:$0xf0]  ;;  %v1103_v42 = vld [vmem:[%s2054_s0 + $0x100] sm:$0xf]  ;;  %v1265_v44 = vld [vmem:[%s2054_s0 + $0x24] sm:$0xf] }
   0xd   :  { %v1294_v43 = vld [vmem:[%s2054_s0 + $0x104] sm:$0xf0]  ;;  %v993_v45 = vld [vmem:[%s2054_s0 + $0x28] sm:$0xf0]  ;;  %v1295_v46 = vld [vmem:[%s2054_s0 + $0x114] sm:$0xf]  ;;  %v992_v48 = vor.u32 %v1266_v41, %v991_v40 }
   0xe   :  { %493 = vmatpush.bf16.msra.mxu0 %v1321_v6  ;;  %1336 = vmatpush.bf16.msra.mxu2 %v1321_v6  ;;  %v1113_v47 = vld [vmem:[%s2054_s0 + $0x118] sm:$0xf0]  ;;  %v1104_v49 = vor.u32 %v1294_v43, %v1103_v42  ;;  %v996_v50 = vor.u32 %v1265_v44, %v993_v45  ;;  %v999_v52 = vld [vmem:[%s2054_s0 + $0x30] sm:$0xf]  ;;  %v1268_v53 = vld [vmem:[%s2054_s0 + $0x34] sm:$0xf0] }
   0xf   :  { %646 = vmatpush.bf16.msra.mxu1 %v1329_v7  ;;  %1344 = vmatpush.bf16.msra.mxu3 %v1329_v7  ;;  %v1116_v51 = vor.u32 %v1295_v46, %v1113_v47  ;;  %v1111_v54 = vld [vmem:[%s2054_s0 + $0x110] sm:$0xf]  ;;  %v1296_v55 = vld [vmem:[%s2054_s0 + $0x114] sm:$0xf0]  ;;  %v1267_v56 = vld [vmem:[%s2054_s0 + $0x34] sm:$0xf]  ;;  %v1000_v60 = vor.u32 %v1268_v53, %v999_v52 }
  0x10   :  { %v1001_v57 = vld [vmem:[%s2054_s0 + $0x38] sm:$0xf0]  ;;  %v1297_v58 = vld [vmem:[%s2054_s0 + $0x124] sm:$0xf]  ;;  %v1121_v59 = vld [vmem:[%s2054_s0 + $0x128] sm:$0xf0]  ;;  %v1112_v61 = vor.u32 %v1296_v55, %v1111_v54 }
  0x11   :  { %v1004_v62 = vor.u32 %v1267_v56, %v1001_v57  ;;  %v1124_v63 = vor.u32 %v1297_v58, %v1121_v59  ;;  %v1007_v0 = vld [vmem:[%s2054_s0 + $0x40] sm:$0xf]  ;;  %v1270_v1 = vld [vmem:[%s2054_s0 + $0x44] sm:$0xf0]  ;;  %v1269_v4 = vld [vmem:[%s2054_s0 + $0x44] sm:$0xf] }
  0x12   :  { %494 = vmatpush.bf16.msra.mxu0 %v1320_v8  ;;  %1337 = vmatpush.bf16.msra.mxu2 %v1320_v8  ;;  %v1119_v2 = vld [vmem:[%s2054_s0 + $0x120] sm:$0xf]  ;;  %v1298_v3 = vld [vmem:[%s2054_s0 + $0x124] sm:$0xf0]  ;;  %v1009_v5 = vld [vmem:[%s2054_s0 + $0x48] sm:$0xf0]  ;;  %v1008_v8 = vor.u32 %v1270_v1, %v1007_v0 }
  0x13   :  { %647 = vmatpush.bf16.msra.mxu1 %v1328_v9  ;;  %1345 = vmatpush.bf16.msra.mxu3 %v1328_v9  ;;  %v1299_v6 = vld [vmem:[%s2054_s0 + $0x134] sm:$0xf]  ;;  %v1129_v7 = vld [vmem:[%s2054_s0 + $0x138] sm:$0xf0]  ;;  %v1120_v9 = vor.u32 %v1298_v3, %v1119_v2  ;;  %v1301_v18 = vld [vmem:[%s2054_s0 + $0x144] sm:$0xf] }
  0x14   :  { %v1271_v16 = vld [vmem:[%s2054_s0 + $0x54] sm:$0xf]  ;;  %v1017_v17 = vld [vmem:[%s2054_s0 + $0x58] sm:$0xf0]  ;;  %v1137_v19 = vld [vmem:[%s2054_s0 + $0x148] sm:$0xf0] }
  0x15   :  { %v1020_v22 = vor.u32 %v1271_v16, %v1017_v17  ;;  %v1140_v23 = vor.u32 %v1301_v18, %v1137_v19  ;;  %v1273_v28 = vld [vmem:[%s2054_s0 + $0x64] sm:$0xf]  ;;  %v1025_v29 = vld [vmem:[%s2054_s0 + $0x68] sm:$0xf0]  ;;  %v1303_v30 = vld [vmem:[%s2054_s0 + $0x154] sm:$0xf] }
  0x16   :  { %495 = vmatpush.bf16.msra.mxu0 %v1319_v10  ;;  %1338 = vmatpush.bf16.msra.mxu2 %v1319_v10  ;;  %v1012_v10 = vor.u32 %v1269_v4, %v1009_v5  ;;  %v1145_v31 = vld [vmem:[%s2054_s0 + $0x158] sm:$0xf0]  ;;  %v1028_v34 = vor.u32 %v1273_v28, %v1025_v29  ;;  %v1275_v40 = vld [vmem:[%s2054_s0 + $0x74] sm:$0xf]  ;;  %v1305_v42 = vld [vmem:[%s2054_s0 + $0x164] sm:$0xf] }
  0x17   :  { %648 = vmatpush.bf16.msra.mxu1 %v1327_v11  ;;  %1346 = vmatpush.bf16.msra.mxu3 %v1327_v11  ;;  %v1132_v11 = vor.u32 %v1299_v6, %v1129_v7  ;;  %v1148_v35 = vor.u32 %v1303_v30, %v1145_v31  ;;  %v1033_v41 = vld [vmem:[%s2054_s0 + $0x78] sm:$0xf0]  ;;  %v1153_v43 = vld [vmem:[%s2054_s0 + $0x168] sm:$0xf0]  ;;  %v1306_v52 = vld [vmem:[%s2054_s0 + $0x164] sm:$0xf0] }
  0x18   :  { %v1036_v46 = vor.u32 %v1275_v40, %v1033_v41  ;;  %v1156_v47 = vor.u32 %v1305_v42, %v1153_v43  ;;  %v1277_v53 = vld [vmem:[%s2054_s0 + $0x84] sm:$0xf]  ;;  %v1041_v54 = vld [vmem:[%s2054_s0 + $0x88] sm:$0xf0]  ;;  %v1307_v55 = vld [vmem:[%s2054_s0 + $0x174] sm:$0xf] }
  0x19   :  { %v1161_v56 = vld [vmem:[%s2054_s0 + $0x178] sm:$0xf0]  ;;  %v1309_v16 = vld [vmem:[%s2054_s0 + $0x184] sm:$0xf]  ;;  %v1169_v17 = vld [vmem:[%s2054_s0 + $0x188] sm:$0xf0] }
  0x1a   :  { %496 = vmatpush.bf16.msra.mxu0 %v1318_v12  ;;  %1339 = vmatpush.bf16.msra.mxu2 %v1318_v12  ;;  %v1015_v12 = vld [vmem:[%s2054_s0 + $0x50] sm:$0xf]  ;;  %v1282_v41 = vld [vmem:[%s2054_s0 + $0xa4] sm:$0xf0]  ;;  %v1167_v42 = vld [vmem:[%s2054_s0 + $0x180] sm:$0xf] }
  0x1b   :  { %649 = vmatpush.bf16.msra.mxu1 %v1326_v13  ;;  %1347 = vmatpush.bf16.msra.mxu3 %v1326_v13  ;;  %v1272_v13 = vld [vmem:[%s2054_s0 + $0x54] sm:$0xf0]  ;;  %v1310_v43 = vld [vmem:[%s2054_s0 + $0x184] sm:$0xf0] }
  0x1c   :  { %v1016_v20 = vor.u32 %v1272_v13, %v1015_v12  ;;  %v1308_v12 = vld [vmem:[%s2054_s0 + $0x174] sm:$0xf0]  ;;  %v1279_v13 = vld [vmem:[%s2054_s0 + $0x94] sm:$0xf] }
  0x1e   :  { %497 = vmatpush.bf16.msra.mxu0 %v1317_v14  ;;  %1340 = vmatpush.bf16.msra.mxu2 %v1317_v14  ;;  %v1127_v14 = vld [vmem:[%s2054_s0 + $0x130] sm:$0xf] }
  0x1f   :  { %650 = vmatpush.bf16.msra.mxu1 %v1325_v15  ;;  %1348 = vmatpush.bf16.msra.mxu3 %v1325_v15  ;;  %v1300_v15 = vld [vmem:[%s2054_s0 + $0x134] sm:$0xf0] }
  0x20   :  { %v1128_v21 = vor.u32 %v1300_v15, %v1127_v14  ;;  %v1049_v14 = vld [vmem:[%s2054_s0 + $0x98] sm:$0xf0] }
  0x21   :  { %498 = vmatmul.bf16.vlgmr.msra.gmra.mxu0 %v976_v24  ;;  %568 = vmatmul.bf16.vlgmr.msra.gmra.mxu2 %v1088_v25  ;;  %v1023_v24 = vld [vmem:[%s2054_s0 + $0x60] sm:$0xf]  ;;  %v1274_v25 = vld [vmem:[%s2054_s0 + $0x64] sm:$0xf0] }
  0x22   :  { %651 = vmatmul.bf16.vlgmr.msra.gmra.mxu1 %v980_v26  ;;  %726 = vmatmul.bf16.vlgmr.msra.gmra.mxu3 %v1100_v27  ;;  %v1135_v26 = vld [vmem:[%s2054_s0 + $0x140] sm:$0xf]  ;;  %v1302_v27 = vld [vmem:[%s2054_s0 + $0x144] sm:$0xf0]  ;;  %v1024_v32 = vor.u32 %v1274_v25, %v1023_v24  ;;  %v1052_v24 = vor.u32 %v1279_v13, %v1049_v14  ;;  %v1172_v25 = vor.u32 %v1309_v16, %v1169_v17  ;;  %v1175_v16 = vld [vmem:[%s2054_s0 + $0x190] sm:$0xf] }
  0x23   :  { %v1136_v33 = vor.u32 %v1302_v27, %v1135_v26  ;;  %v1312_v17 = vld [vmem:[%s2054_s0 + $0x194] sm:$0xf0] }
  0x31   :  { %503 = vmatmul.bf16.gmra.mxu0 %v984_v36  ;;  %573 = vmatmul.bf16.gmra.mxu2 %v1096_v37  ;;  %v1031_v36 = vld [vmem:[%s2054_s0 + $0x70] sm:$0xf]  ;;  %v1276_v37 = vld [vmem:[%s2054_s0 + $0x74] sm:$0xf0] }
  0x32   :  { %656 = vmatmul.bf16.gmra.mxu1 %v988_v38  ;;  %731 = vmatmul.bf16.gmra.mxu3 %v1108_v39  ;;  %v1143_v38 = vld [vmem:[%s2054_s0 + $0x150] sm:$0xf]  ;;  %v1304_v39 = vld [vmem:[%s2054_s0 + $0x154] sm:$0xf0]  ;;  %v1032_v44 = vor.u32 %v1276_v37, %v1031_v36 }
  0x33   :  { %v1144_v45 = vor.u32 %v1304_v39, %v1143_v38  ;;  %v1055_v38 = vld [vmem:[%s2054_s0 + $0xa0] sm:$0xf] }
  0x41   :  { %508 = vmatmul.bf16.gmra.mxu0 %v992_v48  ;;  %578 = vmatmul.bf16.gmra.mxu2 %v1104_v49  ;;  %v1613_v48 = vld [vmem:[%s2053_s2] ss:$0 sm:$0xff] }
  0x42   :  { %661 = vmatmul.bf16.gmra.mxu1 %v996_v50  ;;  %736 = vmatmul.bf16.gmra.mxu3 %v1116_v51  ;;  %v1039_v49 = vld [vmem:[%s2054_s0 + $0x80] sm:$0xf]  ;;  %v1278_v50 = vld [vmem:[%s2054_s0 + $0x84] sm:$0xf0] }
  0x43   :  { %v1151_v51 = vld [vmem:[%s2054_s0 + $0x160] sm:$0xf]  ;;  %v1040_v57 = vor.u32 %v1278_v50, %v1039_v49  ;;  %v1311_v49 = vld [vmem:[%s2054_s0 + $0x194] sm:$0xf]  ;;  %v1177_v50 = vld [vmem:[%s2054_s0 + $0x198] sm:$0xf0] }
  0x44   :  { %v1152_v58 = vor.u32 %v1306_v52, %v1151_v51 }
  0x51   :  { %513 = vmatmul.bf16.gmra.mxu0 %v1000_v60  ;;  %583 = vmatmul.bf16.gmra.mxu2 %v1112_v61  ;;  %v1044_v60 = vor.u32 %v1277_v53, %v1041_v54  ;;  %v1164_v61 = vor.u32 %v1307_v55, %v1161_v56  ;;  %v1056_v54 = vor.u32 %v1282_v41, %v1055_v38 }
  0x52   :  { %666 = vmatmul.bf16.gmra.mxu1 %v1004_v62  ;;  %741 = vmatmul.bf16.gmra.mxu3 %v1124_v63  ;;  %v1168_v55 = vor.u32 %v1310_v43, %v1167_v42 }
  0x61   :  { %518 = vmatmul.bf16.gmra.mxu0 %v1008_v8  ;;  %588 = vmatmul.bf16.gmra.mxu2 %v1120_v9  ;;  %v1047_v9 = vld [vmem:[%s2054_s0 + $0x90] sm:$0xf] }
  0x62   :  { %671 = vmatmul.bf16.gmra.mxu1 %v1012_v10  ;;  %746 = vmatmul.bf16.gmra.mxu3 %v1132_v11  ;;  %v1280_v10 = vld [vmem:[%s2054_s0 + $0x94] sm:$0xf0]  ;;  %v1159_v11 = vld [vmem:[%s2054_s0 + $0x170] sm:$0xf] }
  0x71   :  { %523 = vmatmul.bf16.gmra.mxu0 %v1016_v20  ;;  %593 = vmatmul.bf16.gmra.mxu2 %v1128_v21  ;;  %v1048_v20 = vor.u32 %v1280_v10, %v1047_v9  ;;  %v1160_v21 = vor.u32 %v1308_v12, %v1159_v11  ;;  %v1063_v12 = vld [vmem:[%s2054_s0 + $0xb0] sm:$0xf] }
  0x72   :  { %676 = vmatmul.bf16.gmra.mxu1 %v1020_v22  ;;  %751 = vmatmul.bf16.gmra.mxu3 %v1140_v23 }
  0x81   :  { %528 = vmatmul.bf16.gmra.mxu0 %v1024_v32  ;;  %598 = vmatmul.bf16.gmra.mxu2 %v1136_v33 }
  0x82   :  { %681 = vmatmul.bf16.gmra.mxu1 %v1028_v34  ;;  %756 = vmatmul.bf16.gmra.mxu3 %v1148_v35 }
  0x91   :  { %533 = vmatmul.bf16.gmra.mxu0 %v1032_v44  ;;  %603 = vmatmul.bf16.gmra.mxu2 %v1144_v45  ;;  %v1281_v44 = vld [vmem:[%s2054_s0 + $0xa4] sm:$0xf]  ;;  %v1057_v45 = vld [vmem:[%s2054_s0 + $0xa8] sm:$0xf0] }
  0x92   :  { %686 = vmatmul.bf16.gmra.mxu1 %v1036_v46  ;;  %761 = vmatmul.bf16.gmra.mxu3 %v1156_v47 }
  0x9e   :  { %v499_v59 = vpop.f32.mrf.mxu0 }
  0x9f   :  { %v500_v62 = vadd.f32 %v1613_v48, %v499_v59  ;;  %v652_v63 = vpop.f32.mrf.mxu1  ;;  %v1180_v59 = vor.u32 %v1311_v49, %v1177_v50  ;;  %v1071_v50 = vld [vmem:[%s2054_s0 + $0xc0] sm:$0xf] }
  0xa1   :  { %v653_v0 = vadd.f32 %v652_v63, %v500_v62  ;;  %538 = vmatmul.bf16.gmra.mxu0 %v1040_v57  ;;  %608 = vmatmul.bf16.gmra.mxu2 %v1152_v58  ;;  %v1060_v58 = vor.u32 %v1281_v44, %v1057_v45 }
  0xa2   :  { %691 = vmatmul.bf16.gmra.mxu1 %v1044_v60  ;;  %766 = vmatmul.bf16.gmra.mxu3 %v1164_v61 }
  0xa3   :  { %v796_v1 = vmax.f32 %v653_v0, 0.0 }
  0xa4   :  { %v1640_v2 = vpop.f32.mrf.mxu2 }
  0xa5   :  { %v853_v3 = vpack.c.bf16 %v796_v1, %v796_v1  ;;  %v727_v4 = vpop.f32.mrf.mxu3 }
  0xa6   :  { %v501_v5 = vpop.f32.mrf.mxu0 }
  0xa7   :  { %911 = vst.msk [vmem:[%s2055_s3] sm:$0xf] %vm910_vm0, %v853_v3  ;;  %v502_v6 = vadd.f32 %v1613_v48, %v501_v5  ;;  %v654_v7 = vpop.f32.mrf.mxu1 }
  0xa9   :  { %v655_v8 = vadd.f32 %v654_v7, %v502_v6 }
  0xab   :  { %v797_v15 = vmax.f32 %v655_v8, 0.0 }
  0xac   :  { %v1671_v18 = vpop.f32.mrf.mxu2 }
  0xad   :  { %v854_v19 = vpack.c.bf16 %v797_v15, %v797_v15  ;;  %v729_v22 = vpop.f32.mrf.mxu3  ;;  %v1284_v15 = vld [vmem:[%s2054_s0 + $0xb4] sm:$0xf0] }
  0xae   :  { %v504_v23 = vpop.f32.mrf.mxu0 }
  0xaf   :  { %912 = vst.msk [vmem:[%s2055_s3 + $0x4] sm:$0xf] %vm910_vm0, %v854_v19  ;;  %v505_v26 = vadd.f32 %v1613_v48, %v504_v23  ;;  %v657_v27 = vpop.f32.mrf.mxu1  ;;  %v1283_v19 = vld [vmem:[%s2054_s0 + $0xb4] sm:$0xf]  ;;  %v1313_v23 = vld [vmem:[%s2054_s0 + $0x1a4] sm:$0xf] }
  0xb1   :  { %v658_v28 = vadd.f32 %v657_v27, %v505_v26  ;;  %543 = vmatmul.bf16.gmra.mxu0 %v1048_v20  ;;  %613 = vmatmul.bf16.gmra.mxu2 %v1160_v21  ;;  %v1065_v20 = vld [vmem:[%s2054_s0 + $0xb8] sm:$0xf0] }
  0xb2   :  { %696 = vmatmul.bf16.gmra.mxu1 %v1052_v24  ;;  %771 = vmatmul.bf16.gmra.mxu3 %v1172_v25  ;;  %v1185_v24 = vld [vmem:[%s2054_s0 + $0x1a8] sm:$0xf0] }
  0xb3   :  { %v798_v29 = vmax.f32 %v658_v28, 0.0  ;;  %v1064_v28 = vor.u32 %v1284_v15, %v1063_v12 }
  0xb4   :  { %v574_v30 = vpop.f32.mrf.mxu2 }
  0xb5   :  { %v855_v31 = vpack.c.bf16 %v798_v29, %v798_v29  ;;  %v575_v32 = vadd.f32 %v1613_v48, %v574_v30  ;;  %v732_v33 = vpop.f32.mrf.mxu3  ;;  %v1176_v29 = vor.u32 %v1312_v17, %v1175_v16 }
  0xb6   :  { %v506_v34 = vpop.f32.mrf.mxu0 }
  0xb7   :  { %913 = vst.msk [vmem:[%s2055_s3 + $0x8] sm:$0xf] %vm910_vm0, %v855_v31  ;;  %v728_v35 = vadd.f32 %v727_v4, %v575_v32  ;;  %v507_v36 = vadd.f32 %v1613_v48, %v506_v34  ;;  %v659_v37 = vpop.f32.mrf.mxu1  ;;  %v1068_v32 = vor.u32 %v1283_v19, %v1065_v20 }
  0xb9   :  { %v826_v39 = vmax.f32 %v728_v35, 0.0  ;;  %v660_v40 = vadd.f32 %v659_v37, %v507_v36 }
  0xbb   :  { %v883_v46 = vpack.c.bf16 %v826_v39, %v826_v39  ;;  %v799_v47 = vmax.f32 %v660_v40, 0.0 }
  0xbc   :  { %v576_v51 = vpop.f32.mrf.mxu2 }
  0xbd   :  { %941 = vst.msk [vmem:[%s2055_s3 + $0x78] sm:$0xf] %vm910_vm0, %v883_v46  ;;  %v856_v52 = vpack.c.bf16 %v799_v47, %v799_v47  ;;  %v577_v53 = vadd.f32 %v1613_v48, %v576_v51  ;;  %v734_v56 = vpop.f32.mrf.mxu3 }
  0xbe   :  { %v509_v57 = vpop.f32.mrf.mxu0 }
  0xbf   :  { %914 = vst.msk [vmem:[%s2055_s3 + $0xc] sm:$0xf] %vm910_vm0, %v856_v52  ;;  %v730_v60 = vadd.f32 %v729_v22, %v577_v53  ;;  %v510_v61 = vadd.f32 %v1613_v48, %v509_v57  ;;  %v662_v62 = vpop.f32.mrf.mxu1  ;;  %v1286_v53 = vld [vmem:[%s2054_s0 + $0xc4] sm:$0xf0]  ;;  %v1073_v57 = vld [vmem:[%s2054_s0 + $0xc8] sm:$0xf0] }
  0xc1   :  { %v827_v63 = vmax.f32 %v730_v60, 0.0  ;;  %v663_v0 = vadd.f32 %v662_v62, %v510_v61  ;;  %548 = vmatmul.bf16.gmra.mxu0 %v1056_v54  ;;  %618 = vmatmul.bf16.gmra.mxu2 %v1168_v55  ;;  %v1183_v54 = vld [vmem:[%s2054_s0 + $0x1a0] sm:$0xf]  ;;  %v1314_v55 = vld [vmem:[%s2054_s0 + $0x1a4] sm:$0xf0] }
  0xc2   :  { %701 = vmatmul.bf16.gmra.mxu1 %v1060_v58  ;;  %776 = vmatmul.bf16.gmra.mxu3 %v1180_v59  ;;  %v1315_v60 = vld [vmem:[%s2054_s0 + $0x1b4] sm:$0xf]  ;;  %v1193_v61 = vld [vmem:[%s2054_s0 + $0x1b8] sm:$0xf0] }
  0xc3   :  { %v884_v1 = vpack.c.bf16 %v827_v63, %v827_v63  ;;  %v800_v3 = vmax.f32 %v663_v0, 0.0 }
  0xc4   :  { %v579_v4 = vpop.f32.mrf.mxu2 }
  0xc5   :  { %942 = vst.msk [vmem:[%s2055_s3 + $0x7c] sm:$0xf] %vm910_vm0, %v884_v1  ;;  %v857_v5 = vpack.c.bf16 %v800_v3, %v800_v3  ;;  %v580_v6 = vadd.f32 %v1613_v48, %v579_v4  ;;  %v737_v7 = vpop.f32.mrf.mxu3  ;;  %v1072_v1 = vor.u32 %v1286_v53, %v1071_v50  ;;  %v1184_v3 = vor.u32 %v1314_v55, %v1183_v54 }
  0xc6   :  { %v511_v8 = vpop.f32.mrf.mxu0 }
  0xc7   :  { %915 = vst.msk [vmem:[%s2055_s3 + $0x10] sm:$0xf] %vm910_vm0, %v857_v5  ;;  %v733_v9 = vadd.f32 %v732_v33, %v580_v6  ;;  %v512_v10 = vadd.f32 %v1613_v48, %v511_v8  ;;  %v664_v11 = vpop.f32.mrf.mxu1  ;;  %v1188_v33 = vor.u32 %v1313_v23, %v1185_v24  ;;  %v70_v24 = vld [vmem:[%s2054_s0 + $0x1c0] sm:$0x11] }
  0xc9   :  { %v828_v13 = vmax.f32 %v733_v9, 0.0  ;;  %v665_v14 = vadd.f32 %v664_v11, %v512_v10 }
  0xcb   :  { %v885_v21 = vpack.c.bf16 %v828_v13, %v828_v13  ;;  %v801_v22 = vmax.f32 %v665_v14, 0.0 }
  0xcc   :  { %v581_v25 = vpop.f32.mrf.mxu2 }
  0xcd   :  { %943 = vst.msk [vmem:[%s2055_s3 + $0x80] sm:$0xf] %vm910_vm0, %v885_v21  ;;  %v858_v26 = vpack.c.bf16 %v801_v22, %v801_v22  ;;  %v582_v27 = vadd.f32 %v1613_v48, %v581_v25  ;;  %v739_v30 = vpop.f32.mrf.mxu3 }
  0xce   :  { %v514_v31 = vpop.f32.mrf.mxu0 }
  0xcf   :  { %916 = vst.msk [vmem:[%s2055_s3 + $0x14] sm:$0xf] %vm910_vm0, %v858_v26  ;;  %v735_v34 = vadd.f32 %v734_v56, %v582_v27  ;;  %v515_v35 = vadd.f32 %v1613_v48, %v514_v31  ;;  %v667_v36 = vpop.f32.mrf.mxu1  ;;  %v1285_v56 = vld [vmem:[%s2054_s0 + $0xc4] sm:$0xf]  ;;  %v1079_v27 = vld [vmem:[%s2054_s0 + $0xd0] sm:$0xf]  ;;  %v277_v31 = vunpack.c.h.b16 %v70_v24 }
  0xd0   :  { %v1076_v6 = vor.u32 %v1285_v56, %v1073_v57 }
  0xd1   :  { %v829_v37 = vmax.f32 %v735_v34, 0.0  ;;  %v668_v38 = vadd.f32 %v667_v36, %v515_v35  ;;  %553 = vmatmul.bf16.gmra.mxu0 %v1064_v28  ;;  %623 = vmatmul.bf16.gmra.mxu2 %v1176_v29  ;;  %v1288_v28 = vld [vmem:[%s2054_s0 + $0xd4] sm:$0xf0]  ;;  %v1191_v29 = vld [vmem:[%s2054_s0 + $0x1b0] sm:$0xf] }
  0xd2   :  { %706 = vmatmul.bf16.gmra.mxu1 %v1068_v32  ;;  %781 = vmatmul.bf16.gmra.mxu3 %v1188_v33  ;;  %v1287_v34 = vld [vmem:[%s2054_s0 + $0xd4] sm:$0xf]  ;;  %v1081_v35 = vld [vmem:[%s2054_s0 + $0xd8] sm:$0xf0] }
  0xd3   :  { %v886_v39 = vpack.c.bf16 %v829_v37, %v829_v37  ;;  %v802_v40 = vmax.f32 %v668_v38, 0.0 }
  0xd4   :  { %v584_v41 = vpop.f32.mrf.mxu2 }
  0xd5   :  { %944 = vst.msk [vmem:[%s2055_s3 + $0x84] sm:$0xf] %vm910_vm0, %v886_v39  ;;  %v859_v42 = vpack.c.bf16 %v802_v40, %v802_v40  ;;  %v585_v43 = vadd.f32 %v1613_v48, %v584_v41  ;;  %v742_v44 = vpop.f32.mrf.mxu3  ;;  %v1080_v39 = vor.u32 %v1288_v28, %v1079_v27 }
  0xd6   :  { %v516_v45 = vpop.f32.mrf.mxu0 }
  0xd7   :  { %917 = vst.msk [vmem:[%s2055_s3 + $0x18] sm:$0xf] %vm910_vm0, %v859_v42  ;;  %v738_v46 = vadd.f32 %v737_v7, %v585_v43  ;;  %v517_v47 = vadd.f32 %v1613_v48, %v516_v45  ;;  %v669_v49 = vpop.f32.mrf.mxu1  ;;  %v1196_v7 = vor.u32 %v1315_v60, %v1193_v61  ;;  %v1084_v43 = vor.u32 %v1287_v34, %v1081_v35 }
  0xd9   :  { %v830_v51 = vmax.f32 %v738_v46, 0.0  ;;  %v670_v52 = vadd.f32 %v669_v49, %v517_v47 }
  0xdb   :  { %v887_v58 = vpack.c.bf16 %v830_v51, %v830_v51  ;;  %v803_v59 = vmax.f32 %v670_v52, 0.0 }
  0xdc   :  { %v586_v62 = vpop.f32.mrf.mxu2 }
  0xdd   :  { %945 = vst.msk [vmem:[%s2055_s3 + $0x88] sm:$0xf] %vm910_vm0, %v887_v58  ;;  %v860_v63 = vpack.c.bf16 %v803_v59, %v803_v59  ;;  %v587_v0 = vadd.f32 %v1613_v48, %v586_v62  ;;  %v744_v4 = vpop.f32.mrf.mxu3 }
  0xde   :  { %v519_v5 = vpop.f32.mrf.mxu0 }
  0xdf   :  { %918 = vst.msk [vmem:[%s2055_s3 + $0x1c] sm:$0xf] %vm910_vm0, %v860_v63  ;;  %v740_v8 = vadd.f32 %v739_v30, %v587_v0  ;;  %v520_v9 = vadd.f32 %v1613_v48, %v519_v5  ;;  %v672_v10 = vpop.f32.mrf.mxu1  ;;  %v1316_v30 = vld [vmem:[%s2054_s0 + $0x1b4] sm:$0xf0]  ;;  %v276_v63 = vunpack.c.l.b16 %v70_v24 }
  0xe0   :  { %v1192_v40 = vor.u32 %v1316_v30, %v1191_v29 }
  0xe1   :  { %v831_v11 = vmax.f32 %v740_v8, 0.0  ;;  %v673_v12 = vadd.f32 %v672_v10, %v520_v9  ;;  %558 = vmatmul.bf16.gmra.mxu0 %v1072_v1  ;;  %628 = vmatmul.bf16.gmra.mxu2 %v1184_v3  ;;  %v1289_v3 = vld [vmem:[%s2054_s0 + $0xe4] sm:$0xf]  ;;  %v334_v8 = vpack.c.b16 %v276_v63, %v276_v63 }
  0xe2   :  { %711 = vmatmul.bf16.gmra.mxu1 %v1076_v6  ;;  %786 = vmatmul.bf16.gmra.mxu3 %v1196_v7 }
  0xe3   :  { %v888_v13 = vpack.c.bf16 %v831_v11, %v831_v11  ;;  %v804_v14 = vmax.f32 %v673_v12, 0.0 }
  0xe4   :  { %v589_v15 = vpop.f32.mrf.mxu2 }
  0xe5   :  { %946 = vst.msk [vmem:[%s2055_s3 + $0x8c] sm:$0xf] %vm910_vm0, %v888_v13  ;;  %v861_v16 = vpack.c.bf16 %v804_v14, %v804_v14  ;;  %v590_v17 = vadd.f32 %v1613_v48, %v589_v15  ;;  %v747_v19 = vpop.f32.mrf.mxu3 }
  0xe6   :  { %v521_v20 = vpop.f32.mrf.mxu0 }
  0xe7   :  { %919 = vst.msk [vmem:[%s2055_s3 + $0x20] sm:$0xf] %vm910_vm0, %v861_v16  ;;  %v743_v21 = vadd.f32 %v742_v44, %v590_v17  ;;  %v522_v22 = vadd.f32 %v1613_v48, %v521_v20  ;;  %v674_v23 = vpop.f32.mrf.mxu1  ;;  %v335_v44 = vpack.c.b16 %v277_v31, %v277_v31 }
  0xe9   :  { %v832_v25 = vmax.f32 %v743_v21, 0.0  ;;  %v675_v26 = vadd.f32 %v674_v23, %v522_v22 }
  0xeb   :  { %v889_v32 = vpack.c.bf16 %v832_v25, %v832_v25  ;;  %v805_v33 = vmax.f32 %v675_v26, 0.0 }
  0xec   :  { %v591_v36 = vpop.f32.mrf.mxu2 }
  0xed   :  { %947 = vst.msk [vmem:[%s2055_s3 + $0x90] sm:$0xf] %vm910_vm0, %v889_v32  ;;  %v862_v37 = vpack.c.bf16 %v805_v33, %v805_v33  ;;  %v592_v38 = vadd.f32 %v1613_v48, %v591_v36  ;;  %v749_v41 = vpop.f32.mrf.mxu3 }
  0xee   :  { %v524_v42 = vpop.f32.mrf.mxu0 }
  0xef   :  { %920 = vst.msk [vmem:[%s2055_s3 + $0x24] sm:$0xf] %vm910_vm0, %v862_v37  ;;  %v745_v45 = vadd.f32 %v744_v4, %v592_v38  ;;  %v525_v46 = vadd.f32 %v1613_v48, %v524_v42  ;;  %v677_v47 = vpop.f32.mrf.mxu1  ;;  %v1089_v4 = vld [vmem:[%s2054_s0 + $0xe8] sm:$0xf0] }
  0xf0   :  { %v1092_v11 = vor.u32 %v1289_v3, %v1089_v4 }
  0xf1   :  { %v833_v49 = vmax.f32 %v745_v45, 0.0  ;;  %v678_v50 = vadd.f32 %v677_v47, %v525_v46  ;;  %563 = vmatmul.bf16.gmra.mxu0 %v1080_v39  ;;  %633 = vmatmul.bf16.gmra.mxu2 %v1192_v40 }
  0xf2   :  { %716 = vmatmul.bf16.gmra.mxu1 %v1084_v43  ;;  %791 = vmatmul.bf16.gmra.mxu3 %v335_v44 }
  0xf3   :  { %v890_v51 = vpack.c.bf16 %v833_v49, %v833_v49  ;;  %v806_v52 = vmax.f32 %v678_v50, 0.0 }
  0xf4   :  { %v594_v53 = vpop.f32.mrf.mxu2 }
  0xf5   :  { %948 = vst.msk [vmem:[%s2055_s3 + $0x94] sm:$0xf] %vm910_vm0, %v890_v51  ;;  %v863_v54 = vpack.c.bf16 %v806_v52, %v806_v52  ;;  %v595_v55 = vadd.f32 %v1613_v48, %v594_v53  ;;  %v752_v56 = vpop.f32.mrf.mxu3 }
  0xf6   :  { %v526_v57 = vpop.f32.mrf.mxu0 }
  0xf7   :  { %921 = vst.msk [vmem:[%s2055_s3 + $0x28] sm:$0xf] %vm910_vm0, %v863_v54  ;;  %v748_v58 = vadd.f32 %v747_v19, %v595_v55  ;;  %v527_v59 = vadd.f32 %v1613_v48, %v526_v57  ;;  %v679_v60 = vpop.f32.mrf.mxu1 }
  0xf9   :  { %v834_v61 = vmax.f32 %v748_v58, 0.0  ;;  %v680_v62 = vadd.f32 %v679_v60, %v527_v59 }
  0xfb   :  { %v891_v0 = vpack.c.bf16 %v834_v61, %v834_v61  ;;  %v807_v1 = vmax.f32 %v680_v62, 0.0 }
  0xfc   :  { %v596_v5 = vpop.f32.mrf.mxu2 }
  0xfd   :  { %949 = vst.msk [vmem:[%s2055_s3 + $0x98] sm:$0xf] %vm910_vm0, %v891_v0  ;;  %v864_v6 = vpack.c.bf16 %v807_v1, %v807_v1  ;;  %v597_v7 = vadd.f32 %v1613_v48, %v596_v5  ;;  %v754_v9 = vpop.f32.mrf.mxu3 }
  0xfe   :  { %v529_v10 = vpop.f32.mrf.mxu0 }
  0xff   :  { %922 = vst.msk [vmem:[%s2055_s3 + $0x2c] sm:$0xf] %vm910_vm0, %v864_v6  ;;  %v750_v12 = vadd.f32 %v749_v41, %v597_v7  ;;  %v530_v13 = vadd.f32 %v1613_v48, %v529_v10  ;;  %v682_v14 = vpop.f32.mrf.mxu1 }
 0x101   :  { %v835_v15 = vmax.f32 %v750_v12, 0.0  ;;  %v683_v16 = vadd.f32 %v682_v14, %v530_v13  ;;  %638 = vmatmul.bf16.gmra.mxu2 %v334_v8 }
 0x102   :  { %721 = vmatmul.bf16.gmra.mxu1 %v1092_v11 }
 0x103   :  { %v892_v17 = vpack.c.bf16 %v835_v15, %v835_v15  ;;  %v808_v19 = vmax.f32 %v683_v16, 0.0 }
 0x104   :  { %v599_v20 = vpop.f32.mrf.mxu2 }
 0x105   :  { %950 = vst.msk [vmem:[%s2055_s3 + $0x9c] sm:$0xf] %vm910_vm0, %v892_v17  ;;  %v865_v21 = vpack.c.bf16 %v808_v19, %v808_v19  ;;  %v600_v22 = vadd.f32 %v1613_v48, %v599_v20  ;;  %v757_v23 = vpop.f32.mrf.mxu3 }
 0x106   :  { %v531_v24 = vpop.f32.mrf.mxu0 }
 0x107   :  { %923 = vst.msk [vmem:[%s2055_s3 + $0x30] sm:$0xf] %vm910_vm0, %v865_v21  ;;  %v753_v25 = vadd.f32 %v752_v56, %v600_v22  ;;  %v532_v26 = vadd.f32 %v1613_v48, %v531_v24  ;;  %v684_v27 = vpop.f32.mrf.mxu1 }
 0x109   :  { %v836_v28 = vmax.f32 %v753_v25, 0.0  ;;  %v685_v29 = vadd.f32 %v684_v27, %v532_v26 }
 0x10b   :  { %v893_v30 = vpack.c.bf16 %v836_v28, %v836_v28  ;;  %v809_v31 = vmax.f32 %v685_v29, 0.0 }
 0x10c   :  { %v601_v32 = vpop.f32.mrf.mxu2 }
 0x10d   :  { %951 = vst.msk [vmem:[%s2055_s3 + $0xa0] sm:$0xf] %vm910_vm0, %v893_v30  ;;  %v866_v33 = vpack.c.bf16 %v809_v31, %v809_v31  ;;  %v602_v34 = vadd.f32 %v1613_v48, %v601_v32  ;;  %v759_v35 = vpop.f32.mrf.mxu3 }
 0x10e   :  { %v534_v36 = vpop.f32.mrf.mxu0 }
 0x10f   :  { %924 = vst.msk [vmem:[%s2055_s3 + $0x34] sm:$0xf] %vm910_vm0, %v866_v33  ;;  %v755_v37 = vadd.f32 %v754_v9, %v602_v34  ;;  %v535_v38 = vadd.f32 %v1613_v48, %v534_v36  ;;  %v687_v39 = vpop.f32.mrf.mxu1 }
 0x111   :  { %v837_v40 = vmax.f32 %v755_v37, 0.0  ;;  %v688_v41 = vadd.f32 %v687_v39, %v535_v38 }
 0x113   :  { %v894_v42 = vpack.c.bf16 %v837_v40, %v837_v40  ;;  %v810_v43 = vmax.f32 %v688_v41, 0.0 }
 0x114   :  { %v604_v44 = vpop.f32.mrf.mxu2 }
 0x115   :  { %952 = vst.msk [vmem:[%s2055_s3 + $0xa4] sm:$0xf] %vm910_vm0, %v894_v42  ;;  %v867_v45 = vpack.c.bf16 %v810_v43, %v810_v43  ;;  %v605_v46 = vadd.f32 %v1613_v48, %v604_v44  ;;  %v762_v47 = vpop.f32.mrf.mxu3 }
 0x116   :  { %v536_v49 = vpop.f32.mrf.mxu0 }
 0x117   :  { %925 = vst.msk [vmem:[%s2055_s3 + $0x38] sm:$0xf] %vm910_vm0, %v867_v45  ;;  %v758_v50 = vadd.f32 %v757_v23, %v605_v46  ;;  %v537_v51 = vadd.f32 %v1613_v48, %v536_v49  ;;  %v689_v52 = vpop.f32.mrf.mxu1 }
 0x119   :  { %v838_v53 = vmax.f32 %v758_v50, 0.0  ;;  %v690_v54 = vadd.f32 %v689_v52, %v537_v51 }
 0x11b   :  { %v895_v55 = vpack.c.bf16 %v838_v53, %v838_v53  ;;  %v811_v56 = vmax.f32 %v690_v54, 0.0 }
 0x11c   :  { %v606_v57 = vpop.f32.mrf.mxu2 }
 0x11d   :  { %953 = vst.msk [vmem:[%s2055_s3 + $0xa8] sm:$0xf] %vm910_vm0, %v895_v55  ;;  %v868_v58 = vpack.c.bf16 %v811_v56, %v811_v56  ;;  %v607_v59 = vadd.f32 %v1613_v48, %v606_v57  ;;  %v764_v60 = vpop.f32.mrf.mxu3 }
 0x11e   :  { %v539_v61 = vpop.f32.mrf.mxu0 }
 0x11f   :  { %926 = vst.msk [vmem:[%s2055_s3 + $0x3c] sm:$0xf] %vm910_vm0, %v868_v58  ;;  %v760_v62 = vadd.f32 %v759_v35, %v607_v59  ;;  %v540_v63 = vadd.f32 %v1613_v48, %v539_v61  ;;  %v692_v0 = vpop.f32.mrf.mxu1 }
 0x121   :  { %v839_v1 = vmax.f32 %v760_v62, 0.0  ;;  %v693_v3 = vadd.f32 %v692_v0, %v540_v63 }
 0x123   :  { %v896_v4 = vpack.c.bf16 %v839_v1, %v839_v1  ;;  %v812_v5 = vmax.f32 %v693_v3, 0.0 }
 0x124   :  { %v609_v6 = vpop.f32.mrf.mxu2 }
 0x125   :  { %954 = vst.msk [vmem:[%s2055_s3 + $0xac] sm:$0xf] %vm910_vm0, %v896_v4  ;;  %v869_v7 = vpack.c.bf16 %v812_v5, %v812_v5  ;;  %v610_v8 = vadd.f32 %v1613_v48, %v609_v6  ;;  %v767_v9 = vpop.f32.mrf.mxu3 }
 0x126   :  { %v541_v10 = vpop.f32.mrf.mxu0 }
 0x127   :  { %927 = vst.msk [vmem:[%s2055_s3 + $0x40] sm:$0xf] %vm910_vm0, %v869_v7  ;;  %v763_v11 = vadd.f32 %v762_v47, %v610_v8  ;;  %v542_v12 = vadd.f32 %v1613_v48, %v541_v10  ;;  %v694_v13 = vpop.f32.mrf.mxu1 }
 0x129   :  { %v840_v14 = vmax.f32 %v763_v11, 0.0  ;;  %v695_v15 = vadd.f32 %v694_v13, %v542_v12 }
 0x12b   :  { %v897_v16 = vpack.c.bf16 %v840_v14, %v840_v14  ;;  %v813_v17 = vmax.f32 %v695_v15, 0.0 }
 0x12c   :  { %v611_v19 = vpop.f32.mrf.mxu2 }
 0x12d   :  { %955 = vst.msk [vmem:[%s2055_s3 + $0xb0] sm:$0xf] %vm910_vm0, %v897_v16  ;;  %v870_v20 = vpack.c.bf16 %v813_v17, %v813_v17  ;;  %v612_v21 = vadd.f32 %v1613_v48, %v611_v19  ;;  %v769_v22 = vpop.f32.mrf.mxu3 }
 0x12e   :  { %v544_v23 = vpop.f32.mrf.mxu0 }
 0x12f   :  { %928 = vst.msk [vmem:[%s2055_s3 + $0x44] sm:$0xf] %vm910_vm0, %v870_v20  ;;  %v765_v24 = vadd.f32 %v764_v60, %v612_v21  ;;  %v545_v25 = vadd.f32 %v1613_v48, %v544_v23  ;;  %v697_v26 = vpop.f32.mrf.mxu1 }
 0x131   :  { %v841_v27 = vmax.f32 %v765_v24, 0.0  ;;  %v698_v28 = vadd.f32 %v697_v26, %v545_v25 }
 0x133   :  { %v898_v29 = vpack.c.bf16 %v841_v27, %v841_v27  ;;  %v814_v30 = vmax.f32 %v698_v28, 0.0 }
 0x134   :  { %v614_v31 = vpop.f32.mrf.mxu2 }
 0x135   :  { %956 = vst.msk [vmem:[%s2055_s3 + $0xb4] sm:$0xf] %vm910_vm0, %v898_v29  ;;  %v871_v32 = vpack.c.bf16 %v814_v30, %v814_v30  ;;  %v615_v33 = vadd.f32 %v1613_v48, %v614_v31  ;;  %v772_v34 = vpop.f32.mrf.mxu3 }
 0x136   :  { %v546_v35 = vpop.f32.mrf.mxu0 }
 0x137   :  { %929 = vst.msk [vmem:[%s2055_s3 + $0x48] sm:$0xf] %vm910_vm0, %v871_v32  ;;  %v768_v36 = vadd.f32 %v767_v9, %v615_v33  ;;  %v547_v37 = vadd.f32 %v1613_v48, %v546_v35  ;;  %v699_v38 = vpop.f32.mrf.mxu1 }
 0x139   :  { %v842_v39 = vmax.f32 %v768_v36, 0.0  ;;  %v700_v40 = vadd.f32 %v699_v38, %v547_v37 }
 0x13b   :  { %v899_v41 = vpack.c.bf16 %v842_v39, %v842_v39  ;;  %v815_v42 = vmax.f32 %v700_v40, 0.0 }
 0x13c   :  { %v616_v43 = vpop.f32.mrf.mxu2 }
 0x13d   :  { %957 = vst.msk [vmem:[%s2055_s3 + $0xb8] sm:$0xf] %vm910_vm0, %v899_v41  ;;  %v872_v44 = vpack.c.bf16 %v815_v42, %v815_v42  ;;  %v617_v45 = vadd.f32 %v1613_v48, %v616_v43  ;;  %v774_v46 = vpop.f32.mrf.mxu3 }
 0x13e   :  { %v549_v47 = vpop.f32.mrf.mxu0 }
 0x13f   :  { %930 = vst.msk [vmem:[%s2055_s3 + $0x4c] sm:$0xf] %vm910_vm0, %v872_v44  ;;  %v770_v49 = vadd.f32 %v769_v22, %v617_v45  ;;  %v550_v50 = vadd.f32 %v1613_v48, %v549_v47  ;;  %v702_v51 = vpop.f32.mrf.mxu1 }
 0x141   :  { %v843_v52 = vmax.f32 %v770_v49, 0.0  ;;  %v703_v53 = vadd.f32 %v702_v51, %v550_v50 }
 0x143   :  { %v900_v54 = vpack.c.bf16 %v843_v52, %v843_v52  ;;  %v816_v55 = vmax.f32 %v703_v53, 0.0 }
 0x144   :  { %v619_v56 = vpop.f32.mrf.mxu2 }
 0x145   :  { %958 = vst.msk [vmem:[%s2055_s3 + $0xbc] sm:$0xf] %vm910_vm0, %v900_v54  ;;  %v873_v57 = vpack.c.bf16 %v816_v55, %v816_v55  ;;  %v620_v58 = vadd.f32 %v1613_v48, %v619_v56  ;;  %v777_v59 = vpop.f32.mrf.mxu3 }
 0x146   :  { %v551_v60 = vpop.f32.mrf.mxu0 }
 0x147   :  { %931 = vst.msk [vmem:[%s2055_s3 + $0x50] sm:$0xf] %vm910_vm0, %v873_v57  ;;  %v773_v61 = vadd.f32 %v772_v34, %v620_v58  ;;  %v552_v62 = vadd.f32 %v1613_v48, %v551_v60  ;;  %v704_v63 = vpop.f32.mrf.mxu1 }
 0x149   :  { %v844_v0 = vmax.f32 %v773_v61, 0.0  ;;  %v705_v1 = vadd.f32 %v704_v63, %v552_v62 }
 0x14b   :  { %v901_v3 = vpack.c.bf16 %v844_v0, %v844_v0  ;;  %v817_v4 = vmax.f32 %v705_v1, 0.0 }
 0x14c   :  { %v621_v5 = vpop.f32.mrf.mxu2 }
 0x14d   :  { %959 = vst.msk [vmem:[%s2055_s3 + $0xc0] sm:$0xf] %vm910_vm0, %v901_v3  ;;  %v874_v6 = vpack.c.bf16 %v817_v4, %v817_v4  ;;  %v622_v7 = vadd.f32 %v1613_v48, %v621_v5  ;;  %v779_v8 = vpop.f32.mrf.mxu3 }
 0x14e   :  { %v554_v9 = vpop.f32.mrf.mxu0 }
 0x14f   :  { %932 = vst.msk [vmem:[%s2055_s3 + $0x54] sm:$0xf] %vm910_vm0, %v874_v6  ;;  %v775_v10 = vadd.f32 %v774_v46, %v622_v7  ;;  %v555_v11 = vadd.f32 %v1613_v48, %v554_v9  ;;  %v707_v12 = vpop.f32.mrf.mxu1 }
 0x151   :  { %v845_v13 = vmax.f32 %v775_v10, 0.0  ;;  %v708_v14 = vadd.f32 %v707_v12, %v555_v11 }
 0x153   :  { %v902_v15 = vpack.c.bf16 %v845_v13, %v845_v13  ;;  %v818_v16 = vmax.f32 %v708_v14, 0.0 }
 0x154   :  { %v624_v17 = vpop.f32.mrf.mxu2 }
 0x155   :  { %960 = vst.msk [vmem:[%s2055_s3 + $0xc4] sm:$0xf] %vm910_vm0, %v902_v15  ;;  %v875_v19 = vpack.c.bf16 %v818_v16, %v818_v16  ;;  %v625_v20 = vadd.f32 %v1613_v48, %v624_v17  ;;  %v782_v21 = vpop.f32.mrf.mxu3 }
 0x156   :  { %v556_v22 = vpop.f32.mrf.mxu0 }
 0x157   :  { %933 = vst.msk [vmem:[%s2055_s3 + $0x58] sm:$0xf] %vm910_vm0, %v875_v19  ;;  %v778_v23 = vadd.f32 %v777_v59, %v625_v20  ;;  %v557_v24 = vadd.f32 %v1613_v48, %v556_v22  ;;  %v709_v25 = vpop.f32.mrf.mxu1 }
 0x159   :  { %v846_v26 = vmax.f32 %v778_v23, 0.0  ;;  %v710_v27 = vadd.f32 %v709_v25, %v557_v24 }
 0x15b   :  { %v903_v28 = vpack.c.bf16 %v846_v26, %v846_v26  ;;  %v819_v29 = vmax.f32 %v710_v27, 0.0 }
 0x15c   :  { %v626_v30 = vpop.f32.mrf.mxu2 }
 0x15d   :  { %961 = vst.msk [vmem:[%s2055_s3 + $0xc8] sm:$0xf] %vm910_vm0, %v903_v28  ;;  %v876_v31 = vpack.c.bf16 %v819_v29, %v819_v29  ;;  %v627_v32 = vadd.f32 %v1613_v48, %v626_v30  ;;  %v784_v33 = vpop.f32.mrf.mxu3  ;;  %v572_v30 = vadd.f32 %v1613_v48, %v1671_v18 }
 0x15e   :  { %v559_v34 = vpop.f32.mrf.mxu0 }
 0x15f   :  { %934 = vst.msk [vmem:[%s2055_s3 + $0x5c] sm:$0xf] %vm910_vm0, %v876_v31  ;;  %v780_v35 = vadd.f32 %v779_v8, %v627_v32  ;;  %v560_v36 = vadd.f32 %v1613_v48, %v559_v34  ;;  %v712_v37 = vpop.f32.mrf.mxu1 }
 0x161   :  { %v847_v38 = vmax.f32 %v780_v35, 0.0  ;;  %v713_v39 = vadd.f32 %v712_v37, %v560_v36 }
 0x163   :  { %v904_v40 = vpack.c.bf16 %v847_v38, %v847_v38  ;;  %v820_v41 = vmax.f32 %v713_v39, 0.0 }
 0x164   :  { %v629_v42 = vpop.f32.mrf.mxu2 }
 0x165   :  { %962 = vst.msk [vmem:[%s2055_s3 + $0xcc] sm:$0xf] %vm910_vm0, %v904_v40  ;;  %v877_v43 = vpack.c.bf16 %v820_v41, %v820_v41  ;;  %v630_v44 = vadd.f32 %v1613_v48, %v629_v42  ;;  %v787_v45 = vpop.f32.mrf.mxu3 }
 0x166   :  { %v561_v46 = vpop.f32.mrf.mxu0 }
 0x167   :  { %935 = vst.msk [vmem:[%s2055_s3 + $0x60] sm:$0xf] %vm910_vm0, %v877_v43  ;;  %v783_v47 = vadd.f32 %v782_v21, %v630_v44  ;;  %v562_v49 = vadd.f32 %v1613_v48, %v561_v46  ;;  %v714_v50 = vpop.f32.mrf.mxu1  ;;  %v570_v21 = vadd.f32 %v1613_v48, %v1640_v2 }
 0x169   :  { %v848_v51 = vmax.f32 %v783_v47, 0.0  ;;  %v715_v52 = vadd.f32 %v714_v50, %v562_v49 }
 0x16b   :  { %v905_v53 = vpack.c.bf16 %v848_v51, %v848_v51  ;;  %v821_v54 = vmax.f32 %v715_v52, 0.0 }
 0x16c   :  { %v631_v55 = vpop.f32.mrf.mxu2 }
 0x16d   :  { %963 = vst.msk [vmem:[%s2055_s3 + $0xd0] sm:$0xf] %vm910_vm0, %v905_v53  ;;  %v878_v56 = vpack.c.bf16 %v821_v54, %v821_v54  ;;  %v632_v57 = vadd.f32 %v1613_v48, %v631_v55  ;;  %v789_v58 = vpop.f32.mrf.mxu3 }
 0x16e   :  { %v564_v59 = vpop.f32.mrf.mxu0 }
 0x16f   :  { %936 = vst.msk [vmem:[%s2055_s3 + $0x64] sm:$0xf] %vm910_vm0, %v878_v56  ;;  %v785_v60 = vadd.f32 %v784_v33, %v632_v57  ;;  %v565_v61 = vadd.f32 %v1613_v48, %v564_v59  ;;  %v717_v62 = vpop.f32.mrf.mxu1 }
 0x171   :  { %v849_v63 = vmax.f32 %v785_v60, 0.0  ;;  %v718_v0 = vadd.f32 %v717_v62, %v565_v61 }
 0x173   :  { %v906_v1 = vpack.c.bf16 %v849_v63, %v849_v63  ;;  %v822_v3 = vmax.f32 %v718_v0, 0.0 }
 0x174   :  { %v634_v4 = vpop.f32.mrf.mxu2 }
 0x175   :  { %964 = vst.msk [vmem:[%s2055_s3 + $0xd4] sm:$0xf] %vm910_vm0, %v906_v1  ;;  %v879_v5 = vpack.c.bf16 %v822_v3, %v822_v3  ;;  %v635_v6 = vadd.f32 %v1613_v48, %v634_v4  ;;  %v792_v7 = vpop.f32.mrf.mxu3 }
 0x176   :  { %v566_v8 = vpop.f32.mrf.mxu0 }
 0x177   :  { %937 = vst.msk [vmem:[%s2055_s3 + $0x68] sm:$0xf] %vm910_vm0, %v879_v5  ;;  %v788_v9 = vadd.f32 %v787_v45, %v635_v6  ;;  %v567_v10 = vadd.f32 %v1613_v48, %v566_v8  ;;  %v719_v11 = vpop.f32.mrf.mxu1 }
 0x179   :  { %v850_v12 = vmax.f32 %v788_v9, 0.0  ;;  %v720_v13 = vadd.f32 %v719_v11, %v567_v10 }
 0x17b   :  { %v907_v14 = vpack.c.bf16 %v850_v12, %v850_v12  ;;  %v823_v15 = vmax.f32 %v720_v13, 0.0 }
 0x17c   :  { %v636_v16 = vpop.f32.mrf.mxu2 }
 0x17d   :  { %965 = vst.msk [vmem:[%s2055_s3 + $0xd8] sm:$0xf] %vm910_vm0, %v907_v14  ;;  %v880_v17 = vpack.c.bf16 %v823_v15, %v823_v15  ;;  %v637_v19 = vadd.f32 %v1613_v48, %v636_v16  ;;  %v794_v20 = vpop.f32.mrf.mxu3 }
 0x17f   :  { %938 = vst.msk [vmem:[%s2055_s3 + $0x6c] sm:$0xf] %vm910_vm0, %v880_v17  ;;  %v790_v22 = vadd.f32 %v789_v58, %v637_v19  ;;  %v722_v23 = vpop.f32.mrf.mxu1 }
 0x180   :  { %v723_v24 = vadd.f32 %v722_v23, %v570_v21 }
 0x181   :  { %v851_v25 = vmax.f32 %v790_v22, 0.0 }
 0x182   :  { %v824_v26 = vmax.f32 %v723_v24, 0.0 }
 0x183   :  { %v908_v27 = vpack.c.bf16 %v851_v25, %v851_v25 }
 0x184   :  { %v881_v28 = vpack.c.bf16 %v824_v26, %v824_v26  ;;  %v639_v29 = vpop.f32.mrf.mxu2 }
 0x185   :  { %966 = vst.msk [vmem:[%s2055_s3 + $0xdc] sm:$0xf] %vm910_vm0, %v908_v27  ;;  %v640_v2 = vadd.f32 %v1613_v48, %v639_v29 }
 0x186   :  { %939 = vst.msk [vmem:[%s2055_s3 + $0x70] sm:$0xf] %vm910_vm0, %v881_v28 }
 0x187   :  { %v793_v31 = vadd.f32 %v792_v7, %v640_v2  ;;  %v724_v32 = vpop.f32.mrf.mxu1 }
 0x188   :  { %v725_v33 = vadd.f32 %v724_v32, %v572_v30 }
 0x189   :  { %v852_v34 = vmax.f32 %v793_v31, 0.0 }
 0x18a   :  { %v825_v35 = vmax.f32 %v725_v33, 0.0 }
 0x18b   :  { %v909_v36 = vpack.c.bf16 %v852_v34, %v852_v34 }
 0x18c   :  { %v882_v37 = vpack.c.bf16 %v825_v35, %v825_v35  ;;  %v641_v38 = vpop.f32.mrf.mxu2 }
 0x18d   :  { %968 = vst.msk [vmem:[%s2055_s3 + $0xe0] sm:$0x1] %vm967_vm1, %v909_v36 }
 0x18e   :  { %940 = vst.msk [vmem:[%s2055_s3 + $0x74] sm:$0xf] %vm910_vm0, %v882_v37 }

// kernel: dqn_base_forward.5
= control target key start
LH: loop header
LB: loop body
LE: loop exit
PB: predicated region body
PF: predicated region fallthrough
CT: control target
= control target key end

     0   :  { %vm536_vm0 = vcmask 519168   ;;  %s1059_s1 = inlined_call_operand.vmem [shape: bf16[512,64], index: 1, kind: input, shape index: {}]   ;;  %s1060_s2 = inlined_call_operand.vmem [shape: f32[1,64], index: 2, kind: input, shape index: {}]   ;;  %s1061_s0 = inlined_call_operand.vmem [shape: bf16[72,512], index: 0, kind: input, shape index: {}]   ;;  %s1062_s3 = inlined_call_operand.vmem [shape: bf16[72,64], index: 3, kind: output, shape index: {}]  }
   0x1   :  { %v765_v0 = vld [vmem:[%s1059_s1 + $0x38] sm:$0xff]  ;;  %v764_v4 = vld [vmem:[%s1059_s1 + $0x30] sm:$0xff]  ;;  %v763_v8 = vld [vmem:[%s1059_s1 + $0x28] sm:$0xff] }
   0x2   :  { %v773_v1 = vld [vmem:[%s1059_s1 + $0x78] sm:$0xff]  ;;  %386 = vmatpush.bf16.msra.mxu0 %v765_v0  ;;  %v772_v5 = vld [vmem:[%s1059_s1 + $0x70] sm:$0xff]  ;;  %v771_v9 = vld [vmem:[%s1059_s1 + $0x68] sm:$0xff] }
   0x3   :  { %v781_v2 = vld [vmem:[%s1059_s1 + $0xb8] sm:$0xff]  ;;  %419 = vmatpush.bf16.msra.mxu1 %v773_v1  ;;  %v780_v6 = vld [vmem:[%s1059_s1 + $0xb0] sm:$0xff]  ;;  %v779_v10 = vld [vmem:[%s1059_s1 + $0xa8] sm:$0xff] }
   0x4   :  { %v789_v3 = vld [vmem:[%s1059_s1 + $0xf8] sm:$0xff]  ;;  %452 = vmatpush.bf16.msra.mxu2 %v781_v2  ;;  %v788_v7 = vld [vmem:[%s1059_s1 + $0xf0] sm:$0xff]  ;;  %v787_v11 = vld [vmem:[%s1059_s1 + $0xe8] sm:$0xff] }
   0x5   :  { %485 = vmatpush.bf16.msra.mxu3 %v789_v3  ;;  %v762_v12 = vld [vmem:[%s1059_s1 + $0x20] sm:$0xff]  ;;  %v761_v16 = vld [vmem:[%s1059_s1 + $0x18] sm:$0xff]  ;;  %v760_v20 = vld [vmem:[%s1059_s1 + $0x10] sm:$0xff] }
   0x6   :  { %387 = vmatpush.bf16.msra.mxu0 %v764_v4  ;;  %v770_v13 = vld [vmem:[%s1059_s1 + $0x60] sm:$0xff]  ;;  %v769_v17 = vld [vmem:[%s1059_s1 + $0x58] sm:$0xff]  ;;  %v768_v21 = vld [vmem:[%s1059_s1 + $0x50] sm:$0xff] }
   0x7   :  { %420 = vmatpush.bf16.msra.mxu1 %v772_v5  ;;  %v778_v14 = vld [vmem:[%s1059_s1 + $0xa0] sm:$0xff]  ;;  %v777_v18 = vld [vmem:[%s1059_s1 + $0x98] sm:$0xff]  ;;  %v776_v22 = vld [vmem:[%s1059_s1 + $0x90] sm:$0xff] }
   0x8   :  { %453 = vmatpush.bf16.msra.mxu2 %v780_v6  ;;  %v786_v15 = vld [vmem:[%s1059_s1 + $0xe0] sm:$0xff]  ;;  %v785_v19 = vld [vmem:[%s1059_s1 + $0xd8] sm:$0xff]  ;;  %v784_v23 = vld [vmem:[%s1059_s1 + $0xd0] sm:$0xff] }
   0x9   :  { %486 = vmatpush.bf16.msra.mxu3 %v788_v7  ;;  %v759_v24 = vld [vmem:[%s1059_s1 + $0x8] sm:$0xff]  ;;  %v758_v28 = vld [vmem:[%s1059_s1] sm:$0xff]  ;;  %v744_v33 = vld [vmem:[%s1061_s0 + $0xc] sm:$0xf0] }
   0xa   :  { %388 = vmatpush.bf16.msra.mxu0 %v763_v8  ;;  %v767_v25 = vld [vmem:[%s1059_s1 + $0x48] sm:$0xff]  ;;  %v766_v29 = vld [vmem:[%s1059_s1 + $0x40] sm:$0xff]  ;;  %v554_v35 = vld [vmem:[%s1061_s0 + $0x10] sm:$0xf0] }
   0xb   :  { %421 = vmatpush.bf16.msra.mxu1 %v771_v9  ;;  %v775_v26 = vld [vmem:[%s1059_s1 + $0x88] sm:$0xff]  ;;  %v774_v30 = vld [vmem:[%s1059_s1 + $0x80] sm:$0xff]  ;;  %v745_v37 = vld [vmem:[%s1061_s0 + $0x14] sm:$0xf0] }
   0xc   :  { %454 = vmatpush.bf16.msra.mxu2 %v779_v10  ;;  %v783_v27 = vld [vmem:[%s1059_s1 + $0xc8] sm:$0xff]  ;;  %v782_v31 = vld [vmem:[%s1059_s1 + $0xc0] sm:$0xff]  ;;  %v562_v39 = vld [vmem:[%s1061_s0 + $0x18] sm:$0xf0] }
   0xd   :  { %487 = vmatpush.bf16.msra.mxu3 %v787_v11  ;;  %v552_v32 = vld [vmem:[%s1061_s0] sm:$0xf]  ;;  %v742_v34 = vld [vmem:[%s1061_s0 + $0x4] sm:$0xf]  ;;  %v560_v36 = vld [vmem:[%s1061_s0 + $0x8] sm:$0xf] }
   0xe   :  { %389 = vmatpush.bf16.msra.mxu0 %v762_v12  ;;  %v743_v38 = vld [vmem:[%s1061_s0 + $0xc] sm:$0xf]  ;;  %v553_v40 = vor.u32 %v744_v33, %v552_v32  ;;  %v557_v41 = vor.u32 %v742_v34, %v554_v35  ;;  %v561_v42 = vor.u32 %v745_v37, %v560_v36  ;;  %v568_v44 = vld [vmem:[%s1061_s0 + $0x20] sm:$0xf]  ;;  %v748_v45 = vld [vmem:[%s1061_s0 + $0x2c] sm:$0xf0] }
   0xf   :  { %422 = vmatpush.bf16.msra.mxu1 %v770_v13  ;;  %v565_v43 = vor.u32 %v743_v38, %v562_v39  ;;  %v746_v46 = vld [vmem:[%s1061_s0 + $0x24] sm:$0xf]  ;;  %v570_v47 = vld [vmem:[%s1061_s0 + $0x30] sm:$0xf0]  ;;  %v576_v48 = vld [vmem:[%s1061_s0 + $0x28] sm:$0xf]  ;;  %v569_v52 = vor.u32 %v748_v45, %v568_v44 }
  0x10   :  { %455 = vmatpush.bf16.msra.mxu2 %v778_v14  ;;  %v749_v49 = vld [vmem:[%s1061_s0 + $0x34] sm:$0xf0]  ;;  %v747_v50 = vld [vmem:[%s1061_s0 + $0x2c] sm:$0xf]  ;;  %v578_v51 = vld [vmem:[%s1061_s0 + $0x38] sm:$0xf0]  ;;  %v573_v53 = vor.u32 %v746_v46, %v570_v47 }
  0x11   :  { %488 = vmatpush.bf16.msra.mxu3 %v786_v15  ;;  %v577_v54 = vor.u32 %v749_v49, %v576_v48  ;;  %v581_v55 = vor.u32 %v747_v50, %v578_v51  ;;  %v584_v56 = vld [vmem:[%s1061_s0 + $0x40] sm:$0xf]  ;;  %v752_v57 = vld [vmem:[%s1061_s0 + $0x4c] sm:$0xf0]  ;;  %v750_v58 = vld [vmem:[%s1061_s0 + $0x44] sm:$0xf] }
  0x12   :  { %390 = vmatpush.bf16.msra.mxu0 %v761_v16  ;;  %v586_v59 = vld [vmem:[%s1061_s0 + $0x50] sm:$0xf0]  ;;  %v592_v60 = vld [vmem:[%s1061_s0 + $0x48] sm:$0xf]  ;;  %v753_v61 = vld [vmem:[%s1061_s0 + $0x54] sm:$0xf0]  ;;  %v585_v0 = vor.u32 %v752_v57, %v584_v56 }
  0x13   :  { %423 = vmatpush.bf16.msra.mxu1 %v769_v17  ;;  %v751_v62 = vld [vmem:[%s1061_s0 + $0x4c] sm:$0xf]  ;;  %v594_v63 = vld [vmem:[%s1061_s0 + $0x58] sm:$0xf0]  ;;  %v589_v1 = vor.u32 %v750_v58, %v586_v59  ;;  %v593_v2 = vor.u32 %v753_v61, %v592_v60  ;;  %v600_v4 = vld [vmem:[%s1061_s0 + $0x60] sm:$0xf] }
  0x14   :  { %456 = vmatpush.bf16.msra.mxu2 %v777_v18  ;;  %v597_v3 = vor.u32 %v751_v62, %v594_v63  ;;  %v756_v5 = vld [vmem:[%s1061_s0 + $0x6c] sm:$0xf0]  ;;  %v754_v6 = vld [vmem:[%s1061_s0 + $0x64] sm:$0xf]  ;;  %v602_v7 = vld [vmem:[%s1061_s0 + $0x70] sm:$0xf0] }
  0x15   :  { %489 = vmatpush.bf16.msra.mxu3 %v785_v19  ;;  %v608_v8 = vld [vmem:[%s1061_s0 + $0x68] sm:$0xf]  ;;  %v757_v9 = vld [vmem:[%s1061_s0 + $0x74] sm:$0xf0]  ;;  %v755_v10 = vld [vmem:[%s1061_s0 + $0x6c] sm:$0xf]  ;;  %v601_v12 = vor.u32 %v756_v5, %v600_v4  ;;  %v605_v13 = vor.u32 %v754_v6, %v602_v7 }
  0x16   :  { %391 = vmatpush.bf16.msra.mxu0 %v760_v20  ;;  %v610_v11 = vld [vmem:[%s1061_s0 + $0x78] sm:$0xf0]  ;;  %v609_v14 = vor.u32 %v757_v9, %v608_v8  ;;  %v30_v16 = vld [vmem:[%s1061_s0 + $0x80] sm:$0xff]  ;;  %v31_v17 = vld [vmem:[%s1061_s0 + $0x88] sm:$0xff] }
  0x17   :  { %424 = vmatpush.bf16.msra.mxu1 %v768_v21  ;;  %v613_v15 = vor.u32 %v755_v10, %v610_v11  ;;  %v150_v18 = vunpack.c.l.b16 %v30_v16  ;;  %v151_v19 = vunpack.c.h.b16 %v30_v16  ;;  %v152_v20 = vunpack.c.l.b16 %v31_v17 }
  0x18   :  { %457 = vmatpush.bf16.msra.mxu2 %v776_v22  ;;  %v153_v21 = vunpack.c.h.b16 %v31_v17 }
  0x19   :  { %490 = vmatpush.bf16.msra.mxu3 %v784_v23  ;;  %v170_v22 = vpack.c.b16 %v150_v18, %v150_v18  ;;  %v171_v23 = vpack.c.b16 %v151_v19, %v151_v19 }
  0x1a   :  { %392 = vmatpush.bf16.msra.mxu0 %v759_v24  ;;  %v172_v24 = vpack.c.b16 %v152_v20, %v152_v20 }
  0x1b   :  { %425 = vmatpush.bf16.msra.mxu1 %v767_v25  ;;  %v173_v25 = vpack.c.b16 %v153_v21, %v153_v21 }
  0x1c   :  { %458 = vmatpush.bf16.msra.mxu2 %v775_v26  ;;  %v1012_v26 = vld [vmem:[%s1060_s2] ss:$0 sm:$0xff] }
  0x1d   :  { %491 = vmatpush.bf16.msra.mxu3 %v783_v27 }
  0x1e   :  { %393 = vmatpush.bf16.msra.mxu0 %v758_v28 }
  0x1f   :  { %426 = vmatpush.bf16.msra.mxu1 %v766_v29 }
  0x20   :  { %459 = vmatpush.bf16.msra.mxu2 %v774_v30 }
  0x21   :  { %492 = vmatpush.bf16.msra.mxu3 %v782_v31  ;;  %394 = vmatmul.bf16.vlgmr.msra.gmra.mxu0 %v553_v40 }
  0x22   :  { %427 = vmatmul.bf16.vlgmr.msra.gmra.mxu1 %v557_v41 }
  0x23   :  { %460 = vmatmul.bf16.vlgmr.msra.gmra.mxu2 %v561_v42 }
  0x24   :  { %493 = vmatmul.bf16.vlgmr.msra.gmra.mxu3 %v565_v43 }
  0x31   :  { %399 = vmatmul.bf16.gmra.mxu0 %v569_v52 }
  0x32   :  { %432 = vmatmul.bf16.gmra.mxu1 %v573_v53 }
  0x33   :  { %465 = vmatmul.bf16.gmra.mxu2 %v577_v54 }
  0x34   :  { %498 = vmatmul.bf16.gmra.mxu3 %v581_v55 }
  0x41   :  { %404 = vmatmul.bf16.gmra.mxu0 %v585_v0 }
  0x42   :  { %437 = vmatmul.bf16.gmra.mxu1 %v589_v1 }
  0x43   :  { %470 = vmatmul.bf16.gmra.mxu2 %v593_v2 }
  0x44   :  { %503 = vmatmul.bf16.gmra.mxu3 %v597_v3 }
  0x51   :  { %409 = vmatmul.bf16.gmra.mxu0 %v601_v12 }
  0x52   :  { %442 = vmatmul.bf16.gmra.mxu1 %v605_v13 }
  0x53   :  { %475 = vmatmul.bf16.gmra.mxu2 %v609_v14 }
  0x54   :  { %508 = vmatmul.bf16.gmra.mxu3 %v613_v15 }
  0x61   :  { %414 = vmatmul.bf16.gmra.mxu0 %v170_v22 }
  0x62   :  { %447 = vmatmul.bf16.gmra.mxu1 %v171_v23 }
  0x63   :  { %480 = vmatmul.bf16.gmra.mxu2 %v172_v24 }
  0x64   :  { %513 = vmatmul.bf16.gmra.mxu3 %v173_v25 }
  0x9e   :  { %v395_v27 = vpop.f32.mrf.mxu0 }
  0x9f   :  { %v428_v28 = vpop.f32.mrf.mxu1  ;;  %v396_v29 = vadd.f32 %v1012_v26, %v395_v27 }
  0xa1   :  { %v429_v30 = vadd.f32 %v428_v28, %v396_v29 }
  0xa6   :  { %v461_v31 = vpop.f32.mrf.mxu2  ;;  %v397_v34 = vpop.f32.mrf.mxu0 }
  0xa7   :  { %v494_v32 = vpop.f32.mrf.mxu3  ;;  %v462_v33 = vadd.f32 %v461_v31, %v429_v30  ;;  %v430_v35 = vpop.f32.mrf.mxu1  ;;  %v398_v37 = vadd.f32 %v1012_v26, %v397_v34 }
  0xa9   :  { %v495_v36 = vadd.f32 %v494_v32, %v462_v33  ;;  %v431_v40 = vadd.f32 %v430_v35, %v398_v37 }
  0xab   :  { %v518_v38 = vmax.f32 %v495_v36, 0.0 }
  0xad   :  { %v527_v39 = vpack.c.bf16 %v518_v38, %v518_v38 }
  0xae   :  { %v463_v41 = vpop.f32.mrf.mxu2  ;;  %v400_v44 = vpop.f32.mrf.mxu0 }
  0xaf   :  { %v496_v42 = vpop.f32.mrf.mxu3  ;;  %537 = vst.msk [vmem:[%s1062_s3] sm:$0xf] %vm536_vm0, %v527_v39  ;;  %v464_v43 = vadd.f32 %v463_v41, %v431_v40  ;;  %v433_v45 = vpop.f32.mrf.mxu1  ;;  %v401_v46 = vadd.f32 %v1012_v26, %v400_v44 }
  0xb1   :  { %v497_v47 = vadd.f32 %v496_v42, %v464_v43  ;;  %v434_v49 = vadd.f32 %v433_v45, %v401_v46 }
  0xb3   :  { %v519_v48 = vmax.f32 %v497_v47, 0.0 }
  0xb5   :  { %v528_v50 = vpack.c.bf16 %v519_v48, %v519_v48 }
  0xb6   :  { %v466_v51 = vpop.f32.mrf.mxu2  ;;  %v402_v54 = vpop.f32.mrf.mxu0 }
  0xb7   :  { %v499_v52 = vpop.f32.mrf.mxu3  ;;  %538 = vst.msk [vmem:[%s1062_s3 + $0x4] sm:$0xf] %vm536_vm0, %v528_v50  ;;  %v467_v53 = vadd.f32 %v466_v51, %v434_v49  ;;  %v435_v55 = vpop.f32.mrf.mxu1  ;;  %v403_v57 = vadd.f32 %v1012_v26, %v402_v54 }
  0xb9   :  { %v500_v56 = vadd.f32 %v499_v52, %v467_v53  ;;  %v436_v60 = vadd.f32 %v435_v55, %v403_v57 }
  0xbb   :  { %v520_v58 = vmax.f32 %v500_v56, 0.0 }
  0xbd   :  { %v529_v59 = vpack.c.bf16 %v520_v58, %v520_v58 }
  0xbe   :  { %v468_v61 = vpop.f32.mrf.mxu2  ;;  %v405_v0 = vpop.f32.mrf.mxu0 }
  0xbf   :  { %v501_v62 = vpop.f32.mrf.mxu3  ;;  %539 = vst.msk [vmem:[%s1062_s3 + $0x8] sm:$0xf] %vm536_vm0, %v529_v59  ;;  %v469_v63 = vadd.f32 %v468_v61, %v436_v60  ;;  %v438_v1 = vpop.f32.mrf.mxu1  ;;  %v406_v2 = vadd.f32 %v1012_v26, %v405_v0 }
  0xc1   :  { %v502_v3 = vadd.f32 %v501_v62, %v469_v63  ;;  %v439_v5 = vadd.f32 %v438_v1, %v406_v2 }
  0xc3   :  { %v521_v4 = vmax.f32 %v502_v3, 0.0 }
  0xc5   :  { %v530_v6 = vpack.c.bf16 %v521_v4, %v521_v4 }
  0xc6   :  { %v471_v7 = vpop.f32.mrf.mxu2  ;;  %v407_v10 = vpop.f32.mrf.mxu0 }
  0xc7   :  { %v504_v8 = vpop.f32.mrf.mxu3  ;;  %540 = vst.msk [vmem:[%s1062_s3 + $0xc] sm:$0xf] %vm536_vm0, %v530_v6  ;;  %v472_v9 = vadd.f32 %v471_v7, %v439_v5  ;;  %v440_v11 = vpop.f32.mrf.mxu1  ;;  %v408_v13 = vadd.f32 %v1012_v26, %v407_v10 }
  0xc9   :  { %v505_v12 = vadd.f32 %v504_v8, %v472_v9  ;;  %v441_v16 = vadd.f32 %v440_v11, %v408_v13 }
  0xcb   :  { %v522_v14 = vmax.f32 %v505_v12, 0.0 }
  0xcd   :  { %v531_v15 = vpack.c.bf16 %v522_v14, %v522_v14 }
  0xce   :  { %v473_v17 = vpop.f32.mrf.mxu2  ;;  %v410_v20 = vpop.f32.mrf.mxu0 }
  0xcf   :  { %v506_v18 = vpop.f32.mrf.mxu3  ;;  %541 = vst.msk [vmem:[%s1062_s3 + $0x10] sm:$0xf] %vm536_vm0, %v531_v15  ;;  %v474_v19 = vadd.f32 %v473_v17, %v441_v16  ;;  %v443_v21 = vpop.f32.mrf.mxu1  ;;  %v411_v22 = vadd.f32 %v1012_v26, %v410_v20 }
  0xd1   :  { %v507_v23 = vadd.f32 %v506_v18, %v474_v19  ;;  %v444_v25 = vadd.f32 %v443_v21, %v411_v22 }
  0xd3   :  { %v523_v24 = vmax.f32 %v507_v23, 0.0 }
  0xd5   :  { %v532_v27 = vpack.c.bf16 %v523_v24, %v523_v24 }
  0xd6   :  { %v476_v28 = vpop.f32.mrf.mxu2  ;;  %v412_v31 = vpop.f32.mrf.mxu0 }
  0xd7   :  { %v509_v29 = vpop.f32.mrf.mxu3  ;;  %542 = vst.msk [vmem:[%s1062_s3 + $0x14] sm:$0xf] %vm536_vm0, %v532_v27  ;;  %v477_v30 = vadd.f32 %v476_v28, %v444_v25  ;;  %v445_v32 = vpop.f32.mrf.mxu1  ;;  %v413_v34 = vadd.f32 %v1012_v26, %v412_v31 }
  0xd9   :  { %v510_v33 = vadd.f32 %v509_v29, %v477_v30  ;;  %v446_v37 = vadd.f32 %v445_v32, %v413_v34 }
  0xdb   :  { %v524_v35 = vmax.f32 %v510_v33, 0.0 }
  0xdd   :  { %v533_v36 = vpack.c.bf16 %v524_v35, %v524_v35 }
  0xde   :  { %v478_v38 = vpop.f32.mrf.mxu2  ;;  %v415_v41 = vpop.f32.mrf.mxu0 }
  0xdf   :  { %v511_v39 = vpop.f32.mrf.mxu3  ;;  %543 = vst.msk [vmem:[%s1062_s3 + $0x18] sm:$0xf] %vm536_vm0, %v533_v36  ;;  %v479_v40 = vadd.f32 %v478_v38, %v446_v37  ;;  %v448_v42 = vpop.f32.mrf.mxu1  ;;  %v416_v43 = vadd.f32 %v1012_v26, %v415_v41 }
  0xe1   :  { %v512_v44 = vadd.f32 %v511_v39, %v479_v40  ;;  %v449_v46 = vadd.f32 %v448_v42, %v416_v43 }
  0xe3   :  { %v525_v45 = vmax.f32 %v512_v44, 0.0 }
  0xe5   :  { %v534_v47 = vpack.c.bf16 %v525_v45, %v525_v45 }
  0xe6   :  { %v481_v48 = vpop.f32.mrf.mxu2  ;;  %v417_v51 = vpop.f32.mrf.mxu0 }
  0xe7   :  { %v514_v49 = vpop.f32.mrf.mxu3  ;;  %544 = vst.msk [vmem:[%s1062_s3 + $0x1c] sm:$0xf] %vm536_vm0, %v534_v47  ;;  %v482_v50 = vadd.f32 %v481_v48, %v449_v46  ;;  %v450_v52 = vpop.f32.mrf.mxu1 }
  0xe9   :  { %v515_v53 = vadd.f32 %v514_v49, %v482_v50 }
  0xeb   :  { %v526_v54 = vmax.f32 %v515_v53, 0.0 }
  0xed   :  { %v535_v55 = vpack.c.bf16 %v526_v54, %v526_v54 }
  0xee   :  { %v483_v56 = vpop.f32.mrf.mxu2 }
  0xef   :  { %v516_v57 = vpop.f32.mrf.mxu3  ;;  %545 = vst.msk [vmem:[%s1062_s3 + $0x20] sm:$0xf] %vm536_vm0, %v535_v55 }

// kernel: dqn_base_forward.6
= control target key start
LH: loop header
LB: loop body
LE: loop exit
PB: predicated region body
PF: predicated region fallthrough
CT: control target
= control target key end

     0   :  { %vm369_vm0 = vcmask 523264   ;;  %vm479_vm1 = vcmask 519168   ;;  %s932_s1 = inlined_call_operand.vmem [shape: bf16[576,64], index: 1, kind: input, shape index: {}]   ;;  %s933_s2 = inlined_call_operand.vmem [shape: f32[1,64], index: 2, kind: input, shape index: {}]   ;;  %s934_s0 = inlined_call_operand.vmem [shape: bf16[32,576], index: 0, kind: input, shape index: {}]   ;;  %s935_s3 = inlined_call_operand.vmem [shape: bf16[32,64], index: 3, kind: output, shape index: {}]  }
   0x1   :  { %v691_v0 = vld [vmem:[%s932_s1 + $0x38] sm:$0xff]  ;;  %v690_v4 = vld [vmem:[%s932_s1 + $0x30] sm:$0xff]  ;;  %v689_v8 = vld [vmem:[%s932_s1 + $0x28] sm:$0xff] }
   0x2   :  { %v699_v1 = vld [vmem:[%s932_s1 + $0x78] sm:$0xff]  ;;  %376 = vmatpush.bf16.msra.mxu0 %v691_v0  ;;  %v698_v5 = vld [vmem:[%s932_s1 + $0x70] sm:$0xff]  ;;  %v697_v9 = vld [vmem:[%s932_s1 + $0x68] sm:$0xff] }
   0x3   :  { %v707_v2 = vld [vmem:[%s932_s1 + $0xb8] sm:$0xff]  ;;  %395 = vmatpush.bf16.msra.mxu1 %v699_v1  ;;  %v706_v6 = vld [vmem:[%s932_s1 + $0xb0] sm:$0xff]  ;;  %v705_v10 = vld [vmem:[%s932_s1 + $0xa8] sm:$0xff] }
   0x4   :  { %v715_v3 = vld [vmem:[%s932_s1 + $0xf8] sm:$0xff]  ;;  %414 = vmatpush.bf16.msra.mxu2 %v707_v2  ;;  %v714_v7 = vld [vmem:[%s932_s1 + $0xf0] sm:$0xff]  ;;  %v713_v11 = vld [vmem:[%s932_s1 + $0xe8] sm:$0xff] }
   0x5   :  { %433 = vmatpush.bf16.msra.mxu3 %v715_v3  ;;  %v688_v12 = vld [vmem:[%s932_s1 + $0x20] sm:$0xff]  ;;  %v687_v16 = vld [vmem:[%s932_s1 + $0x18] sm:$0xff]  ;;  %v686_v20 = vld [vmem:[%s932_s1 + $0x10] sm:$0xff] }
   0x6   :  { %377 = vmatpush.bf16.msra.mxu0 %v690_v4  ;;  %v696_v13 = vld [vmem:[%s932_s1 + $0x60] sm:$0xff]  ;;  %v695_v17 = vld [vmem:[%s932_s1 + $0x58] sm:$0xff]  ;;  %v694_v21 = vld [vmem:[%s932_s1 + $0x50] sm:$0xff] }
   0x7   :  { %396 = vmatpush.bf16.msra.mxu1 %v698_v5  ;;  %v704_v14 = vld [vmem:[%s932_s1 + $0xa0] sm:$0xff]  ;;  %v703_v18 = vld [vmem:[%s932_s1 + $0x98] sm:$0xff]  ;;  %v702_v22 = vld [vmem:[%s932_s1 + $0x90] sm:$0xff] }
   0x8   :  { %415 = vmatpush.bf16.msra.mxu2 %v706_v6  ;;  %v712_v15 = vld [vmem:[%s932_s1 + $0xe0] sm:$0xff]  ;;  %v711_v19 = vld [vmem:[%s932_s1 + $0xd8] sm:$0xff]  ;;  %v710_v23 = vld [vmem:[%s932_s1 + $0xd0] sm:$0xff] }
   0x9   :  { %434 = vmatpush.bf16.msra.mxu3 %v714_v7  ;;  %v685_v24 = vld [vmem:[%s932_s1 + $0x8] sm:$0xff]  ;;  %v684_v28 = vld [vmem:[%s932_s1] sm:$0xff]  ;;  %v676_v33 = vld [vmem:[%s934_s0 + $0x10] sm:$0xf0] }
   0xa   :  { %378 = vmatpush.bf16.msra.mxu0 %v689_v8  ;;  %v693_v25 = vld [vmem:[%s932_s1 + $0x48] sm:$0xff]  ;;  %v692_v29 = vld [vmem:[%s932_s1 + $0x40] sm:$0xff]  ;;  %v492_v35 = vld [vmem:[%s934_s0 + $0x14] sm:$0xf0] }
   0xb   :  { %397 = vmatpush.bf16.msra.mxu1 %v697_v9  ;;  %v701_v26 = vld [vmem:[%s932_s1 + $0x88] sm:$0xff]  ;;  %v700_v30 = vld [vmem:[%s932_s1 + $0x80] sm:$0xff]  ;;  %v677_v37 = vld [vmem:[%s934_s0 + $0x18] sm:$0xf0] }
   0xc   :  { %416 = vmatpush.bf16.msra.mxu2 %v705_v10  ;;  %v709_v27 = vld [vmem:[%s932_s1 + $0xc8] sm:$0xff]  ;;  %v708_v31 = vld [vmem:[%s932_s1 + $0xc0] sm:$0xff]  ;;  %v719_v40 = vld [vmem:[%s932_s1 + $0x118] sm:$0xff] }
   0xd   :  { %435 = vmatpush.bf16.msra.mxu3 %v713_v11  ;;  %v490_v32 = vld [vmem:[%s934_s0] sm:$0xf]  ;;  %v674_v34 = vld [vmem:[%s934_s0 + $0x4] sm:$0xf]  ;;  %v498_v36 = vld [vmem:[%s934_s0 + $0x8] sm:$0xf] }
   0xe   :  { %379 = vmatpush.bf16.msra.mxu0 %v688_v12  ;;  %v675_v38 = vld [vmem:[%s934_s0 + $0xc] sm:$0xf]  ;;  %v500_v39 = vld [vmem:[%s934_s0 + $0x1c] sm:$0xf0]  ;;  %v491_v41 = vor.u32 %v676_v33, %v490_v32  ;;  %v495_v42 = vor.u32 %v674_v34, %v492_v35  ;;  %v499_v43 = vor.u32 %v677_v37, %v498_v36  ;;  %v718_v45 = vld [vmem:[%s932_s1 + $0x110] sm:$0xff] }
   0xf   :  { %398 = vmatpush.bf16.msra.mxu1 %v696_v13  ;;  %v503_v44 = vor.u32 %v675_v38, %v500_v39  ;;  %v717_v46 = vld [vmem:[%s932_s1 + $0x108] sm:$0xff]  ;;  %v716_v47 = vld [vmem:[%s932_s1 + $0x100] sm:$0xff]  ;;  %v681_v49 = vld [vmem:[%s934_s0 + $0x38] sm:$0xf0] }
  0x10   :  { %417 = vmatpush.bf16.msra.mxu2 %v704_v14  ;;  %v510_v48 = vld [vmem:[%s934_s0 + $0x28] sm:$0xf]  ;;  %v679_v50 = vld [vmem:[%s934_s0 + $0x2c] sm:$0xf]  ;;  %v512_v51 = vld [vmem:[%s934_s0 + $0x3c] sm:$0xf0] }
  0x11   :  { %436 = vmatpush.bf16.msra.mxu3 %v712_v15  ;;  %v518_v52 = vld [vmem:[%s934_s0 + $0x30] sm:$0xf]  ;;  %v682_v53 = vld [vmem:[%s934_s0 + $0x40] sm:$0xf0]  ;;  %v680_v54 = vld [vmem:[%s934_s0 + $0x34] sm:$0xf]  ;;  %v511_v56 = vor.u32 %v681_v49, %v510_v48  ;;  %v515_v57 = vor.u32 %v679_v50, %v512_v51 }
  0x12   :  { %380 = vmatpush.bf16.msra.mxu0 %v687_v16  ;;  %v520_v55 = vld [vmem:[%s934_s0 + $0x44] sm:$0xf0]  ;;  %v519_v58 = vor.u32 %v682_v53, %v518_v52  ;;  %v506_v60 = vld [vmem:[%s934_s0 + $0x10] sm:$0xf]  ;;  %v678_v61 = vld [vmem:[%s934_s0 + $0x20] sm:$0xf0] }
  0x13   :  { %399 = vmatpush.bf16.msra.mxu1 %v695_v17  ;;  %v523_v59 = vor.u32 %v680_v54, %v520_v55  ;;  %v526_v62 = vld [vmem:[%s934_s0 + $0x38] sm:$0xf]  ;;  %v683_v63 = vld [vmem:[%s934_s0 + $0x48] sm:$0xf0]  ;;  %v507_v0 = vor.u32 %v678_v61, %v506_v60  ;;  %v724_v11 = vld [vmem:[%s933_s2] ss:$0 sm:$0xff] }
  0x14   :  { %418 = vmatpush.bf16.msra.mxu2 %v703_v18  ;;  %v527_v1 = vor.u32 %v683_v63, %v526_v62 }
  0x15   :  { %437 = vmatpush.bf16.msra.mxu3 %v711_v19 }
  0x16   :  { %381 = vmatpush.bf16.msra.mxu0 %v686_v20 }
  0x17   :  { %400 = vmatpush.bf16.msra.mxu1 %v694_v21 }
  0x18   :  { %419 = vmatpush.bf16.msra.mxu2 %v702_v22 }
  0x19   :  { %438 = vmatpush.bf16.msra.mxu3 %v710_v23 }
  0x1a   :  { %382 = vmatpush.bf16.msra.mxu0 %v685_v24 }
  0x1b   :  { %401 = vmatpush.bf16.msra.mxu1 %v693_v25 }
  0x1c   :  { %420 = vmatpush.bf16.msra.mxu2 %v701_v26 }
  0x1d   :  { %439 = vmatpush.bf16.msra.mxu3 %v709_v27 }
  0x1e   :  { %383 = vmatpush.bf16.msra.mxu0 %v684_v28 }
  0x1f   :  { %402 = vmatpush.bf16.msra.mxu1 %v692_v29 }
  0x20   :  { %421 = vmatpush.bf16.msra.mxu2 %v700_v30 }
  0x21   :  { %440 = vmatpush.bf16.msra.mxu3 %v708_v31  ;;  %384 = vmatmul.bf16.vlgmr.msra.gmra.mxu0 %v491_v41 }
  0x22   :  { %456 = vmatpush.bf16.msrb.mxu0 %v719_v40  ;;  %403 = vmatmul.bf16.vlgmr.msra.gmra.mxu1 %v495_v42 }
  0x23   :  { %720 = vmatpush.bf16.msrb.mxu1 %v719_v40  ;;  %422 = vmatmul.bf16.vlgmr.msra.gmra.mxu2 %v499_v43 }
  0x24   :  { %441 = vmatmul.bf16.vlgmr.msra.gmra.mxu3 %v503_v44 }
  0x26   :  { %457 = vmatpush.bf16.msrb.mxu0 %v718_v45 }
  0x27   :  { %721 = vmatpush.bf16.msrb.mxu1 %v718_v45 }
  0x2a   :  { %458 = vmatpush.bf16.msrb.mxu0 %v717_v46 }
  0x2b   :  { %722 = vmatpush.bf16.msrb.mxu1 %v717_v46 }
  0x2e   :  { %459 = vmatpush.bf16.msrb.mxu0 %v716_v47 }
  0x2f   :  { %723 = vmatpush.bf16.msrb.mxu1 %v716_v47 }
  0x31   :  { %389 = vmatmul.bf16.gmra.mxu0 %v511_v56 }
  0x32   :  { %408 = vmatmul.bf16.gmra.mxu1 %v515_v57 }
  0x33   :  { %427 = vmatmul.bf16.gmra.mxu2 %v519_v58 }
  0x34   :  { %446 = vmatmul.bf16.gmra.mxu3 %v523_v59 }
  0x41   :  { %672 = vmatmul.msk.bf16.vlgmr.msrb.gmra.mxu0 %vm369_vm0, %v507_v0 }
  0x42   :  { %673 = vmatmul.msk.bf16.vlgmr.msrb.gmra.mxu1 %vm369_vm0, %v527_v1 }
  0x9e   :  { %v385_v2 = vpop.f32.mrf.mxu0 }
  0x9f   :  { %v404_v3 = vpop.f32.mrf.mxu1  ;;  %v386_v13 = vadd.f32 %v724_v11, %v385_v2 }
  0xa1   :  { %v405_v18 = vadd.f32 %v404_v3, %v386_v13 }
  0xa6   :  { %v423_v4 = vpop.f32.mrf.mxu2  ;;  %v387_v6 = vpop.f32.mrf.mxu0 }
  0xa7   :  { %v442_v5 = vpop.f32.mrf.mxu3  ;;  %v406_v7 = vpop.f32.mrf.mxu1  ;;  %v424_v20 = vadd.f32 %v423_v4, %v405_v18  ;;  %v388_v23 = vadd.f32 %v724_v11, %v387_v6 }
  0xa9   :  { %v443_v25 = vadd.f32 %v442_v5, %v424_v20  ;;  %v407_v30 = vadd.f32 %v406_v7, %v388_v23 }
  0xae   :  { %v425_v8 = vpop.f32.mrf.mxu2  ;;  %v390_v9 = vpop.f32.mrf.mxu0 }
  0xaf   :  { %v409_v10 = vpop.f32.mrf.mxu1  ;;  %v444_v12 = vpop.f32.mrf.mxu3  ;;  %v391_v14 = vadd.f32 %v724_v11, %v390_v9  ;;  %v426_v34 = vadd.f32 %v425_v8, %v407_v30 }
  0xb1   :  { %v410_v19 = vadd.f32 %v409_v10, %v391_v14  ;;  %v445_v41 = vadd.f32 %v444_v12, %v426_v34 }
  0xb6   :  { %v428_v15 = vpop.f32.mrf.mxu2  ;;  %v392_v16 = vpop.f32.mrf.mxu0 }
  0xb7   :  { %v411_v17 = vpop.f32.mrf.mxu1  ;;  %v429_v21 = vadd.f32 %v428_v15, %v410_v19  ;;  %v447_v22 = vpop.f32.mrf.mxu3  ;;  %v393_v24 = vadd.f32 %v724_v11, %v392_v16 }
  0xb9   :  { %v448_v26 = vadd.f32 %v447_v22, %v429_v21  ;;  %v412_v31 = vadd.f32 %v411_v17, %v393_v24 }
  0xbe   :  { %v430_v27 = vpop.f32.mrf.mxu2  ;;  %v461_v28 = vpop.f32.mrf.mxu0 }
  0xbf   :  { %v466_v29 = vpop.f32.mrf.mxu1  ;;  %v462_v32 = vadd.f32 %v461_v28, %v443_v25  ;;  %v431_v35 = vadd.f32 %v430_v27, %v412_v31  ;;  %v449_v40 = vpop.f32.mrf.mxu3 }
  0xc0   :  { %v467_v33 = vadd.f32 %v466_v29, %v448_v26 }
  0xc1   :  { %v471_v36 = vmax.f32 %v462_v32, 0.0  ;;  %v450_v42 = vadd.f32 %v449_v40, %v431_v35 }
  0xc2   :  { %v473_v37 = vmax.f32 %v467_v33, 0.0 }
  0xc3   :  { %v475_v38 = vpack.c.bf16 %v471_v36, %v471_v36 }
  0xc4   :  { %v477_v39 = vpack.c.bf16 %v473_v37, %v473_v37 }
  0xc5   :  { %480 = vst.msk [vmem:[%s935_s3] sm:$0xf] %vm479_vm1, %v475_v38 }
  0xc6   :  { %482 = vst.msk [vmem:[%s935_s3 + $0x8] sm:$0xf] %vm479_vm1, %v477_v39  ;;  %v463_v43 = vpop.f32.mrf.mxu0 }
  0xc7   :  { %v468_v44 = vpop.f32.mrf.mxu1  ;;  %v464_v45 = vadd.f32 %v463_v43, %v445_v41 }
  0xc8   :  { %v469_v46 = vadd.f32 %v468_v44, %v450_v42 }
  0xc9   :  { %v472_v47 = vmax.f32 %v464_v45, 0.0 }
  0xca   :  { %v474_v48 = vmax.f32 %v469_v46, 0.0 }
  0xcb   :  { %v476_v49 = vpack.c.bf16 %v472_v47, %v472_v47 }
  0xcc   :  { %v478_v50 = vpack.c.bf16 %v474_v48, %v474_v48 }
  0xcd   :  { %481 = vst.msk [vmem:[%s935_s3 + $0x4] sm:$0xf] %vm479_vm1, %v476_v49 }
  0xce   :  { %483 = vst.msk [vmem:[%s935_s3 + $0xc] sm:$0xf] %vm479_vm1, %v478_v50 }

// kernel: dqn_base_forward.7
= control target key start
LH: loop header
LB: loop body
LE: loop exit
PB: predicated region body
PF: predicated region fallthrough
CT: control target
= control target key end

     0   :  { %8 = vsyncpa [#allocation4], 0  ;;  %s3752_s0 = inlined_call_operand.vmem [shape: bf16[2,1152], index: 0, kind: input, shape index: {}]   ;;  %s3753_s1 = inlined_call_operand.vmem [shape: bf16[1152,512], index: 1, kind: input, shape index: {}]   ;;  %s3754_s2 = inlined_call_operand.vmem [shape: f32[1,512], index: 2, kind: input, shape index: {}]   ;;  %s3755_s3 = inlined_call_operand.hbm [shape: f32[2,512], index: 3, kind: output, shape index: {}]  }
   0x1   :  { %10 = vsyncpa [#allocation4 + $0x1], 0  ;;  %s3017_s12 = smov 0   ;;  %s3019_s13 = smov 0  }
   0x2   :  { %s3021_s14 = smov 0   ;;  %s3023_s15 = smov 0  }
   0x3   :  { %s3025_s16 = smov 0   ;;  %s3027_s17 = smov 0  }
   0x4 LB: > { %s2123_s18 = sadd.s32 4294967295, %s2995_s17   ;;  %s2124_s19 = sadd.s32 4294967294, %s2995_s17   ;;  %s2995_s17 = sphi %s3027_s17, %s16_s17   ;;  %s2991_s16 = sphi %s3025_s16, %s3762_s16   ;;  %s2987_s15 = sphi %s3023_s15, %s3761_s15   ;;  %s2983_s14 = sphi %s3021_s14, %s3760_s14   ;;  %s2979_s13 = sphi %s3019_s13, %s3759_s13   ;;  %s2975_s12 = sphi %s3017_s12, %s3758_s12  }
   0x5   : > { %s31_s20 = sadd.s32 1, %s2991_s16  ;;  %s72_s21 = sadd.s32 1, %s2983_s14 }
   0x6   : > { %p33_p0 = scmp.ge.s32.totalorder %s31_s20, 2  ;;  %p79_p1 = scmp.ne.s32.totalorder %s2983_s14, %s2979_s13 }
   0x7   : > { %p80_p2 = scmp.eq.s32.totalorder %s2995_s17, 0  ;;  %p137_p3 = scmp.eq.s32.totalorder %s2123_s18, 1 }
   0x8   : > { %s3764_s20 = smov (%p33_p0, %s31_s20), 0  ;;  %p142_p6 = scmp.ne.s32.totalorder %s2979_s13, %s2975_s12 }
   0x9   : > { %p81_p4 = por %p80_p2, %p79_p1  ;;  %p3056_p5 = por %p137_p3, %p79_p1 }
   0xa   : > { %s68_s23 = ssub.s32 %s2991_s16, %s3764_s20  ;;  %p143_p8 = scmp.eq.s32.totalorder %s2124_s19, 1 }
   0xb   : > { %p70_p7 = scmp.eq.s32.totalorder %s68_s23, 0  ;;  %p2127_p10 = scmp.ge.s32.totalorder %s2995_s17, 2 }
   0xc   : > { %p3067_p9 = por %p143_p8, %p142_p6 }
   0xd   : > { %s3065_s24 = scalar_select %p70_p7, %s2983_s14, %s72_s21  }
   0xe   : > { %171 = sbr.rel (%p2127_p10) target bundleno = 167 (0xa7), region = 20 }
  0x13   : > { %174 = sbr.rel (!%p81_p4) target bundleno = 167 (0xa7), region = 24  ;;  %s176_s26 = sand.u32 (%p81_p4), 1, %s2983_s14  }
  0x14   : > { %s2714_s27 = sshll.u32 (%p81_p4), %s2991_s16, 3  ;;  %s2860_s28 = smul.u32 (%p81_p4), 1152, %s176_s26 }
  0x15   : > { %s3079_s4 = scalar_lea.vmem (%p81_p4), %s3753_s1, %s2714_s27 }
  0x16   : > { %v499_v0 = vld [vmem:[%s3079_s4] sm:$0xff] (%p81_p4)  ;;  %v501_v1 = vld [vmem:[%s3079_s4 + $0x10] sm:$0xff] (%p81_p4)  ;;  %s3084_s5 = scalar_lea.vmem (%p81_p4), [#allocation2], %s2860_s28 }
  0x17   : > { %v503_v2 = vld [vmem:[%s3079_s4 + $0x20] sm:$0xff] (%p81_p4)  ;;  %500 = vst [vmem:[%s3084_s5] sm:$0xff] (%p81_p4), %v499_v0  ;;  %v505_v3 = vld [vmem:[%s3079_s4 + $0x30] sm:$0xff] (%p81_p4) }
  0x18   : > { %502 = vst [vmem:[%s3084_s5 + $0x8] sm:$0xff] %v501_v1  ;;  %v507_v4 = vld [vmem:[%s3079_s4 + $0x40] sm:$0xff]  ;;  %v509_v5 = vld [vmem:[%s3079_s4 + $0x50] sm:$0xff] }
  0x19   : > { %504 = vst [vmem:[%s3084_s5 + $0x10] sm:$0xff] %v503_v2  ;;  %v511_v6 = vld [vmem:[%s3079_s4 + $0x60] sm:$0xff]  ;;  %v513_v7 = vld [vmem:[%s3079_s4 + $0x70] sm:$0xff] }
  0x1a   : > { %506 = vst [vmem:[%s3084_s5 + $0x18] sm:$0xff] %v505_v3  ;;  %v515_v8 = vld [vmem:[%s3079_s4 + $0x80] sm:$0xff]  ;;  %v517_v9 = vld [vmem:[%s3079_s4 + $0x90] sm:$0xff] }
  0x1b   : > { %508 = vst [vmem:[%s3084_s5 + $0x20] sm:$0xff] %v507_v4  ;;  %v519_v10 = vld [vmem:[%s3079_s4 + $0xa0] sm:$0xff]  ;;  %v521_v11 = vld [vmem:[%s3079_s4 + $0xb0] sm:$0xff] }
  0x1c   : > { %510 = vst [vmem:[%s3084_s5 + $0x28] sm:$0xff] %v509_v5  ;;  %v523_v12 = vld [vmem:[%s3079_s4 + $0xc0] sm:$0xff]  ;;  %v525_v13 = vld [vmem:[%s3079_s4 + $0xd0] sm:$0xff] }
  0x1d   : > { %512 = vst [vmem:[%s3084_s5 + $0x30] sm:$0xff] %v511_v6  ;;  %v527_v14 = vld [vmem:[%s3079_s4 + $0xe0] sm:$0xff]  ;;  %v529_v15 = vld [vmem:[%s3079_s4 + $0xf0] sm:$0xff] }
  0x1e   : > { %514 = vst [vmem:[%s3084_s5 + $0x38] sm:$0xff] %v513_v7  ;;  %v531_v16 = vld [vmem:[%s3079_s4 + $0x100] sm:$0xff]  ;;  %v533_v17 = vld [vmem:[%s3079_s4 + $0x110] sm:$0xff] }
  0x1f   : > { %516 = vst [vmem:[%s3084_s5 + $0x40] sm:$0xff] %v515_v8  ;;  %v535_v18 = vld [vmem:[%s3079_s4 + $0x120] sm:$0xff]  ;;  %v537_v19 = vld [vmem:[%s3079_s4 + $0x130] sm:$0xff] }
  0x20   : > { %518 = vst [vmem:[%s3084_s5 + $0x48] sm:$0xff] %v517_v9  ;;  %v539_v20 = vld [vmem:[%s3079_s4 + $0x140] sm:$0xff]  ;;  %v541_v21 = vld [vmem:[%s3079_s4 + $0x150] sm:$0xff] }
  0x21   : > { %520 = vst [vmem:[%s3084_s5 + $0x50] sm:$0xff] %v519_v10  ;;  %v543_v22 = vld [vmem:[%s3079_s4 + $0x160] sm:$0xff]  ;;  %v545_v23 = vld [vmem:[%s3079_s4 + $0x170] sm:$0xff] }
  0x22   : > { %522 = vst [vmem:[%s3084_s5 + $0x58] sm:$0xff] %v521_v11  ;;  %v547_v24 = vld [vmem:[%s3079_s4 + $0x180] sm:$0xff]  ;;  %v549_v25 = vld [vmem:[%s3079_s4 + $0x190] sm:$0xff] }
  0x23   : > { %524 = vst [vmem:[%s3084_s5 + $0x60] sm:$0xff] %v523_v12  ;;  %v551_v26 = vld [vmem:[%s3079_s4 + $0x1a0] sm:$0xff]  ;;  %v553_v27 = vld [vmem:[%s3079_s4 + $0x1b0] sm:$0xff] }
  0x24   : > { %526 = vst [vmem:[%s3084_s5 + $0x68] sm:$0xff] %v525_v13  ;;  %v555_v28 = vld [vmem:[%s3079_s4 + $0x1c0] sm:$0xff]  ;;  %v557_v29 = vld [vmem:[%s3079_s4 + $0x1d0] sm:$0xff] }
  0x25   : > { %528 = vst [vmem:[%s3084_s5 + $0x70] sm:$0xff] %v527_v14  ;;  %v559_v30 = vld [vmem:[%s3079_s4 + $0x1e0] sm:$0xff]  ;;  %v561_v31 = vld [vmem:[%s3079_s4 + $0x1f0] sm:$0xff] }
  0x26   : > { %530 = vst [vmem:[%s3084_s5 + $0x78] sm:$0xff] %v529_v15  ;;  %v563_v32 = vld [vmem:[%s3079_s4 + $0x200] sm:$0xff]  ;;  %v565_v33 = vld [vmem:[%s3079_s4 + $0x210] sm:$0xff] }
  0x27   : > { %532 = vst [vmem:[%s3084_s5 + $0x80] sm:$0xff] %v531_v16  ;;  %v567_v34 = vld [vmem:[%s3079_s4 + $0x220] sm:$0xff]  ;;  %v569_v35 = vld [vmem:[%s3079_s4 + $0x230] sm:$0xff] }
  0x28   : > { %534 = vst [vmem:[%s3084_s5 + $0x88] sm:$0xff] %v533_v17  ;;  %v571_v36 = vld [vmem:[%s3079_s4 + $0x240] sm:$0xff]  ;;  %v573_v37 = vld [vmem:[%s3079_s4 + $0x250] sm:$0xff] }
  0x29   : > { %536 = vst [vmem:[%s3084_s5 + $0x90] sm:$0xff] %v535_v18  ;;  %v575_v38 = vld [vmem:[%s3079_s4 + $0x260] sm:$0xff]  ;;  %v577_v39 = vld [vmem:[%s3079_s4 + $0x270] sm:$0xff] }
  0x2a   : > { %538 = vst [vmem:[%s3084_s5 + $0x98] sm:$0xff] %v537_v19  ;;  %v579_v40 = vld [vmem:[%s3079_s4 + $0x280] sm:$0xff]  ;;  %v581_v41 = vld [vmem:[%s3079_s4 + $0x290] sm:$0xff] }
  0x2b   : > { %540 = vst [vmem:[%s3084_s5 + $0xa0] sm:$0xff] %v539_v20  ;;  %v583_v42 = vld [vmem:[%s3079_s4 + $0x2a0] sm:$0xff]  ;;  %v585_v43 = vld [vmem:[%s3079_s4 + $0x2b0] sm:$0xff] }
  0x2c   : > { %542 = vst [vmem:[%s3084_s5 + $0xa8] sm:$0xff] %v541_v21  ;;  %v587_v44 = vld [vmem:[%s3079_s4 + $0x2c0] sm:$0xff]  ;;  %v589_v45 = vld [vmem:[%s3079_s4 + $0x2d0] sm:$0xff] }
  0x2d   : > { %544 = vst [vmem:[%s3084_s5 + $0xb0] sm:$0xff] %v543_v22  ;;  %v591_v46 = vld [vmem:[%s3079_s4 + $0x2e0] sm:$0xff]  ;;  %v593_v47 = vld [vmem:[%s3079_s4 + $0x2f0] sm:$0xff] }
  0x2e   : > { %546 = vst [vmem:[%s3084_s5 + $0xb8] sm:$0xff] %v545_v23  ;;  %v595_v48 = vld [vmem:[%s3079_s4 + $0x300] sm:$0xff]  ;;  %v597_v49 = vld [vmem:[%s3079_s4 + $0x310] sm:$0xff] }
  0x2f   : > { %548 = vst [vmem:[%s3084_s5 + $0xc0] sm:$0xff] %v547_v24  ;;  %v599_v50 = vld [vmem:[%s3079_s4 + $0x320] sm:$0xff]  ;;  %v601_v51 = vld [vmem:[%s3079_s4 + $0x330] sm:$0xff] }
  0x30   : > { %550 = vst [vmem:[%s3084_s5 + $0xc8] sm:$0xff] %v549_v25  ;;  %v603_v52 = vld [vmem:[%s3079_s4 + $0x340] sm:$0xff]  ;;  %v605_v53 = vld [vmem:[%s3079_s4 + $0x350] sm:$0xff] }
  0x31   : > { %552 = vst [vmem:[%s3084_s5 + $0xd0] sm:$0xff] %v551_v26  ;;  %v607_v54 = vld [vmem:[%s3079_s4 + $0x360] sm:$0xff]  ;;  %v609_v55 = vld [vmem:[%s3079_s4 + $0x370] sm:$0xff] }
  0x32   : > { %554 = vst [vmem:[%s3084_s5 + $0xd8] sm:$0xff] %v553_v27  ;;  %v611_v56 = vld [vmem:[%s3079_s4 + $0x380] sm:$0xff]  ;;  %v613_v57 = vld [vmem:[%s3079_s4 + $0x390] sm:$0xff] }
  0x33   : > { %556 = vst [vmem:[%s3084_s5 + $0xe0] sm:$0xff] %v555_v28  ;;  %v615_v58 = vld [vmem:[%s3079_s4 + $0x3a0] sm:$0xff]  ;;  %v617_v59 = vld [vmem:[%s3079_s4 + $0x3b0] sm:$0xff] }
  0x34   : > { %558 = vst [vmem:[%s3084_s5 + $0xe8] sm:$0xff] %v557_v29  ;;  %v619_v60 = vld [vmem:[%s3079_s4 + $0x3c0] sm:$0xff]  ;;  %v621_v61 = vld [vmem:[%s3079_s4 + $0x3d0] sm:$0xff] }
  0x35   : > { %560 = vst [vmem:[%s3084_s5 + $0xf0] sm:$0xff] %v559_v30  ;;  %v623_v62 = vld [vmem:[%s3079_s4 + $0x3e0] sm:$0xff]  ;;  %v625_v63 = vld [vmem:[%s3079_s4 + $0x3f0] sm:$0xff] }
  0x36   : > { %562 = vst [vmem:[%s3084_s5 + $0xf8] sm:$0xff] %v561_v31  ;;  %v627_v0 = vld [vmem:[%s3079_s4 + $0x400] sm:$0xff]  ;;  %v629_v1 = vld [vmem:[%s3079_s4 + $0x410] sm:$0xff] }
  0x37   : > { %564 = vst [vmem:[%s3084_s5 + $0x100] sm:$0xff] %v563_v32  ;;  %v631_v2 = vld [vmem:[%s3079_s4 + $0x420] sm:$0xff]  ;;  %v633_v3 = vld [vmem:[%s3079_s4 + $0x430] sm:$0xff] }
  0x38   : > { %566 = vst [vmem:[%s3084_s5 + $0x108] sm:$0xff] %v565_v33  ;;  %v635_v4 = vld [vmem:[%s3079_s4 + $0x440] sm:$0xff]  ;;  %v637_v5 = vld [vmem:[%s3079_s4 + $0x450] sm:$0xff] }
  0x39   : > { %568 = vst [vmem:[%s3084_s5 + $0x110] sm:$0xff] %v567_v34  ;;  %v639_v6 = vld [vmem:[%s3079_s4 + $0x460] sm:$0xff]  ;;  %v641_v7 = vld [vmem:[%s3079_s4 + $0x470] sm:$0xff] }
  0x3a   : > { %570 = vst [vmem:[%s3084_s5 + $0x118] sm:$0xff] %v569_v35  ;;  %v643_v8 = vld [vmem:[%s3079_s4 + $0x480] sm:$0xff]  ;;  %v645_v9 = vld [vmem:[%s3079_s4 + $0x490] sm:$0xff] }
  0x3b   : > { %572 = vst [vmem:[%s3084_s5 + $0x120] sm:$0xff] %v571_v36  ;;  %v647_v10 = vld [vmem:[%s3079_s4 + $0x4a0] sm:$0xff]  ;;  %v649_v11 = vld [vmem:[%s3079_s4 + $0x4b0] sm:$0xff] }
  0x3c   : > { %574 = vst [vmem:[%s3084_s5 + $0x128] sm:$0xff] %v573_v37  ;;  %v651_v12 = vld [vmem:[%s3079_s4 + $0x4c0] sm:$0xff]  ;;  %v653_v13 = vld [vmem:[%s3079_s4 + $0x4d0] sm:$0xff] }
  0x3d   : > { %576 = vst [vmem:[%s3084_s5 + $0x130] sm:$0xff] %v575_v38  ;;  %v655_v14 = vld [vmem:[%s3079_s4 + $0x4e0] sm:$0xff]  ;;  %v657_v15 = vld [vmem:[%s3079_s4 + $0x4f0] sm:$0xff] }
  0x3e   : > { %578 = vst [vmem:[%s3084_s5 + $0x138] sm:$0xff] %v577_v39  ;;  %v659_v16 = vld [vmem:[%s3079_s4 + $0x500] sm:$0xff]  ;;  %v661_v17 = vld [vmem:[%s3079_s4 + $0x510] sm:$0xff] }
  0x3f   : > { %580 = vst [vmem:[%s3084_s5 + $0x140] sm:$0xff] %v579_v40  ;;  %v663_v18 = vld [vmem:[%s3079_s4 + $0x520] sm:$0xff]  ;;  %v665_v19 = vld [vmem:[%s3079_s4 + $0x530] sm:$0xff] }
  0x40   : > { %582 = vst [vmem:[%s3084_s5 + $0x148] sm:$0xff] %v581_v41  ;;  %v667_v20 = vld [vmem:[%s3079_s4 + $0x540] sm:$0xff]  ;;  %v669_v21 = vld [vmem:[%s3079_s4 + $0x550] sm:$0xff] }
  0x41   : > { %584 = vst [vmem:[%s3084_s5 + $0x150] sm:$0xff] %v583_v42  ;;  %v671_v22 = vld [vmem:[%s3079_s4 + $0x560] sm:$0xff]  ;;  %v673_v23 = vld [vmem:[%s3079_s4 + $0x570] sm:$0xff] }
  0x42   : > { %586 = vst [vmem:[%s3084_s5 + $0x158] sm:$0xff] %v585_v43  ;;  %v675_v24 = vld [vmem:[%s3079_s4 + $0x580] sm:$0xff]  ;;  %v677_v25 = vld [vmem:[%s3079_s4 + $0x590] sm:$0xff] }
  0x43   : > { %588 = vst [vmem:[%s3084_s5 + $0x160] sm:$0xff] %v587_v44  ;;  %v679_v26 = vld [vmem:[%s3079_s4 + $0x5a0] sm:$0xff]  ;;  %v681_v27 = vld [vmem:[%s3079_s4 + $0x5b0] sm:$0xff] }
  0x44   : > { %590 = vst [vmem:[%s3084_s5 + $0x168] sm:$0xff] %v589_v45  ;;  %v683_v28 = vld [vmem:[%s3079_s4 + $0x5c0] sm:$0xff]  ;;  %v685_v29 = vld [vmem:[%s3079_s4 + $0x5d0] sm:$0xff] }
  0x45   : > { %592 = vst [vmem:[%s3084_s5 + $0x170] sm:$0xff] %v591_v46  ;;  %v687_v30 = vld [vmem:[%s3079_s4 + $0x5e0] sm:$0xff]  ;;  %v689_v31 = vld [vmem:[%s3079_s4 + $0x5f0] sm:$0xff] }
  0x46   : > { %594 = vst [vmem:[%s3084_s5 + $0x178] sm:$0xff] %v593_v47  ;;  %v691_v32 = vld [vmem:[%s3079_s4 + $0x600] sm:$0xff]  ;;  %v693_v33 = vld [vmem:[%s3079_s4 + $0x610] sm:$0xff] }
  0x47   : > { %596 = vst [vmem:[%s3084_s5 + $0x180] sm:$0xff] %v595_v48  ;;  %v695_v34 = vld [vmem:[%s3079_s4 + $0x620] sm:$0xff]  ;;  %v697_v35 = vld [vmem:[%s3079_s4 + $0x630] sm:$0xff] }
  0x48   : > { %598 = vst [vmem:[%s3084_s5 + $0x188] sm:$0xff] %v597_v49  ;;  %v699_v36 = vld [vmem:[%s3079_s4 + $0x640] sm:$0xff]  ;;  %v701_v37 = vld [vmem:[%s3079_s4 + $0x650] sm:$0xff] }
  0x49   : > { %600 = vst [vmem:[%s3084_s5 + $0x190] sm:$0xff] %v599_v50  ;;  %v703_v38 = vld [vmem:[%s3079_s4 + $0x660] sm:$0xff]  ;;  %v705_v39 = vld [vmem:[%s3079_s4 + $0x670] sm:$0xff] }
  0x4a   : > { %602 = vst [vmem:[%s3084_s5 + $0x198] sm:$0xff] %v601_v51  ;;  %v707_v40 = vld [vmem:[%s3079_s4 + $0x680] sm:$0xff]  ;;  %v709_v41 = vld [vmem:[%s3079_s4 + $0x690] sm:$0xff] }
  0x4b   : > { %604 = vst [vmem:[%s3084_s5 + $0x1a0] sm:$0xff] %v603_v52  ;;  %v711_v42 = vld [vmem:[%s3079_s4 + $0x6a0] sm:$0xff]  ;;  %v713_v43 = vld [vmem:[%s3079_s4 + $0x6b0] sm:$0xff] }
  0x4c   : > { %606 = vst [vmem:[%s3084_s5 + $0x1a8] sm:$0xff] %v605_v53  ;;  %v715_v44 = vld [vmem:[%s3079_s4 + $0x6c0] sm:$0xff]  ;;  %v717_v45 = vld [vmem:[%s3079_s4 + $0x6d0] sm:$0xff] }
  0x4d   : > { %608 = vst [vmem:[%s3084_s5 + $0x1b0] sm:$0xff] %v607_v54  ;;  %v719_v46 = vld [vmem:[%s3079_s4 + $0x6e0] sm:$0xff]  ;;  %v721_v47 = vld [vmem:[%s3079_s4 + $0x6f0] sm:$0xff] }
  0x4e   : > { %610 = vst [vmem:[%s3084_s5 + $0x1b8] sm:$0xff] %v609_v55  ;;  %v723_v48 = vld [vmem:[%s3079_s4 + $0x700] sm:$0xff]  ;;  %v725_v49 = vld [vmem:[%s3079_s4 + $0x710] sm:$0xff] }
  0x4f   : > { %612 = vst [vmem:[%s3084_s5 + $0x1c0] sm:$0xff] %v611_v56  ;;  %v727_v50 = vld [vmem:[%s3079_s4 + $0x720] sm:$0xff]  ;;  %v729_v51 = vld [vmem:[%s3079_s4 + $0x730] sm:$0xff] }
  0x50   : > { %614 = vst [vmem:[%s3084_s5 + $0x1c8] sm:$0xff] %v613_v57  ;;  %v731_v52 = vld [vmem:[%s3079_s4 + $0x740] sm:$0xff]  ;;  %v733_v53 = vld [vmem:[%s3079_s4 + $0x750] sm:$0xff] }
  0x51   : > { %616 = vst [vmem:[%s3084_s5 + $0x1d0] sm:$0xff] %v615_v58  ;;  %v735_v54 = vld [vmem:[%s3079_s4 + $0x760] sm:$0xff]  ;;  %v737_v55 = vld [vmem:[%s3079_s4 + $0x770] sm:$0xff] }
  0x52   : > { %618 = vst [vmem:[%s3084_s5 + $0x1d8] sm:$0xff] %v617_v59  ;;  %v739_v56 = vld [vmem:[%s3079_s4 + $0x780] sm:$0xff]  ;;  %v741_v57 = vld [vmem:[%s3079_s4 + $0x790] sm:$0xff] }
  0x53   : > { %620 = vst [vmem:[%s3084_s5 + $0x1e0] sm:$0xff] %v619_v60  ;;  %v743_v58 = vld [vmem:[%s3079_s4 + $0x7a0] sm:$0xff]  ;;  %v745_v59 = vld [vmem:[%s3079_s4 + $0x7b0] sm:$0xff] }
  0x54   : > { %622 = vst [vmem:[%s3084_s5 + $0x1e8] sm:$0xff] %v621_v61  ;;  %v747_v60 = vld [vmem:[%s3079_s4 + $0x7c0] sm:$0xff]  ;;  %v749_v61 = vld [vmem:[%s3079_s4 + $0x7d0] sm:$0xff] }
  0x55   : > { %624 = vst [vmem:[%s3084_s5 + $0x1f0] sm:$0xff] %v623_v62  ;;  %v751_v62 = vld [vmem:[%s3079_s4 + $0x7e0] sm:$0xff] }
  0x56   : > { %626 = vst [vmem:[%s3084_s5 + $0x1f8] sm:$0xff] %v625_v63  ;;  %v753_v63 = vld [vmem:[%s3079_s4 + $0x7f0] sm:$0xff] }
  0x57   : > { %628 = vst [vmem:[%s3084_s5 + $0x200] sm:$0xff] %v627_v0  ;;  %v755_v0 = vld [vmem:[%s3079_s4 + $0x800] sm:$0xff] }
  0x58   : > { %630 = vst [vmem:[%s3084_s5 + $0x208] sm:$0xff] %v629_v1  ;;  %v757_v1 = vld [vmem:[%s3079_s4 + $0x810] sm:$0xff] }
  0x59   : > { %632 = vst [vmem:[%s3084_s5 + $0x210] sm:$0xff] %v631_v2  ;;  %v759_v2 = vld [vmem:[%s3079_s4 + $0x820] sm:$0xff] }
  0x5a   : > { %634 = vst [vmem:[%s3084_s5 + $0x218] sm:$0xff] %v633_v3  ;;  %v761_v3 = vld [vmem:[%s3079_s4 + $0x830] sm:$0xff] }
  0x5b   : > { %636 = vst [vmem:[%s3084_s5 + $0x220] sm:$0xff] %v635_v4  ;;  %v763_v4 = vld [vmem:[%s3079_s4 + $0x840] sm:$0xff] }
  0x5c   : > { %638 = vst [vmem:[%s3084_s5 + $0x228] sm:$0xff] %v637_v5  ;;  %v765_v5 = vld [vmem:[%s3079_s4 + $0x850] sm:$0xff] }
  0x5d   : > { %640 = vst [vmem:[%s3084_s5 + $0x230] sm:$0xff] %v639_v6  ;;  %v767_v6 = vld [vmem:[%s3079_s4 + $0x860] sm:$0xff] }
  0x5e   : > { %642 = vst [vmem:[%s3084_s5 + $0x238] sm:$0xff] %v641_v7  ;;  %v769_v7 = vld [vmem:[%s3079_s4 + $0x870] sm:$0xff] }
  0x5f   : > { %644 = vst [vmem:[%s3084_s5 + $0x240] sm:$0xff] %v643_v8  ;;  %v771_v8 = vld [vmem:[%s3079_s4 + $0x880] sm:$0xff] }
  0x60   : > { %646 = vst [vmem:[%s3084_s5 + $0x248] sm:$0xff] %v645_v9  ;;  %v773_v9 = vld [vmem:[%s3079_s4 + $0x890] sm:$0xff] }
  0x61   : > { %648 = vst [vmem:[%s3084_s5 + $0x250] sm:$0xff] %v647_v10  ;;  %v775_v10 = vld [vmem:[%s3079_s4 + $0x8a0] sm:$0xff] }
  0x62   : > { %650 = vst [vmem:[%s3084_s5 + $0x258] sm:$0xff] %v649_v11  ;;  %v777_v11 = vld [vmem:[%s3079_s4 + $0x8b0] sm:$0xff] }
  0x63   : > { %652 = vst [vmem:[%s3084_s5 + $0x260] sm:$0xff] %v651_v12  ;;  %v779_v12 = vld [vmem:[%s3079_s4 + $0x8c0] sm:$0xff] }
  0x64   : > { %654 = vst [vmem:[%s3084_s5 + $0x268] sm:$0xff] %v653_v13  ;;  %v781_v13 = vld [vmem:[%s3079_s4 + $0x8d0] sm:$0xff] }
  0x65   : > { %656 = vst [vmem:[%s3084_s5 + $0x270] sm:$0xff] %v655_v14  ;;  %v783_v14 = vld [vmem:[%s3079_s4 + $0x8e0] sm:$0xff] }
  0x66   : > { %658 = vst [vmem:[%s3084_s5 + $0x278] sm:$0xff] %v657_v15  ;;  %v785_v15 = vld [vmem:[%s3079_s4 + $0x8f0] sm:$0xff] }
  0x67   : > { %660 = vst [vmem:[%s3084_s5 + $0x280] sm:$0xff] %v659_v16 }
  0x68   : > { %662 = vst [vmem:[%s3084_s5 + $0x288] sm:$0xff] %v661_v17 }
  0x69   : > { %664 = vst [vmem:[%s3084_s5 + $0x290] sm:$0xff] %v663_v18 }
  0x6a   : > { %666 = vst [vmem:[%s3084_s5 + $0x298] sm:$0xff] %v665_v19 }
  0x6b   : > { %668 = vst [vmem:[%s3084_s5 + $0x2a0] sm:$0xff] %v667_v20 }
  0x6c   : > { %670 = vst [vmem:[%s3084_s5 + $0x2a8] sm:$0xff] %v669_v21 }
  0x6d   : > { %672 = vst [vmem:[%s3084_s5 + $0x2b0] sm:$0xff] %v671_v22 }
  0x6e   : > { %674 = vst [vmem:[%s3084_s5 + $0x2b8] sm:$0xff] %v673_v23 }
  0x6f   : > { %676 = vst [vmem:[%s3084_s5 + $0x2c0] sm:$0xff] %v675_v24 }
  0x70   : > { %678 = vst [vmem:[%s3084_s5 + $0x2c8] sm:$0xff] %v677_v25 }
  0x71   : > { %680 = vst [vmem:[%s3084_s5 + $0x2d0] sm:$0xff] %v679_v26 }
  0x72   : > { %682 = vst [vmem:[%s3084_s5 + $0x2d8] sm:$0xff] %v681_v27 }
  0x73   : > { %684 = vst [vmem:[%s3084_s5 + $0x2e0] sm:$0xff] %v683_v28 }
  0x74   : > { %686 = vst [vmem:[%s3084_s5 + $0x2e8] sm:$0xff] %v685_v29 }
  0x75   : > { %688 = vst [vmem:[%s3084_s5 + $0x2f0] sm:$0xff] %v687_v30 }
  0x76   : > { %690 = vst [vmem:[%s3084_s5 + $0x2f8] sm:$0xff] %v689_v31 }
  0x77   : > { %692 = vst [vmem:[%s3084_s5 + $0x300] sm:$0xff] %v691_v32 }
  0x78   : > { %694 = vst [vmem:[%s3084_s5 + $0x308] sm:$0xff] %v693_v33 }
  0x79   : > { %696 = vst [vmem:[%s3084_s5 + $0x310] sm:$0xff] %v695_v34 }
  0x7a   : > { %698 = vst [vmem:[%s3084_s5 + $0x318] sm:$0xff] %v697_v35 }
  0x7b   : > { %700 = vst [vmem:[%s3084_s5 + $0x320] sm:$0xff] %v699_v36 }
  0x7c   : > { %702 = vst [vmem:[%s3084_s5 + $0x328] sm:$0xff] %v701_v37 }
  0x7d   : > { %704 = vst [vmem:[%s3084_s5 + $0x330] sm:$0xff] %v703_v38 }
  0x7e   : > { %706 = vst [vmem:[%s3084_s5 + $0x338] sm:$0xff] %v705_v39 }
  0x7f   : > { %708 = vst [vmem:[%s3084_s5 + $0x340] sm:$0xff] %v707_v40 }
  0x80   : > { %710 = vst [vmem:[%s3084_s5 + $0x348] sm:$0xff] %v709_v41 }
  0x81   : > { %712 = vst [vmem:[%s3084_s5 + $0x350] sm:$0xff] %v711_v42 }
  0x82   : > { %714 = vst [vmem:[%s3084_s5 + $0x358] sm:$0xff] %v713_v43 }
  0x83   : > { %716 = vst [vmem:[%s3084_s5 + $0x360] sm:$0xff] %v715_v44 }
  0x84   : > { %718 = vst [vmem:[%s3084_s5 + $0x368] sm:$0xff] %v717_v45 }
  0x85   : > { %720 = vst [vmem:[%s3084_s5 + $0x370] sm:$0xff] %v719_v46 }
  0x86   : > { %722 = vst [vmem:[%s3084_s5 + $0x378] sm:$0xff] %v721_v47 }
  0x87   : > { %724 = vst [vmem:[%s3084_s5 + $0x380] sm:$0xff] %v723_v48 }
  0x88   : > { %726 = vst [vmem:[%s3084_s5 + $0x388] sm:$0xff] %v725_v49 }
  0x89   : > { %728 = vst [vmem:[%s3084_s5 + $0x390] sm:$0xff] %v727_v50 }
  0x8a   : > { %730 = vst [vmem:[%s3084_s5 + $0x398] sm:$0xff] %v729_v51 }
  0x8b   : > { %732 = vst [vmem:[%s3084_s5 + $0x3a0] sm:$0xff] %v731_v52 }
  0x8c   : > { %734 = vst [vmem:[%s3084_s5 + $0x3a8] sm:$0xff] %v733_v53 }
  0x8d   : > { %736 = vst [vmem:[%s3084_s5 + $0x3b0] sm:$0xff] %v735_v54 }
  0x8e   : > { %738 = vst [vmem:[%s3084_s5 + $0x3b8] sm:$0xff] %v737_v55 }
  0x8f   : > { %740 = vst [vmem:[%s3084_s5 + $0x3c0] sm:$0xff] %v739_v56 }
  0x90   : > { %742 = vst [vmem:[%s3084_s5 + $0x3c8] sm:$0xff] %v741_v57 }
  0x91   : > { %744 = vst [vmem:[%s3084_s5 + $0x3d0] sm:$0xff] %v743_v58 }
  0x92   : > { %746 = vst [vmem:[%s3084_s5 + $0x3d8] sm:$0xff] %v745_v59 }
  0x93   : > { %748 = vst [vmem:[%s3084_s5 + $0x3e0] sm:$0xff] %v747_v60 }
  0x94   : > { %750 = vst [vmem:[%s3084_s5 + $0x3e8] sm:$0xff] %v749_v61 }
  0x95   : > { %752 = vst [vmem:[%s3084_s5 + $0x3f0] sm:$0xff] %v751_v62 }
  0x96   : > { %754 = vst [vmem:[%s3084_s5 + $0x3f8] sm:$0xff] %v753_v63 }
  0x97   : > { %756 = vst [vmem:[%s3084_s5 + $0x400] sm:$0xff] %v755_v0 }
  0x98   : > { %758 = vst [vmem:[%s3084_s5 + $0x408] sm:$0xff] %v757_v1 }
  0x99   : > { %760 = vst [vmem:[%s3084_s5 + $0x410] sm:$0xff] %v759_v2 }
  0x9a   : > { %762 = vst [vmem:[%s3084_s5 + $0x418] sm:$0xff] %v761_v3 }
  0x9b   : > { %764 = vst [vmem:[%s3084_s5 + $0x420] sm:$0xff] %v763_v4 }
  0x9c   : > { %766 = vst [vmem:[%s3084_s5 + $0x428] sm:$0xff] %v765_v5 }
  0x9d   : > { %768 = vst [vmem:[%s3084_s5 + $0x430] sm:$0xff] %v767_v6 }
  0x9e   : > { %770 = vst [vmem:[%s3084_s5 + $0x438] sm:$0xff] %v769_v7 }
  0x9f   : > { %772 = vst [vmem:[%s3084_s5 + $0x440] sm:$0xff] %v771_v8 }
  0xa0   : > { %774 = vst [vmem:[%s3084_s5 + $0x448] sm:$0xff] %v773_v9 }
  0xa1   : > { %776 = vst [vmem:[%s3084_s5 + $0x450] sm:$0xff] %v775_v10 }
  0xa2   : > { %778 = vst [vmem:[%s3084_s5 + $0x458] sm:$0xff] %v777_v11 }
  0xa3   : > { %780 = vst [vmem:[%s3084_s5 + $0x460] sm:$0xff] %v779_v12 }
  0xa4   : > { %782 = vst [vmem:[%s3084_s5 + $0x468] sm:$0xff] %v781_v13 }
  0xa5   : > { %784 = vst [vmem:[%s3084_s5 + $0x470] sm:$0xff] %v783_v14 }
  0xa6   : > { %786 = vst [vmem:[%s3084_s5 + $0x478] sm:$0xff] %v785_v15 }
  0xa7 PF: > { %p2130_p11 = scmp.ge.s32.totalorder %s2995_s17, 1  ;;  %p799_p12 = scmp.lt.s32.totalorder %s2995_s17, 3 }
  0xa9   : > { %p800_p13 = pnand %p2130_p11, %p799_p12 }
  0xaa   : > { %s3374_s6 = sand.u32 (!%p800_p13), 1, %s2979_s13   ;;  %s2132_s19 = sshll.u32 (!%p800_p13), %s2987_s15, 1 }
  0xab   : > { %803 = sbr.rel (%p800_p13) target bundleno = 476 (0x1dc), region = 66  ;;  %p853_p0 = scmp.lt.s32.totalorder (!%p800_p13), %s2132_s19, 3 }
  0xac   : > { %s2861_s7 = smul.u32 (!%p800_p13), 1152, %s3374_s6  ;;  %s2131_s27 = sshll.u32 (!%p800_p13), %s3374_s6, 2 }
  0xad   : > { %s2859_s28 = sshll.u32 (!%p800_p13), %s2987_s15, 2  ;;  %s840_s5 = scalar_lea.vmem (!%p800_p13), [#allocation3], %s2131_s27 }
  0xae   : > { %s3377_s8 = scalar_lea.vmem (!%p800_p13), [#allocation2], %s2861_s7  ;;  %s2009_s4 = scalar_lea.hbm (!%p800_p13), %s3755_s3, %s2859_s28 }
  0xaf   : > { %s2011_s7 = sshll.u32 (!%p800_p13), %s840_s5, 4  ;;  %s1996_s15 = scalar_lea.sflag (!%p800_p13), [#allocation4], %s3374_s6  ;;  %s2012_s7 = int_to_ptr.vmem [resolvable:$true] %s2011_s7 }
  0xb0   : > { %v2191_v16 = vld [vmem:[%s3377_s8 + $0x70] sm:$0xf]  ;;  %v2730_v17 = vld [vmem:[%s3377_s8 + $0x74] sm:$0xf0]  ;;  %v2183_v25 = vld [vmem:[%s3377_s8 + $0x60] sm:$0xf] }
  0xb1   : > { %v2255_v18 = vld [vmem:[%s3377_s8 + $0xf0] sm:$0xf]  ;;  %v2192_v19 = vor.u32 %v2730_v17, %v2191_v16  ;;  %v2746_v20 = vld [vmem:[%s3377_s8 + $0xf4] sm:$0xf0]  ;;  %v2728_v26 = vld [vmem:[%s3377_s8 + $0x64] sm:$0xf0] }
  0xb2   : > { %v2319_v21 = vld [vmem:[%s3377_s8 + $0x170] sm:$0xf]  ;;  %v2762_v22 = vld [vmem:[%s3377_s8 + $0x174] sm:$0xf0]  ;;  %v2256_v23 = vor.u32 %v2746_v20, %v2255_v18  ;;  %v2247_v27 = vld [vmem:[%s3377_s8 + $0xe0] sm:$0xf]  ;;  %v2184_v28 = vor.u32 %v2728_v26, %v2183_v25 }
  0xb3   : > { %v2320_v24 = vor.u32 %v2762_v22, %v2319_v21  ;;  %1752 = vmatpush.bf16.msra.mxu0 %v2192_v19  ;;  %v2744_v29 = vld [vmem:[%s3377_s8 + $0xe4] sm:$0xf0]  ;;  %v2383_v30 = vld [vmem:[%s3377_s8 + $0x1f0] sm:$0xf]  ;;  %v2778_v31 = vld [vmem:[%s3377_s8 + $0x1f4] sm:$0xf0] }
  0xb4   : > { %1765 = vmatpush.bf16.msra.mxu1 %v2256_v23  ;;  %v2248_v32 = vor.u32 %v2744_v29, %v2247_v27  ;;  %v2384_v33 = vor.u32 %v2778_v31, %v2383_v30  ;;  %v2311_v34 = vld [vmem:[%s3377_s8 + $0x160] sm:$0xf]  ;;  %v2760_v35 = vld [vmem:[%s3377_s8 + $0x164] sm:$0xf0]  ;;  %v2175_v36 = vld [vmem:[%s3377_s8 + $0x50] sm:$0xf] }
  0xb5   : > { %1778 = vmatpush.bf16.msra.mxu2 %v2320_v24  ;;  %v2312_v37 = vor.u32 %v2760_v35, %v2311_v34  ;;  %v2726_v38 = vld [vmem:[%s3377_s8 + $0x54] sm:$0xf0]  ;;  %v2239_v39 = vld [vmem:[%s3377_s8 + $0xd0] sm:$0xf]  ;;  %v2375_v41 = vld [vmem:[%s3377_s8 + $0x1e0] sm:$0xf] }
  0xb6   : > { %v2742_v40 = vld [vmem:[%s3377_s8 + $0xd4] sm:$0xf0]  ;;  %1791 = vmatpush.bf16.msra.mxu3 %v2384_v33  ;;  %v2776_v42 = vld [vmem:[%s3377_s8 + $0x1e4] sm:$0xf0]  ;;  %v2303_v43 = vld [vmem:[%s3377_s8 + $0x150] sm:$0xf]  ;;  %v2176_v44 = vor.u32 %v2726_v38, %v2175_v36 }
  0xb7   : > { %1753 = vmatpush.bf16.msra.mxu0 %v2184_v28  ;;  %v2376_v45 = vor.u32 %v2776_v42, %v2375_v41  ;;  %v2758_v46 = vld [vmem:[%s3377_s8 + $0x154] sm:$0xf0]  ;;  %v2167_v47 = vld [vmem:[%s3377_s8 + $0x40] sm:$0xf]  ;;  %v2724_v48 = vld [vmem:[%s3377_s8 + $0x44] sm:$0xf0]  ;;  %v2240_v49 = vor.u32 %v2742_v40, %v2239_v39 }
  0xb8   : > { %1766 = vmatpush.bf16.msra.mxu1 %v2248_v32  ;;  %v2304_v50 = vor.u32 %v2758_v46, %v2303_v43  ;;  %v2231_v51 = vld [vmem:[%s3377_s8 + $0xc0] sm:$0xf]  ;;  %v2740_v52 = vld [vmem:[%s3377_s8 + $0xc4] sm:$0xf0]  ;;  %v2367_v53 = vld [vmem:[%s3377_s8 + $0x1d0] sm:$0xf]  ;;  %v2168_v58 = vor.u32 %v2724_v48, %v2167_v47 }
  0xb9   : > { %1779 = vmatpush.bf16.msra.mxu2 %v2312_v37  ;;  %v2774_v54 = vld [vmem:[%s3377_s8 + $0x1d4] sm:$0xf0]  ;;  %v2295_v55 = vld [vmem:[%s3377_s8 + $0x140] sm:$0xf]  ;;  %v2756_v56 = vld [vmem:[%s3377_s8 + $0x144] sm:$0xf0]  ;;  %v2232_v61 = vor.u32 %v2740_v52, %v2231_v51 }
  0xba   : > { %1792 = vmatpush.bf16.msra.mxu3 %v2376_v45  ;;  %v2368_v57 = vor.u32 %v2774_v54, %v2367_v53  ;;  %v2359_v59 = vld [vmem:[%s3377_s8 + $0x1c0] sm:$0xf]  ;;  %v2772_v60 = vld [vmem:[%s3377_s8 + $0x1c4] sm:$0xf0]  ;;  %v2296_v62 = vor.u32 %v2756_v56, %v2295_v55  ;;  %v2159_v63 = vld [vmem:[%s3377_s8 + $0x30] sm:$0xf] }
  0xbb   : > { %1754 = vmatpush.bf16.msra.mxu0 %v2176_v44  ;;  %v2722_v0 = vld [vmem:[%s3377_s8 + $0x34] sm:$0xf0]  ;;  %v2223_v1 = vld [vmem:[%s3377_s8 + $0xb0] sm:$0xf]  ;;  %v2360_v5 = vor.u32 %v2772_v60, %v2359_v59  ;;  %v2151_v11 = vld [vmem:[%s3377_s8 + $0x20] sm:$0xf] }
  0xbc   : > { %1767 = vmatpush.bf16.msra.mxu1 %v2240_v49  ;;  %v2738_v2 = vld [vmem:[%s3377_s8 + $0xb4] sm:$0xf0]  ;;  %v2287_v3 = vld [vmem:[%s3377_s8 + $0x130] sm:$0xf]  ;;  %v2160_v6 = vor.u32 %v2722_v0, %v2159_v63  ;;  %v2720_v12 = vld [vmem:[%s3377_s8 + $0x24] sm:$0xf0] }
  0xbd   : > { %1780 = vmatpush.bf16.msra.mxu2 %v2304_v50  ;;  %v2754_v4 = vld [vmem:[%s3377_s8 + $0x134] sm:$0xf0]  ;;  %v2351_v7 = vld [vmem:[%s3377_s8 + $0x1b0] sm:$0xf]  ;;  %v2224_v9 = vor.u32 %v2738_v2, %v2223_v1  ;;  %v2215_v13 = vld [vmem:[%s3377_s8 + $0xa0] sm:$0xf]  ;;  %v2152_v18 = vor.u32 %v2720_v12, %v2151_v11 }
  0xbe   : > { %1793 = vmatpush.bf16.msra.mxu3 %v2368_v57  ;;  %v2770_v8 = vld [vmem:[%s3377_s8 + $0x1b4] sm:$0xf0]  ;;  %v2288_v10 = vor.u32 %v2754_v4, %v2287_v3  ;;  %v2736_v14 = vld [vmem:[%s3377_s8 + $0xa4] sm:$0xf0]  ;;  %v2279_v15 = vld [vmem:[%s3377_s8 + $0x120] sm:$0xf] }
  0xbf   : > { %1755 = vmatpush.bf16.msra.mxu0 %v2168_v58  ;;  %v2752_v16 = vld [vmem:[%s3377_s8 + $0x124] sm:$0xf0]  ;;  %v2352_v17 = vor.u32 %v2770_v8, %v2351_v7  ;;  %v2343_v19 = vld [vmem:[%s3377_s8 + $0x1a0] sm:$0xf]  ;;  %v2216_v21 = vor.u32 %v2736_v14, %v2215_v13  ;;  %v2143_v23 = vld [vmem:[%s3377_s8 + $0x10] sm:$0xf] }
  0xc0   : > { %1768 = vmatpush.bf16.msra.mxu1 %v2232_v61  ;;  %v2768_v20 = vld [vmem:[%s3377_s8 + $0x1a4] sm:$0xf0]  ;;  %v2280_v22 = vor.u32 %v2752_v16, %v2279_v15  ;;  %v2718_v24 = vld [vmem:[%s3377_s8 + $0x14] sm:$0xf0]  ;;  %v2207_v25 = vld [vmem:[%s3377_s8 + $0x90] sm:$0xf] }
  0xc1   : > { %1781 = vmatpush.bf16.msra.mxu2 %v2296_v62  ;;  %v2734_v26 = vld [vmem:[%s3377_s8 + $0x94] sm:$0xf0]  ;;  %v2271_v27 = vld [vmem:[%s3377_s8 + $0x110] sm:$0xf]  ;;  %v2344_v29 = vor.u32 %v2768_v20, %v2343_v19  ;;  %v2135_v30 = vld [vmem:[%s3377_s8] sm:$0xf]  ;;  %v2144_v31 = vor.u32 %v2718_v24, %v2143_v23 }
  0xc2   : > { %1794 = vmatpush.bf16.msra.mxu3 %v2360_v5  ;;  %v2750_v28 = vld [vmem:[%s3377_s8 + $0x114] sm:$0xf0]  ;;  %v2716_v32 = vld [vmem:[%s3377_s8 + $0x4] sm:$0xf0]  ;;  %v2335_v33 = vld [vmem:[%s3377_s8 + $0x190] sm:$0xf]  ;;  %v2208_v35 = vor.u32 %v2734_v26, %v2207_v25 }
  0xc3   : > { %1756 = vmatpush.bf16.msra.mxu0 %v2160_v6  ;;  %v2766_v34 = vld [vmem:[%s3377_s8 + $0x194] sm:$0xf0]  ;;  %v2272_v36 = vor.u32 %v2750_v28, %v2271_v27  ;;  %v2199_v37 = vld [vmem:[%s3377_s8 + $0x80] sm:$0xf]  ;;  %v2732_v38 = vld [vmem:[%s3377_s8 + $0x84] sm:$0xf0]  ;;  %v2136_v47 = vor.u32 %v2716_v32, %v2135_v30 }
  0xc4   : > { %1769 = vmatpush.bf16.msra.mxu1 %v2224_v9  ;;  %v2447_v39 = vld [vmem:[%s3377_s8 + $0x270] sm:$0xf]  ;;  %v2794_v40 = vld [vmem:[%s3377_s8 + $0x274] sm:$0xf0]  ;;  %v2336_v43 = vor.u32 %v2766_v34, %v2335_v33  ;;  %v2263_v44 = vld [vmem:[%s3377_s8 + $0x100] sm:$0xf]  ;;  %v2200_v51 = vor.u32 %v2732_v38, %v2199_v37 }
  0xc5   : > { %1782 = vmatpush.bf16.msra.mxu2 %v2288_v10  ;;  %v2511_v41 = vld [vmem:[%s3377_s8 + $0x2f0] sm:$0xf]  ;;  %v2810_v42 = vld [vmem:[%s3377_s8 + $0x2f4] sm:$0xf0]  ;;  %v2748_v45 = vld [vmem:[%s3377_s8 + $0x104] sm:$0xf0]  ;;  %v2448_v52 = vor.u32 %v2794_v40, %v2447_v39 }
  0xc6   : > { %1795 = vmatpush.bf16.msra.mxu3 %v2352_v17  ;;  %v2575_v46 = vld [vmem:[%s3377_s8 + $0x370] sm:$0xf]  ;;  %v2826_v48 = vld [vmem:[%s3377_s8 + $0x374] sm:$0xf0]  ;;  %v2327_v49 = vld [vmem:[%s3377_s8 + $0x180] sm:$0xf]  ;;  %v2512_v55 = vor.u32 %v2810_v42, %v2511_v41  ;;  %v2264_v56 = vor.u32 %v2748_v45, %v2263_v44 }
  0xc7   : > { %1757 = vmatpush.bf16.msra.mxu0 %v2152_v18  ;;  %v2764_v50 = vld [vmem:[%s3377_s8 + $0x184] sm:$0xf0]  ;;  %v2639_v53 = vld [vmem:[%s3377_s8 + $0x3f0] sm:$0xf]  ;;  %v2842_v54 = vld [vmem:[%s3377_s8 + $0x3f4] sm:$0xf0]  ;;  %v2576_v59 = vor.u32 %v2826_v48, %v2575_v46 }
  0xc8   : > { %1770 = vmatpush.bf16.msra.mxu1 %v2216_v21  ;;  %v2439_v57 = vld [vmem:[%s3377_s8 + $0x260] sm:$0xf]  ;;  %v2792_v58 = vld [vmem:[%s3377_s8 + $0x264] sm:$0xf0]  ;;  %v2328_v60 = vor.u32 %v2764_v50, %v2327_v49  ;;  %v2640_v63 = vor.u32 %v2842_v54, %v2639_v53  ;;  %v2431_v6 = vld [vmem:[%s3377_s8 + $0x250] sm:$0xf] }
  0xc9   : > { %1783 = vmatpush.bf16.msra.mxu2 %v2280_v22  ;;  %v2503_v61 = vld [vmem:[%s3377_s8 + $0x2e0] sm:$0xf]  ;;  %v2808_v62 = vld [vmem:[%s3377_s8 + $0x2e4] sm:$0xf0]  ;;  %v2440_v2 = vor.u32 %v2792_v58, %v2439_v57  ;;  %v2790_v7 = vld [vmem:[%s3377_s8 + $0x254] sm:$0xf0] }
  0xca   : > { %1796 = vmatpush.bf16.msra.mxu3 %v2344_v29  ;;  %v2567_v0 = vld [vmem:[%s3377_s8 + $0x360] sm:$0xf]  ;;  %v2824_v1 = vld [vmem:[%s3377_s8 + $0x364] sm:$0xf0]  ;;  %v2504_v5 = vor.u32 %v2808_v62, %v2503_v61  ;;  %v858_v8 = vld [vmem:[%s3752_s0] sm:$0xff]  ;;  %v2432_v15 = vor.u32 %v2790_v7, %v2431_v6  ;;  %s3766_s19 = smov (!%p853_p0, %s2132_s19), 3 }
  0xcb   : > { %1758 = vmatpush.bf16.msra.mxu0 %v2144_v31  ;;  %v2631_v3 = vld [vmem:[%s3377_s8 + $0x3e0] sm:$0xf]  ;;  %v2840_v4 = vld [vmem:[%s3377_s8 + $0x3e4] sm:$0xf0]  ;;  %v2568_v9 = vor.u32 %v2824_v1, %v2567_v0  ;;  %v2495_v10 = vld [vmem:[%s3377_s8 + $0x2d0] sm:$0xf]  ;;  %s855_s26 = scalar_lea.vmem %s3754_s2, %s3766_s19 }
  0xcc   : > { %1771 = vmatpush.bf16.msra.mxu1 %v2208_v35  ;;  %v2806_v11 = vld [vmem:[%s3377_s8 + $0x2d4] sm:$0xf0]  ;;  %1011 = vst [vmem:[#allocation1] ss:$9 sm:$0xff] %v858_v8  ;;  %v2632_v12 = vor.u32 %v2840_v4, %v2631_v3  ;;  %v2559_v13 = vld [vmem:[%s3377_s8 + $0x350] sm:$0xf] }
  0xcd   : > { %1784 = vmatpush.bf16.msra.mxu2 %v2272_v36  ;;  %v2822_v14 = vld [vmem:[%s3377_s8 + $0x354] sm:$0xf0]  ;;  %v2623_v16 = vld [vmem:[%s3377_s8 + $0x3d0] sm:$0xf]  ;;  %v2496_v18 = vor.u32 %v2806_v11, %v2495_v10  ;;  %v2423_v19 = vld [vmem:[%s3377_s8 + $0x240] sm:$0xf] }
  0xce   : > { %1797 = vmatpush.bf16.msra.mxu3 %v2336_v43  ;;  %v2838_v17 = vld [vmem:[%s3377_s8 + $0x3d4] sm:$0xf0]  ;;  %v2788_v20 = vld [vmem:[%s3377_s8 + $0x244] sm:$0xf0]  ;;  %v2560_v21 = vor.u32 %v2822_v14, %v2559_v13  ;;  %v2487_v22 = vld [vmem:[%s3377_s8 + $0x2c0] sm:$0xf] }
  0xcf   : > { %1759 = vmatpush.bf16.msra.mxu0 %v2136_v47  ;;  %v2804_v23 = vld [vmem:[%s3377_s8 + $0x2c4] sm:$0xf0]  ;;  %v2624_v24 = vor.u32 %v2838_v17, %v2623_v16  ;;  %v2551_v25 = vld [vmem:[%s3377_s8 + $0x340] sm:$0xf]  ;;  %v2415_v27 = vld [vmem:[%s3377_s8 + $0x230] sm:$0xf]  ;;  %v2424_v28 = vor.u32 %v2788_v20, %v2423_v19 }
  0xd0   : > { %1772 = vmatpush.bf16.msra.mxu1 %v2200_v51  ;;  %v2820_v26 = vld [vmem:[%s3377_s8 + $0x344] sm:$0xf0]  ;;  %v2786_v29 = vld [vmem:[%s3377_s8 + $0x234] sm:$0xf0]  ;;  %v2615_v30 = vld [vmem:[%s3377_s8 + $0x3c0] sm:$0xf]  ;;  %v2488_v32 = vor.u32 %v2804_v23, %v2487_v22 }
  0xd1   : > { %1785 = vmatpush.bf16.msra.mxu2 %v2264_v56  ;;  %v2836_v31 = vld [vmem:[%s3377_s8 + $0x3c4] sm:$0xf0]  ;;  %v2552_v36 = vor.u32 %v2820_v26, %v2551_v25  ;;  %v2479_v37 = vld [vmem:[%s3377_s8 + $0x2b0] sm:$0xf]  ;;  %v2802_v38 = vld [vmem:[%s3377_s8 + $0x2b4] sm:$0xf0]  ;;  %v2416_v43 = vor.u32 %v2786_v29, %v2415_v27 }
  0xd2   : > { %1798 = vmatpush.bf16.msra.mxu3 %v2328_v60  ;;  %v2616_v39 = vor.u32 %v2836_v31, %v2615_v30  ;;  %v2543_v40 = vld [vmem:[%s3377_s8 + $0x330] sm:$0xf]  ;;  %v2818_v41 = vld [vmem:[%s3377_s8 + $0x334] sm:$0xf0]  ;;  %v2480_v46 = vor.u32 %v2802_v38, %v2479_v37  ;;  %v2407_v47 = vld [vmem:[%s3377_s8 + $0x220] sm:$0xf] }
  0xd3   : > { %1804 = vmatpush.bf16.msrb.mxu0 %v2448_v52  ;;  %v3480_v33 = vld [vmem:[#allocation1 + $0x12] sm:$0xff]  ;;  %v3482_v34 = vld [vmem:[#allocation1] sm:$0xff]  ;;  %v3492_v42 = vld [vmem:[#allocation1 + $0x9] sm:$0xff]  ;;  %v2544_v49 = vor.u32 %v2818_v41, %v2543_v40  ;;  %vm1991_vm0 = vcmask 1041408   ;;  %s2937_s19 = scalar_lea.hbm %s3755_s3, 8 }
  0xd4   : > { %1817 = vmatpush.bf16.msrb.mxu1 %v2512_v55  ;;  %v3484_v35 = vld [vmem:[#allocation1 + $0x1b] sm:$0xff]  ;;  %1760 = vmatmul.bf16.vlgmr.msra.gmra.mxu0 %v3482_v34  ;;  %v2784_v48 = vld [vmem:[%s3377_s8 + $0x224] sm:$0xf0]  ;;  %v2471_v50 = vld [vmem:[%s3377_s8 + $0x2a0] sm:$0xf] }
  0xd5   : > { %1830 = vmatpush.bf16.msrb.mxu2 %v2576_v59  ;;  %1799 = vmatmul.bf16.vlgmr.msra.gmra.mxu3 %v3484_v35  ;;  %v2607_v44 = vld [vmem:[%s3377_s8 + $0x3b0] sm:$0xf]  ;;  %v2834_v45 = vld [vmem:[%s3377_s8 + $0x3b4] sm:$0xf0]  ;;  %v2800_v51 = vld [vmem:[%s3377_s8 + $0x2a4] sm:$0xf0]  ;;  %v2408_v55 = vor.u32 %v2784_v48, %v2407_v47 }
  0xd6   : > { %1843 = vmatpush.bf16.msrb.mxu3 %v2640_v63  ;;  %1786 = vmatmul.bf16.vlgmr.msra.gmra.mxu2 %v3480_v33  ;;  %v2608_v52 = vor.u32 %v2834_v45, %v2607_v44  ;;  %v2535_v53 = vld [vmem:[%s3377_s8 + $0x320] sm:$0xf]  ;;  %v2816_v54 = vld [vmem:[%s3377_s8 + $0x324] sm:$0xf0]  ;;  %v2399_v56 = vld [vmem:[%s3377_s8 + $0x210] sm:$0xf]  ;;  %v2472_v59 = vor.u32 %v2800_v51, %v2471_v50 }
  0xd7   : > { %1805 = vmatpush.bf16.msrb.mxu0 %v2440_v2  ;;  %1773 = vmatmul.bf16.vlgmr.msra.gmra.mxu1 %v3492_v42  ;;  %v2599_v57 = vld [vmem:[%s3377_s8 + $0x3a0] sm:$0xf]  ;;  %v2832_v58 = vld [vmem:[%s3377_s8 + $0x3a4] sm:$0xf0]  ;;  %v2782_v60 = vld [vmem:[%s3377_s8 + $0x214] sm:$0xf0]  ;;  %v2536_v63 = vor.u32 %v2816_v54, %v2535_v53 }
  0xd8   : > { %1818 = vmatpush.bf16.msrb.mxu1 %v2504_v5  ;;  %v2463_v61 = vld [vmem:[%s3377_s8 + $0x290] sm:$0xf]  ;;  %v2798_v62 = vld [vmem:[%s3377_s8 + $0x294] sm:$0xf0]  ;;  %v2600_v3 = vor.u32 %v2832_v58, %v2599_v57  ;;  %v2391_v4 = vld [vmem:[%s3377_s8 + $0x200] sm:$0xf] }
  0xd9   : > { %1831 = vmatpush.bf16.msrb.mxu2 %v2568_v9  ;;  %v2527_v0 = vld [vmem:[%s3377_s8 + $0x310] sm:$0xf]  ;;  %v2814_v1 = vld [vmem:[%s3377_s8 + $0x314] sm:$0xf0]  ;;  %v2780_v5 = vld [vmem:[%s3377_s8 + $0x204] sm:$0xf0]  ;;  %v2400_v9 = vor.u32 %v2782_v60, %v2399_v56  ;;  %v2464_v14 = vor.u32 %v2798_v62, %v2463_v61 }
  0xda   : > { %1844 = vmatpush.bf16.msrb.mxu3 %v2632_v12  ;;  %v2591_v2 = vld [vmem:[%s3377_s8 + $0x390] sm:$0xf]  ;;  %v2830_v6 = vld [vmem:[%s3377_s8 + $0x394] sm:$0xf0]  ;;  %v3518_v8 = vld [vmem:[#allocation1 + $0x24] sm:$0xff]  ;;  %v2528_v17 = vor.u32 %v2814_v1, %v2527_v0  ;;  %v2392_v25 = vor.u32 %v2780_v5, %v2391_v4 }
  0xdb   : > { %1806 = vmatpush.bf16.msrb.mxu0 %v2432_v15  ;;  %v3516_v7 = vld [vmem:[#allocation1 + $0x36] sm:$0xff]  ;;  %v2455_v10 = vld [vmem:[%s3377_s8 + $0x280] sm:$0xf]  ;;  %v3521_v11 = vld [vmem:[#allocation1 + $0x3f] sm:$0xff] }
  0xdc   : > { %1819 = vmatpush.bf16.msrb.mxu1 %v2496_v18  ;;  %v859_v12 = vld [vmem:[%s3752_s0 + $0x8] sm:$0x1]  ;;  %v3526_v13 = vld [vmem:[#allocation1 + $0x2d] sm:$0xff]  ;;  %v2703_v16 = vld [vmem:[%s3377_s8 + $0x470] sm:$0xf] }
  0xdd   : > { %1832 = vmatpush.bf16.msrb.mxu2 %v2560_v21  ;;  %v2796_v15 = vld [vmem:[%s3377_s8 + $0x284] sm:$0xf0]  ;;  %1021 = vst [vmem:[#allocation1] ss:$9 sm:$0xff] %v859_v12  ;;  %v2858_v18 = vld [vmem:[%s3377_s8 + $0x474] sm:$0xf0]  ;;  %v2592_v21 = vor.u32 %v2830_v6, %v2591_v2 }
  0xde   : > { %1845 = vmatpush.bf16.msrb.mxu3 %v2624_v24  ;;  %v2729_v19 = vld [vmem:[%s3377_s8 + $0x74] sm:$0xf]  ;;  %v2193_v20 = vld [vmem:[%s3377_s8 + $0x78] sm:$0xf0]  ;;  %v2519_v22 = vld [vmem:[%s3377_s8 + $0x300] sm:$0xf]  ;;  %v2456_v29 = vor.u32 %v2796_v15, %v2455_v10  ;;  %v2704_v30 = vor.u32 %v2858_v18, %v2703_v16 }
  0xdf   : > { %1807 = vmatpush.bf16.msrb.mxu0 %v2424_v28  ;;  %v2812_v23 = vld [vmem:[%s3377_s8 + $0x304] sm:$0xf0]  ;;  %v2745_v24 = vld [vmem:[%s3377_s8 + $0xf4] sm:$0xf]  ;;  %v2257_v26 = vld [vmem:[%s3377_s8 + $0xf8] sm:$0xf0] }
  0xe0   : > { %1820 = vmatpush.bf16.msrb.mxu1 %v2488_v32  ;;  %v2583_v27 = vld [vmem:[%s3377_s8 + $0x380] sm:$0xf]  ;;  %v2828_v28 = vld [vmem:[%s3377_s8 + $0x384] sm:$0xf0]  ;;  %v2761_v31 = vld [vmem:[%s3377_s8 + $0x174] sm:$0xf]  ;;  %v2520_v37 = vor.u32 %v2812_v23, %v2519_v22  ;;  %v2260_v40 = vor.u32 %v2745_v24, %v2257_v26 }
  0xe1   : > { %1833 = vmatpush.bf16.msrb.mxu2 %v2552_v36  ;;  %v2321_v32 = vld [vmem:[%s3377_s8 + $0x178] sm:$0xf0]  ;;  %v2196_v36 = vor.u32 %v2729_v19, %v2193_v20  ;;  %v2695_v38 = vld [vmem:[%s3377_s8 + $0x460] sm:$0xf]  ;;  %v2584_v41 = vor.u32 %v2828_v28, %v2583_v27  ;;  %v2185_v44 = vld [vmem:[%s3377_s8 + $0x68] sm:$0xf0] }
  0xe2   : > { %1846 = vmatpush.bf16.msrb.mxu3 %v2616_v39  ;;  %v2856_v39 = vld [vmem:[%s3377_s8 + $0x464] sm:$0xf0]  ;;  %v2324_v45 = vor.u32 %v2761_v31, %v2321_v32  ;;  %v2249_v47 = vld [vmem:[%s3377_s8 + $0xe8] sm:$0xf0]  ;;  %v2854_v53 = vld [vmem:[%s3377_s8 + $0x454] sm:$0xf0] }
  0xe3   : > { %1808 = vmatpush.bf16.msrb.mxu0 %v2416_v43  ;;  %v2727_v43 = vld [vmem:[%s3377_s8 + $0x64] sm:$0xf]  ;;  %v2696_v48 = vor.u32 %v2856_v39, %v2695_v38  ;;  %v2313_v50 = vld [vmem:[%s3377_s8 + $0x168] sm:$0xf0]  ;;  %v2177_v56 = vld [vmem:[%s3377_s8 + $0x58] sm:$0xf0] }
  0xe4   : > { %1821 = vmatpush.bf16.msrb.mxu1 %v2480_v46  ;;  %v2743_v46 = vld [vmem:[%s3377_s8 + $0xe4] sm:$0xf]  ;;  %v2188_v51 = vor.u32 %v2727_v43, %v2185_v44  ;;  %v2741_v58 = vld [vmem:[%s3377_s8 + $0xd4] sm:$0xf]  ;;  %v2305_v62 = vld [vmem:[%s3377_s8 + $0x158] sm:$0xf0] }
  0xe5   : > { %1834 = vmatpush.bf16.msrb.mxu2 %v2544_v49  ;;  %v2759_v49 = vld [vmem:[%s3377_s8 + $0x164] sm:$0xf]  ;;  %v2252_v54 = vor.u32 %v2743_v46, %v2249_v47  ;;  %v2757_v61 = vld [vmem:[%s3377_s8 + $0x154] sm:$0xf]  ;;  %v2679_v0 = vld [vmem:[%s3377_s8 + $0x440] sm:$0xf] }
  0xe6   : > { %1847 = vmatpush.bf16.msrb.mxu3 %v2608_v52  ;;  %v2687_v52 = vld [vmem:[%s3377_s8 + $0x450] sm:$0xf]  ;;  %v2316_v57 = vor.u32 %v2759_v49, %v2313_v50  ;;  %v2852_v1 = vld [vmem:[%s3377_s8 + $0x444] sm:$0xf0]  ;;  %v2169_v4 = vld [vmem:[%s3377_s8 + $0x48] sm:$0xf0]  ;;  %v2308_v5 = vor.u32 %v2757_v61, %v2305_v62 }
  0xe7   : > { %1809 = vmatpush.bf16.msrb.mxu0 %v2408_v55  ;;  %v2725_v55 = vld [vmem:[%s3377_s8 + $0x54] sm:$0xf]  ;;  %v2688_v60 = vor.u32 %v2854_v53, %v2687_v52  ;;  %v2739_v6 = vld [vmem:[%s3377_s8 + $0xc4] sm:$0xf]  ;;  %v2680_v10 = vor.u32 %v2852_v1, %v2679_v0  ;;  %v2671_v16 = vld [vmem:[%s3377_s8 + $0x430] sm:$0xf] }
  0xe8   : > { %1822 = vmatpush.bf16.msrb.mxu1 %v2472_v59  ;;  %v2241_v59 = vld [vmem:[%s3377_s8 + $0xd8] sm:$0xf0]  ;;  %v2755_v12 = vld [vmem:[%s3377_s8 + $0x144] sm:$0xf]  ;;  %v2721_v19 = vld [vmem:[%s3377_s8 + $0x34] sm:$0xf] }
  0xe9   : > { %1835 = vmatpush.bf16.msrb.mxu2 %v2536_v63  ;;  %v2180_v63 = vor.u32 %v2725_v55, %v2177_v56  ;;  %v2244_v2 = vor.u32 %v2741_v58, %v2241_v59  ;;  %v2161_v20 = vld [vmem:[%s3377_s8 + $0x38] sm:$0xf0]  ;;  %v2737_v22 = vld [vmem:[%s3377_s8 + $0xb4] sm:$0xf]  ;;  %v2663_v28 = vld [vmem:[%s3377_s8 + $0x420] sm:$0xf] }
  0xea   : > { %1848 = vmatpush.bf16.msrb.mxu3 %v2600_v3  ;;  %v2723_v3 = vld [vmem:[%s3377_s8 + $0x44] sm:$0xf]  ;;  %v2225_v23 = vld [vmem:[%s3377_s8 + $0xb8] sm:$0xf0]  ;;  %v2164_v27 = vor.u32 %v2721_v19, %v2161_v20  ;;  %v2153_v32 = vld [vmem:[%s3377_s8 + $0x28] sm:$0xf0] }
  0xeb   : > { %1810 = vmatpush.bf16.msrb.mxu0 %v2400_v9  ;;  %v2233_v9 = vld [vmem:[%s3377_s8 + $0xc8] sm:$0xf0]  ;;  %v2172_v15 = vor.u32 %v2723_v3, %v2169_v4  ;;  %v2289_v26 = vld [vmem:[%s3377_s8 + $0x138] sm:$0xf0]  ;;  %v2719_v31 = vld [vmem:[%s3377_s8 + $0x24] sm:$0xf] }
  0xec   : > { %1823 = vmatpush.bf16.msrb.mxu1 %v2464_v14  ;;  %v2297_v14 = vld [vmem:[%s3377_s8 + $0x148] sm:$0xf0]  ;;  %v2236_v18 = vor.u32 %v2739_v6, %v2233_v9  ;;  %v2156_v43 = vor.u32 %v2719_v31, %v2153_v32  ;;  %v2655_v44 = vld [vmem:[%s3377_s8 + $0x410] sm:$0xf]  ;;  %v2717_v47 = vld [vmem:[%s3377_s8 + $0x14] sm:$0xf] }
  0xed   : > { %1836 = vmatpush.bf16.msrb.mxu2 %v2528_v17  ;;  %v2850_v17 = vld [vmem:[%s3377_s8 + $0x434] sm:$0xf0]  ;;  %v2217_v38 = vld [vmem:[%s3377_s8 + $0xa8] sm:$0xf0]  ;;  %v2733_v50 = vld [vmem:[%s3377_s8 + $0x94] sm:$0xf] }
  0xee   : > { %1849 = vmatpush.bf16.msrb.mxu3 %v2592_v21  ;;  %v2300_v21 = vor.u32 %v2755_v12, %v2297_v14  ;;  %v2672_v24 = vor.u32 %v2850_v17, %v2671_v16  ;;  %v2647_v53 = vld [vmem:[%s3377_s8 + $0x400] sm:$0xf]  ;;  %v2273_v55 = vld [vmem:[%s3377_s8 + $0x118] sm:$0xf0]  ;;  %v2715_v58 = vld [vmem:[%s3377_s8 + $0x4] sm:$0xf] }
  0xef   : > { %1811 = vmatpush.bf16.msrb.mxu0 %v2392_v25  ;;  %v2753_v25 = vld [vmem:[%s3377_s8 + $0x134] sm:$0xf]  ;;  %v2137_v59 = vld [vmem:[%s3377_s8 + $0x8] sm:$0xf0]  ;;  %v2385_v62 = vld [vmem:[%s3377_s8 + $0x1f8] sm:$0xf0] }
  0xf0   : > { %1824 = vmatpush.bf16.msrb.mxu1 %v2456_v29  ;;  %v2848_v29 = vld [vmem:[%s3377_s8 + $0x424] sm:$0xf0]  ;;  %v2777_v61 = vld [vmem:[%s3377_s8 + $0x1f4] sm:$0xf]  ;;  %v2449_v1 = vld [vmem:[%s3377_s8 + $0x278] sm:$0xf0]  ;;  %v2140_v9 = vor.u32 %v2715_v58, %v2137_v59 }
  0xf1   : > { %1837 = vmatpush.bf16.msrb.mxu2 %v2520_v37  ;;  %v2735_v37 = vld [vmem:[%s3377_s8 + $0xa4] sm:$0xf]  ;;  %v2664_v39 = vor.u32 %v2848_v29, %v2663_v28  ;;  %v2201_v3 = vld [vmem:[%s3377_s8 + $0x88] sm:$0xf0]  ;;  %v2513_v6 = vld [vmem:[%s3377_s8 + $0x2f8] sm:$0xf0] }
  0xf2   : > { %1850 = vmatpush.bf16.msrb.mxu3 %v2584_v41  ;;  %1812 = vmatmul.bf16.vlgmr.msrb.gmra.mxu0 %v3518_v8  ;;  %v2281_v41 = vld [vmem:[%s3377_s8 + $0x128] sm:$0xf0]  ;;  %v2220_v46 = vor.u32 %v2735_v37, %v2217_v38  ;;  %v2747_v12 = vld [vmem:[%s3377_s8 + $0x104] sm:$0xf]  ;;  %v2825_v19 = vld [vmem:[%s3377_s8 + $0x374] sm:$0xf] }
  0xf3   : > { %1856 = vmatpush.bf16.msra.mxu0 %v2704_v30  ;;  %1825 = vmatmul.bf16.vlgmr.msrb.gmra.mxu1 %v3526_v13  ;;  %v2228_v30 = vor.u32 %v2737_v22, %v2225_v23  ;;  %v2265_v14 = vld [vmem:[%s3377_s8 + $0x108] sm:$0xf0]  ;;  %v2577_v20 = vld [vmem:[%s3377_s8 + $0x378] sm:$0xf0]  ;;  %v2791_v22 = vld [vmem:[%s3377_s8 + $0x264] sm:$0xf] }
  0xf4   : > { %1869 = vmatpush.bf16.msra.mxu1 %v2196_v36  ;;  %1838 = vmatmul.bf16.vlgmr.msrb.gmra.mxu2 %v3516_v7  ;;  %v2292_v36 = vor.u32 %v2753_v25, %v2289_v26  ;;  %v2441_v23 = vld [vmem:[%s3377_s8 + $0x268] sm:$0xf0]  ;;  %v2268_v25 = vor.u32 %v2747_v12, %v2265_v14  ;;  %v2807_v26 = vld [vmem:[%s3377_s8 + $0x2e4] sm:$0xf]  ;;  %v2580_v29 = vor.u32 %v2825_v19, %v2577_v20  ;;  %v2369_v32 = vld [vmem:[%s3377_s8 + $0x1d8] sm:$0xf0] }
  0xf5   : > { %1882 = vmatpush.bf16.msra.mxu2 %v2260_v40  ;;  %1851 = vmatmul.bf16.vlgmr.msrb.gmra.mxu3 %v3521_v11  ;;  %v2751_v40 = vld [vmem:[%s3377_s8 + $0x124] sm:$0xf]  ;;  %v2444_v31 = vor.u32 %v2791_v22, %v2441_v23  ;;  %v2569_v37 = vld [vmem:[%s3377_s8 + $0x368] sm:$0xf0]  ;;  %v2353_v58 = vld [vmem:[%s3377_s8 + $0x1b8] sm:$0xf0] }
  0xf6   : > { %1895 = vmatpush.bf16.msra.mxu3 %v2324_v45  ;;  %v2846_v45 = vld [vmem:[%s3377_s8 + $0x414] sm:$0xf0]  ;;  %v2284_v49 = vor.u32 %v2751_v40, %v2281_v41  ;;  %v2433_v40 = vld [vmem:[%s3377_s8 + $0x258] sm:$0xf0]  ;;  %v2805_v41 = vld [vmem:[%s3377_s8 + $0x2d4] sm:$0xf] }
  0xf7   : > { %1857 = vmatpush.bf16.msra.mxu0 %v2696_v48  ;;  %v2145_v48 = vld [vmem:[%s3377_s8 + $0x18] sm:$0xf0]  ;;  %v2656_v52 = vor.u32 %v2846_v45, %v2655_v44  ;;  %v2819_v59 = vld [vmem:[%s3377_s8 + $0x344] sm:$0xf]  ;;  %v2409_v14 = vld [vmem:[%s3377_s8 + $0x228] sm:$0xf0] }
  0xf8   : > { %1870 = vmatpush.bf16.msra.mxu1 %v2188_v51  ;;  %v2209_v51 = vld [vmem:[%s3377_s8 + $0x98] sm:$0xf0]  ;;  %v2148_v56 = vor.u32 %v2717_v47, %v2145_v48  ;;  %v2361_v48 = vld [vmem:[%s3377_s8 + $0x1c8] sm:$0xf0]  ;;  %v2783_v12 = vld [vmem:[%s3377_s8 + $0x224] sm:$0xf] }
  0xf9   : > { %1883 = vmatpush.bf16.msra.mxu2 %v2252_v54  ;;  %v2749_v54 = vld [vmem:[%s3377_s8 + $0x114] sm:$0xf]  ;;  %v2412_v20 = vor.u32 %v2783_v12, %v2409_v14  ;;  %v2815_v22 = vld [vmem:[%s3377_s8 + $0x324] sm:$0xf]  ;;  %v2537_v23 = vld [vmem:[%s3377_s8 + $0x328] sm:$0xf0] }
  0xfa   : > { %1896 = vmatpush.bf16.msra.mxu3 %v2316_v57  ;;  %v2844_v57 = vld [vmem:[%s3377_s8 + $0x404] sm:$0xf0]  ;;  %v2276_v0 = vor.u32 %v2749_v54, %v2273_v55  ;;  %v2489_v54 = vld [vmem:[%s3377_s8 + $0x2c8] sm:$0xf0]  ;;  %v2765_v19 = vld [vmem:[%s3377_s8 + $0x194] sm:$0xf] }
  0xfb   : > { %1858 = vmatpush.bf16.msra.mxu0 %v2688_v60  ;;  %v2212_v60 = vor.u32 %v2733_v50, %v2209_v51  ;;  %v2648_v4 = vor.u32 %v2844_v57, %v2647_v53  ;;  %v2561_v50 = vld [vmem:[%s3377_s8 + $0x358] sm:$0xf0]  ;;  %v2787_v51 = vld [vmem:[%s3377_s8 + $0x244] sm:$0xf]  ;;  %v2769_v57 = vld [vmem:[%s3377_s8 + $0x1b4] sm:$0xf] }
  0xfc   : > { %1871 = vmatpush.bf16.msra.mxu1 %v2180_v63  ;;  %v2793_v63 = vld [vmem:[%s3377_s8 + $0x274] sm:$0xf]  ;;  %v2803_v53 = vld [vmem:[%s3377_s8 + $0x2c4] sm:$0xf]  ;;  %v2673_v14 = vld [vmem:[%s3377_s8 + $0x438] sm:$0xf0] }
  0xfd   : > { %1884 = vmatpush.bf16.msra.mxu2 %v2244_v2  ;;  %v2731_v2 = vld [vmem:[%s3377_s8 + $0x84] sm:$0xf]  ;;  %v2452_v16 = vor.u32 %v2793_v63, %v2449_v1  ;;  %v2801_v63 = vld [vmem:[%s3377_s8 + $0x2b4] sm:$0xf]  ;;  %v2356_v1 = vor.u32 %v2769_v57, %v2353_v58 }
  0xfe   : > { %1897 = vmatpush.bf16.msra.mxu3 %v2308_v5  ;;  %v2809_v5 = vld [vmem:[%s3377_s8 + $0x2f4] sm:$0xf]  ;;  %v2204_v17 = vor.u32 %v2731_v2, %v2201_v3  ;;  %v2767_v3 = vld [vmem:[%s3377_s8 + $0x1a4] sm:$0xf] }
  0xff   : > { %1859 = vmatpush.bf16.msra.mxu0 %v2680_v10  ;;  %v2388_v10 = vor.u32 %v2777_v61, %v2385_v62  ;;  %v2785_v61 = vld [vmem:[%s3377_s8 + $0x234] sm:$0xf]  ;;  %v2417_v62 = vld [vmem:[%s3377_s8 + $0x238] sm:$0xf0]  ;;  %v2839_v57 = vld [vmem:[%s3377_s8 + $0x3e4] sm:$0xf] }
 0x100   : > { %1872 = vmatpush.bf16.msra.mxu1 %v2172_v15  ;;  %v2775_v15 = vld [vmem:[%s3377_s8 + $0x1e4] sm:$0xf]  ;;  %v2849_v12 = vld [vmem:[%s3377_s8 + $0x434] sm:$0xf] }
 0x101   : > { %1885 = vmatpush.bf16.msra.mxu2 %v2236_v18  ;;  %v2377_v18 = vld [vmem:[%s3377_s8 + $0x1e8] sm:$0xf0]  ;;  %v2855_v58 = vld [vmem:[%s3377_s8 + $0x464] sm:$0xf] }
 0x102   : > { %1898 = vmatpush.bf16.msra.mxu3 %v2300_v21  ;;  %v2516_v21 = vor.u32 %v2809_v5, %v2513_v6  ;;  %v2380_v28 = vor.u32 %v2775_v15, %v2377_v18  ;;  %v2345_v5 = vld [vmem:[%s3377_s8 + $0x1a8] sm:$0xf0]  ;;  %v2817_v6 = vld [vmem:[%s3377_s8 + $0x334] sm:$0xf]  ;;  %v2799_v15 = vld [vmem:[%s3377_s8 + $0x2a4] sm:$0xf] }
 0x103   : > { %1860 = vmatpush.bf16.msra.mxu0 %v2672_v24  ;;  %v3613_v24 = vld [vmem:[#allocation1] sm:$0xff] }
 0x104   : > { %1873 = vmatpush.bf16.msra.mxu1 %v2164_v27  ;;  %v2505_v27 = vld [vmem:[%s3377_s8 + $0x2e8] sm:$0xf0] }
 0x105   : > { %1886 = vmatpush.bf16.msra.mxu2 %v2228_v30  ;;  %v2773_v30 = vld [vmem:[%s3377_s8 + $0x1d4] sm:$0xf]  ;;  %v2508_v38 = vor.u32 %v2807_v26, %v2505_v27  ;;  %v2401_v27 = vld [vmem:[%s3377_s8 + $0x218] sm:$0xf0] }
 0x106   : > { %1899 = vmatpush.bf16.msra.mxu3 %v2292_v36  ;;  %v2823_v36 = vld [vmem:[%s3377_s8 + $0x364] sm:$0xf]  ;;  %v2372_v44 = vor.u32 %v2773_v30, %v2369_v32  ;;  %v2781_v26 = vld [vmem:[%s3377_s8 + $0x214] sm:$0xf] }
 0x107   : > { %1861 = vmatpush.bf16.msra.mxu0 %v2664_v39  ;;  %v2789_v39 = vld [vmem:[%s3377_s8 + $0x254] sm:$0xf]  ;;  %v2572_v45 = vor.u32 %v2823_v36, %v2569_v37  ;;  %v2763_v32 = vld [vmem:[%s3377_s8 + $0x184] sm:$0xf]  ;;  %v2329_v36 = vld [vmem:[%s3377_s8 + $0x188] sm:$0xf0] }
 0x108   : > { %1874 = vmatpush.bf16.msra.mxu1 %v2156_v43  ;;  %v2497_v43 = vld [vmem:[%s3377_s8 + $0x2d8] sm:$0xf0]  ;;  %v2436_v47 = vor.u32 %v2789_v39, %v2433_v40  ;;  %v2779_v37 = vld [vmem:[%s3377_s8 + $0x204] sm:$0xf]  ;;  %v2393_v39 = vld [vmem:[%s3377_s8 + $0x208] sm:$0xf0] }
 0x109   : > { %1887 = vmatpush.bf16.msra.mxu2 %v2220_v46  ;;  %v2771_v46 = vld [vmem:[%s3377_s8 + $0x1c4] sm:$0xf]  ;;  %v2813_v40 = vld [vmem:[%s3377_s8 + $0x314] sm:$0xf] }
 0x10a   : > { %1900 = vmatpush.bf16.msra.mxu3 %v2284_v49  ;;  %v2821_v49 = vld [vmem:[%s3377_s8 + $0x354] sm:$0xf]  ;;  %v2364_v55 = vor.u32 %v2771_v46, %v2361_v48  ;;  %v2795_v48 = vld [vmem:[%s3377_s8 + $0x284] sm:$0xf] }
 0x10b   : > { %1862 = vmatpush.bf16.msra.mxu0 %v2656_v52  ;;  %v2425_v52 = vld [vmem:[%s3377_s8 + $0x248] sm:$0xf0]  ;;  %v2857_v46 = vld [vmem:[%s3377_s8 + $0x474] sm:$0xf] }
 0x10c   : > { %1875 = vmatpush.bf16.msra.mxu1 %v2148_v56  ;;  %v2564_v56 = vor.u32 %v2821_v49, %v2561_v50  ;;  %v2457_v49 = vld [vmem:[%s3377_s8 + $0x288] sm:$0xf0]  ;;  %v2332_v50 = vor.u32 %v2763_v32, %v2329_v36 }
 0x10d   : > { %1888 = vmatpush.bf16.msra.mxu2 %v2212_v60  ;;  %v2553_v60 = vld [vmem:[%s3377_s8 + $0x348] sm:$0xf0] }
 0x10e   : > { %1901 = vmatpush.bf16.msra.mxu3 %v2276_v0  ;;  %v2481_v0 = vld [vmem:[%s3377_s8 + $0x2b8] sm:$0xf0]  ;;  %v2556_v2 = vor.u32 %v2819_v59, %v2553_v60  ;;  %v2697_v59 = vld [vmem:[%s3377_s8 + $0x468] sm:$0xf0] }
 0x10f   : > { %1863 = vmatpush.bf16.msra.mxu0 %v2648_v4  ;;  %v2420_v4 = vor.u32 %v2785_v61, %v2417_v62  ;;  %v2700_v61 = vor.u32 %v2855_v58, %v2697_v59  ;;  %v2837_v62 = vld [vmem:[%s3377_s8 + $0x3d4] sm:$0xf]  ;;  %v2649_v32 = vld [vmem:[%s3377_s8 + $0x408] sm:$0xf0] }
 0x110   : > { %1876 = vmatpush.bf16.msra.mxu1 %v2140_v9  ;;  %v2545_v9 = vld [vmem:[%s3377_s8 + $0x338] sm:$0xf0] }
 0x111   : > { %1889 = vmatpush.bf16.msra.mxu2 %v2204_v17  ;;  %v2348_v17 = vor.u32 %v2767_v3, %v2345_v5  ;;  %v2548_v18 = vor.u32 %v2817_v6, %v2545_v9  ;;  %v2617_v5 = vld [vmem:[%s3377_s8 + $0x3c8] sm:$0xf0] }
 0x112   : > { %1864 = vmatmul.bf16.vlgmr.msra.gmra.mxu0 %v3613_v24  ;;  %1902 = vmatpush.bf16.msra.mxu3 %v2268_v25  ;;  %v2681_v6 = vld [vmem:[%s3377_s8 + $0x448] sm:$0xf0] }
 0x113   : > { %1908 = vmatpush.bf16.msrb.mxu0 %v2388_v10  ;;  %1877 = vmatmul.bf16.vlgmr.msra.gmra.mxu1 %v3482_v34  ;;  %v2500_v34 = vor.u32 %v2805_v41, %v2497_v43  ;;  %v2484_v10 = vor.u32 %v2801_v63, %v2481_v0  ;;  %v2529_v41 = vld [vmem:[%s3377_s8 + $0x318] sm:$0xf0]  ;;  %v2853_v0 = vld [vmem:[%s3377_s8 + $0x454] sm:$0xf] }
 0x114   : > { %1921 = vmatpush.bf16.msrb.mxu1 %v2452_v16  ;;  %1890 = vmatmul.bf16.vlgmr.msra.gmra.mxu2 %v3492_v42  ;;  %v2428_v42 = vor.u32 %v2787_v51, %v2425_v52  ;;  %v2473_v16 = vld [vmem:[%s3377_s8 + $0x2a8] sm:$0xf0]  ;;  %v2396_v51 = vor.u32 %v2779_v37, %v2393_v39  ;;  %v2625_v63 = vld [vmem:[%s3377_s8 + $0x3d8] sm:$0xf0] }
 0x115   : > { %1934 = vmatpush.bf16.msrb.mxu2 %v2516_v21  ;;  %1903 = vmatmul.bf16.vlgmr.msra.gmra.mxu3 %v3480_v33  ;;  %v2492_v33 = vor.u32 %v2803_v53, %v2489_v54  ;;  %v2337_v21 = vld [vmem:[%s3377_s8 + $0x198] sm:$0xf0]  ;;  %v2476_v25 = vor.u32 %v2799_v15, %v2473_v16  ;;  %v2811_v53 = vld [vmem:[%s3377_s8 + $0x304] sm:$0xf]  ;;  %v2521_v54 = vld [vmem:[%s3377_s8 + $0x308] sm:$0xf0] }
 0x116   : > { %1947 = vmatpush.bf16.msrb.mxu3 %v2580_v29  ;;  %v2465_v29 = vld [vmem:[%s3377_s8 + $0x298] sm:$0xf0]  ;;  %v2340_v30 = vor.u32 %v2765_v19, %v2337_v21  ;;  %v2524_v60 = vor.u32 %v2811_v53, %v2521_v54  ;;  %v2831_v16 = vld [vmem:[%s3377_s8 + $0x3a4] sm:$0xf]  ;;  %v2665_v19 = vld [vmem:[%s3377_s8 + $0x428] sm:$0xf0] }
 0x117   : > { %1909 = vmatpush.bf16.msrb.mxu0 %v2380_v28  ;;  %v2797_v28 = vld [vmem:[%s3377_s8 + $0x294] sm:$0xf] }
 0x118   : > { %1922 = vmatpush.bf16.msrb.mxu1 %v2444_v31  ;;  %v2540_v31 = vor.u32 %v2815_v22, %v2537_v23  ;;  %v2468_v43 = vor.u32 %v2797_v28, %v2465_v29  ;;  %v2829_v22 = vld [vmem:[%s3377_s8 + $0x394] sm:$0xf]  ;;  %v2593_v23 = vld [vmem:[%s3377_s8 + $0x398] sm:$0xf0]  ;;  %v2827_v29 = vld [vmem:[%s3377_s8 + $0x384] sm:$0xf] }
 0x119   : > { %1935 = vmatpush.bf16.msrb.mxu2 %v2508_v38  ;;  %v2404_v38 = vor.u32 %v2781_v26, %v2401_v27  ;;  %v2657_v26 = vld [vmem:[%s3377_s8 + $0x418] sm:$0xf0]  ;;  %v2596_v27 = vor.u32 %v2829_v22, %v2593_v23 }
 0x11a   : > { %1948 = vmatpush.bf16.msrb.mxu3 %v2572_v45  ;;  %v2641_v45 = vld [vmem:[%s3377_s8 + $0x3f8] sm:$0xf0] }
 0x11b   : > { %1910 = vmatpush.bf16.msrb.mxu0 %v2372_v44  ;;  %v2841_v44 = vld [vmem:[%s3377_s8 + $0x3f4] sm:$0xf] }
 0x11c   : > { %1923 = vmatpush.bf16.msrb.mxu1 %v2436_v47  ;;  %v2705_v47 = vld [vmem:[%s3377_s8 + $0x478] sm:$0xf0]  ;;  %v2644_v52 = vor.u32 %v2841_v44, %v2641_v45 }
 0x11d   : > { %1936 = vmatpush.bf16.msrb.mxu2 %v2500_v34  ;;  %v2532_v34 = vor.u32 %v2813_v40, %v2529_v41 }
 0x11e   : > { %1949 = vmatpush.bf16.msrb.mxu3 %v2564_v56  ;;  %v2460_v56 = vor.u32 %v2795_v48, %v2457_v49 }
 0x11f   : > { %1911 = vmatpush.bf16.msrb.mxu0 %v2364_v55  ;;  %v2708_v55 = vor.u32 %v2857_v46, %v2705_v47 }
 0x120   : > { %1924 = vmatpush.bf16.msrb.mxu1 %v2428_v42  ;;  %v2633_v42 = vld [vmem:[%s3377_s8 + $0x3e8] sm:$0xf0] }
 0x121   : > { %1937 = vmatpush.bf16.msrb.mxu2 %v2492_v33  ;;  %v2636_v33 = vor.u32 %v2839_v57, %v2633_v42 }
 0x122   : > { %1950 = vmatpush.bf16.msrb.mxu3 %v2556_v2  ;;  %v2628_v2 = vor.u32 %v2837_v62, %v2625_v63 }
 0x123   : > { %1912 = vmatpush.bf16.msrb.mxu0 %v2356_v1  ;;  %v2689_v1 = vld [vmem:[%s3377_s8 + $0x458] sm:$0xf0] }
 0x124   : > { %1925 = vmatpush.bf16.msrb.mxu1 %v2420_v4  ;;  %v2692_v3 = vor.u32 %v2853_v0, %v2689_v1  ;;  %v2835_v4 = vld [vmem:[%s3377_s8 + $0x3c4] sm:$0xf] }
 0x125   : > { %1938 = vmatpush.bf16.msrb.mxu2 %v2484_v10  ;;  %v2833_v10 = vld [vmem:[%s3377_s8 + $0x3b4] sm:$0xf] }
 0x126   : > { %1951 = vmatpush.bf16.msrb.mxu3 %v2548_v18  ;;  %v2847_v18 = vld [vmem:[%s3377_s8 + $0x424] sm:$0xf] }
 0x127   : > { %1913 = vmatpush.bf16.msrb.mxu0 %v2348_v17  ;;  %v2601_v17 = vld [vmem:[%s3377_s8 + $0x3a8] sm:$0xf0]  ;;  %v2668_v21 = vor.u32 %v2847_v18, %v2665_v19 }
 0x128   : > { %1926 = vmatpush.bf16.msrb.mxu1 %v2412_v20  ;;  %v2604_v20 = vor.u32 %v2831_v16, %v2601_v17 }
 0x129   : > { %1939 = vmatpush.bf16.msrb.mxu2 %v2476_v25  ;;  %v2845_v25 = vld [vmem:[%s3377_s8 + $0x414] sm:$0xf] }
 0x12a   : > { %1952 = vmatpush.bf16.msrb.mxu3 %v2540_v31  ;;  %v2660_v28 = vor.u32 %v2845_v25, %v2657_v26  ;;  %v2843_v31 = vld [vmem:[%s3377_s8 + $0x404] sm:$0xf] }
 0x12b   : > { %1914 = vmatpush.bf16.msrb.mxu0 %v2340_v30  ;;  %v2585_v30 = vld [vmem:[%s3377_s8 + $0x388] sm:$0xf0]  ;;  %v2652_v37 = vor.u32 %v2843_v31, %v2649_v32 }
 0x12c   : > { %1927 = vmatpush.bf16.msrb.mxu1 %v2404_v38  ;;  %v2588_v36 = vor.u32 %v2827_v29, %v2585_v30  ;;  %v1004_v38 = vld [vmem:[%s855_s26] sm:$0x3] }
 0x12d   : > { %1940 = vmatpush.bf16.msrb.mxu2 %v2468_v43  ;;  %v1006_v39 = vperm.slane %v1004_v38, 0 }
 0x12e   : > { %1953 = vmatpush.bf16.msrb.mxu3 %v2532_v34 }
 0x12f   : > { %1915 = vmatpush.bf16.msrb.mxu0 %v2332_v50 }
 0x130   : > { %1928 = vmatpush.bf16.msrb.mxu1 %v2396_v51 }
 0x131   : > { %1941 = vmatpush.bf16.msrb.mxu2 %v2460_v56 }
 0x132   : > { %1916 = vmatmul.bf16.vlgmr.msrb.gmra.mxu0 %v3484_v35  ;;  %1954 = vmatpush.bf16.msrb.mxu3 %v2524_v60  ;;  %v2851_v35 = vld [vmem:[%s3377_s8 + $0x444] sm:$0xf] }
 0x133   : > { %1960 = vmatpush.bf16.msra.mxu0 %v2644_v52  ;;  %1929 = vmatmul.bf16.vlgmr.msrb.gmra.mxu1 %v3518_v8  ;;  %v2620_v8 = vor.u32 %v2835_v4, %v2617_v5  ;;  %v2684_v9 = vor.u32 %v2851_v35, %v2681_v6  ;;  %v1007_v4 = vperm.slane %v1004_v38, 1 }
 0x134   : > { %1973 = vmatpush.bf16.msra.mxu1 %v2708_v55  ;;  %1942 = vmatmul.bf16.vlgmr.msrb.gmra.mxu2 %v3526_v13  ;;  %v2609_v13 = vld [vmem:[%s3377_s8 + $0x3b8] sm:$0xf0]  ;;  %s2013_s8 = sshll.u32 %s2009_s4, 4  ;;  %s2014_s8 = int_to_ptr.hbm [resolvable:$true] %s2013_s8 }
 0x135   : > { %1955 = vmatmul.bf16.vlgmr.msrb.gmra.mxu3 %v3516_v7  ;;  %v2612_v15 = vor.u32 %v2833_v10, %v2609_v13  ;;  %v2676_v7 = vor.u32 %v2849_v12, %v2673_v14  ;;  %s2931_s9 = sshra.s32 %s2014_s8, 4  ;;  %s2932_s9 = int_to_ptr.hbm [resolvable:$true] %s2931_s9 }
 0x136   : > { %s2933_s10 = scalar_lea.hbm %s2932_s9, 4  ;;  %p2938_p4 = scmp.lt.s32.totalorder %s2932_s9, %s3755_s3 }
 0x137   : > { %1961 = vmatpush.bf16.msra.mxu0 %v2636_v33  ;;  %p2934_p1 = scmp.ne.s32.totalorder %s2932_s9, %s2933_s10  ;;  %p2939_p6 = scmp.lt.s32.totalorder %s2937_s19, %s2933_s10 }
 0x138   : > { %1974 = vmatpush.bf16.msra.mxu1 %v2700_v61 }
 0x139   : > { %p2935_p2 = pnand %p2934_p1, %p3056_p5  ;;  %p2940_p7 = por %p2939_p6, %p2938_p4 }
 0x13b   : > { %1962 = vmatpush.bf16.msra.mxu0 %v2628_v2  ;;  %p2936_p3 = pneg %p2935_p2 }
 0x13c   : > { %1975 = vmatpush.bf16.msra.mxu1 %v2692_v3 }
 0x13d   : > { %p2941_p8 = pnand %p2940_p7, %p2936_p3 }
 0x13f   : > { %1963 = vmatpush.bf16.msra.mxu0 %v2620_v8 }
 0x140   : > { %1976 = vmatpush.bf16.msra.mxu1 %v2684_v9 }
 0x143   : > { %1964 = vmatpush.bf16.msra.mxu0 %v2612_v15 }
 0x144   : > { %1977 = vmatpush.bf16.msra.mxu1 %v2676_v7 }
 0x147   : > { %1965 = vmatpush.bf16.msra.mxu0 %v2604_v20 }
 0x148   : > { %1978 = vmatpush.bf16.msra.mxu1 %v2668_v21 }
 0x14b   : > { %1966 = vmatpush.bf16.msra.mxu0 %v2596_v27 }
 0x14c   : > { %1979 = vmatpush.bf16.msra.mxu1 %v2660_v28 }
 0x14f   : > { %1967 = vmatpush.bf16.msra.mxu0 %v2588_v36 }
 0x150   : > { %1980 = vmatpush.bf16.msra.mxu1 %v2652_v37 }
 0x151   : > { %v1761_v40 = vpop.f32.mrf.mxu0 }
 0x152   : > { %1968 = vmatmul.bf16.vlgmr.msra.gmra.mxu0 %v3521_v11  ;;  %v1762_v41 = vadd.f32 %v1761_v40, %v1006_v39 }
 0x153   : > { %1981 = vmatmul.bf16.vlgmr.msra.gmra.mxu1 %v3613_v24 }
 0x154   : > { %v1774_v43 = vpop.f32.mrf.mxu1 }
 0x155   : > { %v1775_v44 = vadd.f32 %v1774_v43, %v1762_v41 }
 0x158   : > { %v1800_v47 = vpop.f32.mrf.mxu3 }
 0x159   : > { %v1787_v45 = vpop.f32.mrf.mxu2  ;;  %v1763_v48 = vpop.f32.mrf.mxu0 }
 0x15a   : > { %v1788_v46 = vadd.f32 %v1787_v45, %v1775_v44 }
 0x15c   : > { %v1801_v49 = vadd.f32 %v1800_v47, %v1788_v46  ;;  %v1776_v11 = vpop.f32.mrf.mxu1 }
 0x160   : > { %v1802_v34 = vpop.f32.mrf.mxu3 }
 0x161   : > { %v1789_v50 = vpop.f32.mrf.mxu2 }
 0x16f   : > { %v1813_v24 = vpop.f32.mrf.mxu0 }
 0x170   : > { %v1814_v51 = vadd.f32 %v1813_v24, %v1801_v49  ;;  %v1826_v52 = vpop.f32.mrf.mxu1 }
 0x172   : > { %v1827_v53 = vadd.f32 %v1826_v52, %v1814_v51 }
 0x177   : > { %v1839_v54 = vpop.f32.mrf.mxu2  ;;  %v1815_v57 = vpop.f32.mrf.mxu0 }
 0x178   : > { %v1840_v55 = vadd.f32 %v1839_v54, %v1827_v53  ;;  %v1852_v56 = vpop.f32.mrf.mxu3  ;;  %v1828_v58 = vpop.f32.mrf.mxu1 }
 0x17a   : > { %v1853_v42 = vadd.f32 %v1852_v56, %v1840_v55 }
 0x17f   : > { %v1841_v59 = vpop.f32.mrf.mxu2 }
 0x180   : > { %v1854_v60 = vpop.f32.mrf.mxu3 }
 0x18f   : > { %v1865_v33 = vpop.f32.mrf.mxu0 }
 0x190   : > { %v1878_v61 = vpop.f32.mrf.mxu1  ;;  %v1866_v23 = vadd.f32 %v1865_v33, %v1853_v42 }
 0x191   : > { %v1879_v6 = vadd.f32 %v1878_v61, %v1007_v4 }
 0x192   : > { %v1986_v27 = vmax.f32 %v1866_v23, 0.0 }
 0x197   : > { %v1867_v62 = vpop.f32.mrf.mxu0  ;;  %v1891_v63 = vpop.f32.mrf.mxu2 }
 0x198   : > { %v1880_v0 = vpop.f32.mrf.mxu1  ;;  %v1904_v1 = vpop.f32.mrf.mxu3  ;;  %v1892_v8 = vadd.f32 %v1891_v63, %v1879_v6 }
 0x19a   : > { %v1905_v14 = vadd.f32 %v1904_v1, %v1892_v8 }
 0x19f   : > { %v1893_v2 = vpop.f32.mrf.mxu2 }
 0x1a0   : > { %v1906_v3 = vpop.f32.mrf.mxu3 }
 0x1af   : > { %v1917_v5 = vpop.f32.mrf.mxu0 }
 0x1b0   : > { %v1930_v35 = vpop.f32.mrf.mxu1  ;;  %v1918_v15 = vadd.f32 %v1917_v5, %v1905_v14 }
 0x1b2   : > { %v1931_v17 = vadd.f32 %v1930_v35, %v1918_v15 }
 0x1b7   : > { %v1943_v9 = vpop.f32.mrf.mxu2  ;;  %v1919_v10 = vpop.f32.mrf.mxu0 }
 0x1b8   : > { %v1932_v13 = vpop.f32.mrf.mxu1  ;;  %v1956_v12 = vpop.f32.mrf.mxu3  ;;  %v1944_v18 = vadd.f32 %v1943_v9, %v1931_v17 }
 0x1ba   : > { %v1957_v19 = vadd.f32 %v1956_v12, %v1944_v18 }
 0x1bf   : > { %v1945_v7 = vpop.f32.mrf.mxu2 }
 0x1c0   : > { %v1958_v16 = vpop.f32.mrf.mxu3 }
 0x1cf   : > { %v1969_v20 = vpop.f32.mrf.mxu0 }
 0x1d0   : > { %v1970_v21 = vadd.f32 %v1969_v20, %v1957_v19  ;;  %v1982_v22 = vpop.f32.mrf.mxu1 }
 0x1d2   : > { %v1983_v25 = vadd.f32 %v1982_v22, %v1970_v21 }
 0x1d4   : > { %v1987_v26 = vmax.f32 %v1983_v25, 0.0 }
 0x1d6   : > { %v1990_v28 = vrot.slane %v1987_v26, 6 }
 0x1d7   : > { %v1971_v29 = vpop.f32.mrf.mxu0 }
 0x1d8   : > { %v1984_v30 = vpop.f32.mrf.mxu1  ;;  %v1992_v31 = vsel %vm1991_vm0, %v1986_v27, %v1990_v28 }
 0x1d9   : > { %1994 = vst [vmem:[%s840_s5] sm:$0xf] %v1992_v31 }
 0x1da   : > { %2944 = shalt.err (!%p2941_p8)
}
 0x1db   : > { %2862 = dma.vmem_to_hbm [thread:$0]  (%p3056_p5), %s2012_s7, 64, %s2014_s8, %s1996_s15  }
 0x1dc PF: > { %s2025_s6 = sand.u32 1, %s2975_s12   ;;  %p2865_p11 = pnand %p2127_p10, %p3067_p9 }
 0x1dd   : > { %s2026_s26 = scalar_lea.sflag [#allocation4], %s2025_s6 }
 0x1de   : > { %p2866_p12 = pneg %p2865_p11 }
 0x1e0   : > { %2970 = dma.done.wait (%p2866_p12), %s2026_s26, 64  }
 0x1e1   : > { %2972 = vsyncadd (%p2866_p12), %s2026_s26, 4294967232  ;;  %s16_s17 = sadd.s32 1, %s2995_s17   ;;  %s3758_s12 = smov %s2979_s13 }
 0x1e2   : > { %p13_p13 = scmp.ge.s32.totalorder %s16_s17, 4   ;;  %s3759_s13 = smov %s2983_s14 }
 0x1e3   : > { %s3760_s14 = smov %s3065_s24  ;;  %s3761_s15 = smov %s2991_s16 }
 0x1e4   : > { %s3762_s16 = smov %s3764_s20  ;;  %15 = sbr.rel (!%p13_p13) target bundleno = 4 (0x4), region = 116 }
 0x1e9   :  { %2032 = vsyncpa [#allocation4], 1 }
 0x1ea   :  { %2034 = vsyncpa [#allocation4 + $0x1], 1 }

</bundles_post_ra>
